<compile_context>
chip_gen: v6e
topology: v6e:2x2x1
jax: 0.10.0
libtpu: 0.0.40
codegen_flags: <defaults>
</compile_context>

<pallas_src>
import functools

import jax
import jax.numpy as jnp
from jax.experimental import pallas as pl
from jax.experimental.pallas import tpu as pltpu


def local_decoder_kernel(pc_ref, wf_ref, bf_ref,
                         w0_ref, b0_ref,
                         w1_ref, b1_ref,
                         wout_ref, bout_ref,
                         out_ref, *, n_blocks, hidden):
    """One row-tile of LocalDecoder.forward.

    pc_ref  : (tile_m, dim+c_dim)            bf16  rows = [p | c]
    wf_ref  : (dim+c_dim, (1+n)*hidden)      bf16  block-diag [fc_p.W ; fc_c[i].W]
    bf_ref  : (1, (1+n)*hidden)              f32   [fc_p.b | fc_c[i].b]
    w0/w1   : (n, hidden, hidden)            bf16  ResnetBlockFC fc_0 / fc_1
    b0/b1   : (n, 1, hidden)                 f32
    wout    : (hidden, cls_pad)              bf16  lane-padded output head
    bout    : (1, cls_pad)                   f32
    out     : (tile_m, cls_pad)              f32
    """
    relu = lambda x: jnp.maximum(x, 0.0)
    bf16 = lambda x: x.astype(jnp.bfloat16)

    # One fused MXU pass gives fc_p(p) and every fc_c[i](c):
    #   proj[:, 0:h]             = fc_p(p)
    #   proj[:, (i+1)h:(i+2)h]   = fc_c[i](c)
    proj = jnp.dot(pc_ref[...], wf_ref[...],
                   preferred_element_type=jnp.float32) + bf_ref[...]

    net = proj[:, :hidden]
    for i in range(n_blocks):  # small, static trip count -> unrolled
        net = net + proj[:, (i + 1) * hidden:(i + 2) * hidden]
        # ResnetBlockFC: size_in == size_out == hidden => identity shortcut.
        h = jnp.dot(bf16(relu(net)), w0_ref[i],
                    preferred_element_type=jnp.float32) + b0_ref[i]
        dx = jnp.dot(bf16(relu(h)), w1_ref[i],
                     preferred_element_type=jnp.float32) + b1_ref[i]
        net = net + dx

    out_ref[...] = jnp.dot(bf16(relu(net)), wout_ref[...],
                           preferred_element_type=jnp.float32) + bout_ref[...]


def local_decoder_forward(p, c, params, *, tile_m=256):
    B, T, dim = p.shape
    c_dim = c.shape[-1]
    n_blocks, _, hidden = params["wc"].shape
    cls = params["wout"].shape[1]
    cls_pad = ((cls + 127) // 128) * 128          # lane-dense output head

    N = B * T
    n_tiles = pl.cdiv(N, tile_m)
    Npad = n_tiles * tile_m

    bf16 = lambda x: x.astype(jnp.bfloat16)

    # Rows: [p | c] flattened to (N, dim+c_dim), bf16, zero-padded to Npad rows.
    pc = jnp.concatenate(
        [p.reshape(N, dim).astype(jnp.float32),
         c.reshape(N, c_dim).astype(jnp.float32)], axis=-1).astype(jnp.bfloat16)
    if Npad != N:
        pc = jnp.pad(pc, ((0, Npad - N), (0, 0)))

    # Fused block-diagonal projection weight + bias.
    in_dim = dim + c_dim
    fused_cols = (1 + n_blocks) * hidden
    wf = jnp.zeros((in_dim, fused_cols), jnp.float32)
    wf = wf.at[:dim, :hidden].set(params["wp"])
    for i in range(n_blocks):
        wf = wf.at[dim:, (i + 1) * hidden:(i + 2) * hidden].set(params["wc"][i])
    bfused = jnp.concatenate(
        [params["bp"]] + [params["bc"][i] for i in range(n_blocks)], axis=-1)

    # Lane-padded output head (pad columns cls -> cls_pad with zeros).
    wout = jnp.zeros((hidden, cls_pad), jnp.float32).at[:, :cls].set(params["wout"])
    bout = jnp.zeros((1, cls_pad), jnp.float32).at[:, :cls].set(params["bout"])

    def full_spec(shape):
        return pl.BlockSpec(shape, lambda i, _n=len(shape): (0,) * _n)

    out = pl.pallas_call(
        functools.partial(local_decoder_kernel, n_blocks=n_blocks, hidden=hidden),
        out_shape=jax.ShapeDtypeStruct((Npad, cls_pad), jnp.float32),
        grid_spec=pltpu.PrefetchScalarGridSpec(
            num_scalar_prefetch=0,
            grid=(n_tiles,),
            in_specs=[
                pl.BlockSpec((tile_m, in_dim), lambda i: (i, 0)),       # [p | c] rows
                full_spec((in_dim, fused_cols)),                        # fused W
                full_spec((1, fused_cols)),                             # fused b
                full_spec((n_blocks, hidden, hidden)),                  # w0
                full_spec((n_blocks, 1, hidden)),                       # b0
                full_spec((n_blocks, hidden, hidden)),                  # w1
                full_spec((n_blocks, 1, hidden)),                       # b1
                full_spec((hidden, cls_pad)),                           # wout (padded)
                full_spec((1, cls_pad)),                                # bout (padded)
            ],
            out_specs=pl.BlockSpec((tile_m, cls_pad), lambda i: (i, 0)),
        ),
        compiler_params=pltpu.CompilerParams(
            dimension_semantics=("parallel",)),
    )(pc, bf16(wf), bfused,
      bf16(params["w0"]), params["b0"],
      bf16(params["w1"]), params["b1"],
      bf16(wout), bout)

    # out.squeeze(-1) in the PyTorch module is a no-op when cls > 1.
    return out[:N, :cls].reshape(B, T, cls)


def init_params(key, dim, c_dim, hidden, n_blocks, cls):
    """nn.Linear-style init; fc_1 weights zeroed as in ResnetBlockFC.__init__.
    Weights stored transposed: (fan_in, fan_out). All f32 (quantized to bf16 in wrapper)."""
    def linear(k, fan_in, fan_out, zero_w=False):
        kw, kb = jax.random.split(k)
        bound = 1.0 / (fan_in ** 0.5)
        if zero_w:
            w = jnp.zeros((fan_in, fan_out), jnp.float32)
        else:
            w = jax.random.uniform(kw, (fan_in, fan_out), jnp.float32, -bound, bound)
        b = jax.random.uniform(kb, (fan_out,), jnp.float32, -bound, bound)
        return w, b

    keys = jax.random.split(key, 2 + 3 * n_blocks)
    wp, bp = linear(keys[0], dim, hidden)
    wout, bout = linear(keys[1], hidden, cls)

    wc, bc, w0, b0, w1, b1 = [], [], [], [], [], []
    for i in range(n_blocks):
        kci, k0i, k1i = keys[2 + 3 * i], keys[3 + 3 * i], keys[4 + 3 * i]
        wci, bci = linear(kci, c_dim, hidden)
        w0i, b0i = linear(k0i, hidden, hidden)
        w1i, b1i = linear(k1i, hidden, hidden, zero_w=True)  # nn.init.zeros_(fc_1.weight)
        wc.append(wci); bc.append(bci)
        w0.append(w0i); b0.append(b0i)
        w1.append(w1i); b1.append(b1i)

    return dict(
        wp=wp, bp=bp.reshape(1, hidden),
        wc=jnp.stack(wc), bc=jnp.stack(bc).reshape(n_blocks, 1, hidden),
        w0=jnp.stack(w0), b0=jnp.stack(b0).reshape(n_blocks, 1, hidden),
        w1=jnp.stack(w1), b1=jnp.stack(b1).reshape(n_blocks, 1, hidden),
        wout=wout, bout=bout.reshape(1, cls),
    )


def reference_forward_f32(p, c, params):
    """Pure-f32 reference (mirrors the PyTorch module exactly)."""
    relu = lambda x: jnp.maximum(x, 0.0)
    n_blocks = params["wc"].shape[0]
    B, T, dim = p.shape
    pf = p.reshape(B * T, dim).astype(jnp.float32)
    cf = c.reshape(B * T, -1).astype(jnp.float32)
    net = pf @ params["wp"] + params["bp"][0]
    for i in range(n_blocks):
        net = net + cf @ params["wc"][i] + params["bc"][i, 0]
        h = relu(net) @ params["w0"][i] + params["b0"][i, 0]
        dx = relu(h) @ params["w1"][i] + params["b1"][i, 0]
        net = net + dx
    out = relu(net) @ params["wout"] + params["bout"][0]
    return out.reshape(B, T, -1)


def reference_forward_bf16(p, c, params):
    """Reference that mimics the kernel's quantization: bf16 matmul operands, f32 accumulation."""
    relu = lambda x: jnp.maximum(x, 0.0)
    bf = lambda x: x.astype(jnp.bfloat16)
    dot = lambda a, b: jnp.dot(bf(a), bf(b), preferred_element_type=jnp.float32)
    n_blocks = params["wc"].shape[0]
    B, T, dim = p.shape
    pf = p.reshape(B * T, dim).astype(jnp.float32)
    cf = c.reshape(B * T, -1).astype(jnp.float32)
    net = dot(pf, params["wp"]) + params["bp"][0]
    for i in range(n_blocks):
        net = net + dot(cf, params["wc"][i]) + params["bc"][i, 0]
        h = dot(relu(net), params["w0"][i]) + params["b0"][i, 0]
        dx = dot(relu(h), params["w1"][i]) + params["b1"][i, 0]
        net = net + dx
    out = dot(relu(net), params["wout"]) + params["bout"][0]
    return out.reshape(B, T, -1)


if __name__ == "__main__":
    # Small shapes consistent with LocalDecoder(dim=3, c_dim, hidden_size, n_blocks, cls).
    # N = B*T = 512 rows, tile_m = 256 -> grid of 2 (even: feeds both v7x TensorCores).
    B, T = 2, 256
    DIM, C_DIM, HIDDEN, N_BLOCKS, CLS = 3, 32, 128, 3, 12

    root = jax.random.PRNGKey(0)
    k_p, k_c, k_w = jax.random.split(root, 3)
    p = jax.random.normal(k_p, (B, T, DIM), jnp.float32)      # query points
    c = jax.random.normal(k_c, (B, T, C_DIM), jnp.float32)    # sampled local features
    params = init_params(k_w, DIM, C_DIM, HIDDEN, N_BLOCKS, CLS)

    out = local_decoder_forward(p, c, params, tile_m=256)
    out = jax.block_until_ready(out)
    assert out.shape == (B, T, CLS), out.shape

    ref_q = reference_forward_bf16(p, c, params)   # same quantization as the kernel
    ref_f = reference_forward_f32(p, c, params)    # exact f32 module semantics
    err_q = float(jnp.max(jnp.abs(out - ref_q)))
    err_f = float(jnp.max(jnp.abs(out - ref_f)))
    assert jnp.allclose(out, ref_q, atol=5e-3, rtol=5e-3), err_q
    assert jnp.allclose(out, ref_f, atol=5e-2, rtol=5e-2), err_f

    print("KERNEL_OK")
</pallas_src>

<mosaic_0001>
module attributes {stable_mosaic.version = 11 : i64} {
  func.func @local_decoder_kernel(%arg0: i32, %arg1: memref<256x35xbf16, #tpu.memory_space<vmem>>, %arg2: memref<35x512xbf16, #tpu.memory_space<vmem>>, %arg3: memref<1x512xf32, #tpu.memory_space<vmem>>, %arg4: memref<3x128x128xbf16, #tpu.memory_space<vmem>>, %arg5: memref<3x1x128xf32, #tpu.memory_space<vmem>>, %arg6: memref<3x128x128xbf16, #tpu.memory_space<vmem>>, %arg7: memref<3x1x128xf32, #tpu.memory_space<vmem>>, %arg8: memref<128x128xbf16, #tpu.memory_space<vmem>>, %arg9: memref<1x128xf32, #tpu.memory_space<vmem>>, %arg10: memref<256x128xf32, #tpu.memory_space<vmem>>) attributes {dimension_semantics = [#tpu.dimension_semantics<parallel>], iteration_bounds = array<i64: 2>, scalar_prefetch = 0 : i64, scratch_operands = 0 : i64, tpu.core_type = #tpu.core_type<tc>, window_params = [{transform_indices = @transform_0, window_bounds = array<i64: 256, 35>}, {pipeline_mode = #tpu.pipeline_mode<synchronous>, transform_indices = @transform_1, window_bounds = array<i64: 35, 512>}, {pipeline_mode = #tpu.pipeline_mode<synchronous>, transform_indices = @transform_2, window_bounds = array<i64: 1, 512>}, {pipeline_mode = #tpu.pipeline_mode<synchronous>, transform_indices = @transform_3, window_bounds = array<i64: 3, 128, 128>}, {pipeline_mode = #tpu.pipeline_mode<synchronous>, transform_indices = @transform_4, window_bounds = array<i64: 3, 1, 128>}, {pipeline_mode = #tpu.pipeline_mode<synchronous>, transform_indices = @transform_5, window_bounds = array<i64: 3, 128, 128>}, {pipeline_mode = #tpu.pipeline_mode<synchronous>, transform_indices = @transform_6, window_bounds = array<i64: 3, 1, 128>}, {pipeline_mode = #tpu.pipeline_mode<synchronous>, transform_indices = @transform_7, window_bounds = array<i64: 128, 128>}, {pipeline_mode = #tpu.pipeline_mode<synchronous>, transform_indices = @transform_8, window_bounds = array<i64: 1, 128>}, {transform_indices = @transform_9, window_bounds = array<i64: 256, 128>}]} {
    %c0 = arith.constant 0 : index
    %c0_0 = arith.constant 0 : index
    %0 = vector.load %arg1[%c0, %c0_0] : memref<256x35xbf16, #tpu.memory_space<vmem>>, vector<256x35xbf16>
    %c0_1 = arith.constant 0 : index
    %c0_2 = arith.constant 0 : index
    %1 = vector.load %arg2[%c0_1, %c0_2] : memref<35x512xbf16, #tpu.memory_space<vmem>>, vector<35x512xbf16>
    %cst = arith.constant dense<0.000000e+00> : vector<256x512xf32>
    %2 = tpu.matmul %0, %1, %cst {dimension_numbers = #tpu.dot_dimension_numbers<[1], [0], [0], [1], [0, 0, 1, 1], [], []>} : vector<256x35xbf16>, vector<35x512xbf16>, vector<256x512xf32> -> vector<256x512xf32>
    %c0_3 = arith.constant 0 : index
    %c0_4 = arith.constant 0 : index
    %3 = vector.load %arg3[%c0_3, %c0_4] : memref<1x512xf32, #tpu.memory_space<vmem>>, vector<1x512xf32>
    %4 = vector.broadcast %3 : vector<1x512xf32> to vector<256x512xf32>
    %5 = arith.addf %2, %4 : vector<256x512xf32>
    %6 = vector.extract_strided_slice %5 {offsets = [0, 0], sizes = [256, 128], strides = [1, 1]} : vector<256x512xf32> to vector<256x128xf32>
    %7 = vector.extract_strided_slice %5 {offsets = [0, 128], sizes = [256, 128], strides = [1, 1]} : vector<256x512xf32> to vector<256x128xf32>
    %8 = arith.addf %6, %7 : vector<256x128xf32>
    %cst_5 = arith.constant 0.000000e+00 : f32
    %9 = vector.broadcast %cst_5 : f32 to vector<256x128xf32>
    %10 = arith.maximumf %8, %9 : vector<256x128xf32>
    %11 = arith.truncf %10 : vector<256x128xf32> to vector<256x128xbf16>
    %c0_6 = arith.constant 0 : index
    %c0_7 = arith.constant 0 : index
    %c0_8 = arith.constant 0 : index
    %12 = vector.load %arg4[%c0_6, %c0_7, %c0_8] : memref<3x128x128xbf16, #tpu.memory_space<vmem>>, vector<1x128x128xbf16>
    %13 = vector.shape_cast %12 : vector<1x128x128xbf16> to vector<128x128xbf16>
    %cst_9 = arith.constant dense<0.000000e+00> : vector<256x128xf32>
    %14 = tpu.matmul %11, %13, %cst_9 {dimension_numbers = #tpu.dot_dimension_numbers<[1], [0], [0], [1], [0, 0, 1, 1], [], []>} : vector<256x128xbf16>, vector<128x128xbf16>, vector<256x128xf32> -> vector<256x128xf32>
    %c0_10 = arith.constant 0 : index
    %c0_11 = arith.constant 0 : index
    %c0_12 = arith.constant 0 : index
    %15 = vector.load %arg5[%c0_10, %c0_11, %c0_12] : memref<3x1x128xf32, #tpu.memory_space<vmem>>, vector<1x1x128xf32>
    %16 = vector.shape_cast %15 : vector<1x1x128xf32> to vector<1x128xf32>
    %17 = vector.broadcast %16 : vector<1x128xf32> to vector<256x128xf32>
    %18 = arith.addf %14, %17 : vector<256x128xf32>
    %cst_13 = arith.constant 0.000000e+00 : f32
    %19 = vector.broadcast %cst_13 : f32 to vector<256x128xf32>
    %20 = arith.maximumf %18, %19 : vector<256x128xf32>
    %21 = arith.truncf %20 : vector<256x128xf32> to vector<256x128xbf16>
    %c0_14 = arith.constant 0 : index
    %c0_15 = arith.constant 0 : index
    %c0_16 = arith.constant 0 : index
    %22 = vector.load %arg6[%c0_14, %c0_15, %c0_16] : memref<3x128x128xbf16, #tpu.memory_space<vmem>>, vector<1x128x128xbf16>
    %23 = vector.shape_cast %22 : vector<1x128x128xbf16> to vector<128x128xbf16>
    %cst_17 = arith.constant dense<0.000000e+00> : vector<256x128xf32>
    %24 = tpu.matmul %21, %23, %cst_17 {dimension_numbers = #tpu.dot_dimension_numbers<[1], [0], [0], [1], [0, 0, 1, 1], [], []>} : vector<256x128xbf16>, vector<128x128xbf16>, vector<256x128xf32> -> vector<256x128xf32>
    %c0_18 = arith.constant 0 : index
    %c0_19 = arith.constant 0 : index
    %c0_20 = arith.constant 0 : index
    %25 = vector.load %arg7[%c0_18, %c0_19, %c0_20] : memref<3x1x128xf32, #tpu.memory_space<vmem>>, vector<1x1x128xf32>
    %26 = vector.shape_cast %25 : vector<1x1x128xf32> to vector<1x128xf32>
    %27 = vector.broadcast %26 : vector<1x128xf32> to vector<256x128xf32>
    %28 = arith.addf %24, %27 : vector<256x128xf32>
    %29 = arith.addf %8, %28 : vector<256x128xf32>
    %30 = vector.extract_strided_slice %5 {offsets = [0, 256], sizes = [256, 128], strides = [1, 1]} : vector<256x512xf32> to vector<256x128xf32>
    %31 = arith.addf %29, %30 : vector<256x128xf32>
    %cst_21 = arith.constant 0.000000e+00 : f32
    %32 = vector.broadcast %cst_21 : f32 to vector<256x128xf32>
    %33 = arith.maximumf %31, %32 : vector<256x128xf32>
    %34 = arith.truncf %33 : vector<256x128xf32> to vector<256x128xbf16>
    %c1 = arith.constant 1 : index
    %c0_22 = arith.constant 0 : index
    %c0_23 = arith.constant 0 : index
    %35 = vector.load %arg4[%c1, %c0_22, %c0_23] : memref<3x128x128xbf16, #tpu.memory_space<vmem>>, vector<1x128x128xbf16>
    %36 = vector.shape_cast %35 : vector<1x128x128xbf16> to vector<128x128xbf16>
    %cst_24 = arith.constant dense<0.000000e+00> : vector<256x128xf32>
    %37 = tpu.matmul %34, %36, %cst_24 {dimension_numbers = #tpu.dot_dimension_numbers<[1], [0], [0], [1], [0, 0, 1, 1], [], []>} : vector<256x128xbf16>, vector<128x128xbf16>, vector<256x128xf32> -> vector<256x128xf32>
    %c1_25 = arith.constant 1 : index
    %c0_26 = arith.constant 0 : index
    %c0_27 = arith.constant 0 : index
    %38 = vector.load %arg5[%c1_25, %c0_26, %c0_27] : memref<3x1x128xf32, #tpu.memory_space<vmem>>, vector<1x1x128xf32>
    %39 = vector.shape_cast %38 : vector<1x1x128xf32> to vector<1x128xf32>
    %40 = vector.broadcast %39 : vector<1x128xf32> to vector<256x128xf32>
    %41 = arith.addf %37, %40 : vector<256x128xf32>
    %cst_28 = arith.constant 0.000000e+00 : f32
    %42 = vector.broadcast %cst_28 : f32 to vector<256x128xf32>
    %43 = arith.maximumf %41, %42 : vector<256x128xf32>
    %44 = arith.truncf %43 : vector<256x128xf32> to vector<256x128xbf16>
    %c1_29 = arith.constant 1 : index
    %c0_30 = arith.constant 0 : index
    %c0_31 = arith.constant 0 : index
    %45 = vector.load %arg6[%c1_29, %c0_30, %c0_31] : memref<3x128x128xbf16, #tpu.memory_space<vmem>>, vector<1x128x128xbf16>
    %46 = vector.shape_cast %45 : vector<1x128x128xbf16> to vector<128x128xbf16>
    %cst_32 = arith.constant dense<0.000000e+00> : vector<256x128xf32>
    %47 = tpu.matmul %44, %46, %cst_32 {dimension_numbers = #tpu.dot_dimension_numbers<[1], [0], [0], [1], [0, 0, 1, 1], [], []>} : vector<256x128xbf16>, vector<128x128xbf16>, vector<256x128xf32> -> vector<256x128xf32>
    %c1_33 = arith.constant 1 : index
    %c0_34 = arith.constant 0 : index
    %c0_35 = arith.constant 0 : index
    %48 = vector.load %arg7[%c1_33, %c0_34, %c0_35] : memref<3x1x128xf32, #tpu.memory_space<vmem>>, vector<1x1x128xf32>
    %49 = vector.shape_cast %48 : vector<1x1x128xf32> to vector<1x128xf32>
    %50 = vector.broadcast %49 : vector<1x128xf32> to vector<256x128xf32>
    %51 = arith.addf %47, %50 : vector<256x128xf32>
    %52 = arith.addf %31, %51 : vector<256x128xf32>
    %53 = vector.extract_strided_slice %5 {offsets = [0, 384], sizes = [256, 128], strides = [1, 1]} : vector<256x512xf32> to vector<256x128xf32>
    %54 = arith.addf %52, %53 : vector<256x128xf32>
    %cst_36 = arith.constant 0.000000e+00 : f32
    %55 = vector.broadcast %cst_36 : f32 to vector<256x128xf32>
    %56 = arith.maximumf %54, %55 : vector<256x128xf32>
    %57 = arith.truncf %56 : vector<256x128xf32> to vector<256x128xbf16>
    %c2 = arith.constant 2 : index
    %c0_37 = arith.constant 0 : index
    %c0_38 = arith.constant 0 : index
    %58 = vector.load %arg4[%c2, %c0_37, %c0_38] : memref<3x128x128xbf16, #tpu.memory_space<vmem>>, vector<1x128x128xbf16>
    %59 = vector.shape_cast %58 : vector<1x128x128xbf16> to vector<128x128xbf16>
    %cst_39 = arith.constant dense<0.000000e+00> : vector<256x128xf32>
    %60 = tpu.matmul %57, %59, %cst_39 {dimension_numbers = #tpu.dot_dimension_numbers<[1], [0], [0], [1], [0, 0, 1, 1], [], []>} : vector<256x128xbf16>, vector<128x128xbf16>, vector<256x128xf32> -> vector<256x128xf32>
    %c2_40 = arith.constant 2 : index
    %c0_41 = arith.constant 0 : index
    %c0_42 = arith.constant 0 : index
    %61 = vector.load %arg5[%c2_40, %c0_41, %c0_42] : memref<3x1x128xf32, #tpu.memory_space<vmem>>, vector<1x1x128xf32>
    %62 = vector.shape_cast %61 : vector<1x1x128xf32> to vector<1x128xf32>
    %63 = vector.broadcast %62 : vector<1x128xf32> to vector<256x128xf32>
    %64 = arith.addf %60, %63 : vector<256x128xf32>
    %cst_43 = arith.constant 0.000000e+00 : f32
    %65 = vector.broadcast %cst_43 : f32 to vector<256x128xf32>
    %66 = arith.maximumf %64, %65 : vector<256x128xf32>
    %67 = arith.truncf %66 : vector<256x128xf32> to vector<256x128xbf16>
    %c2_44 = arith.constant 2 : index
    %c0_45 = arith.constant 0 : index
    %c0_46 = arith.constant 0 : index
    %68 = vector.load %arg6[%c2_44, %c0_45, %c0_46] : memref<3x128x128xbf16, #tpu.memory_space<vmem>>, vector<1x128x128xbf16>
    %69 = vector.shape_cast %68 : vector<1x128x128xbf16> to vector<128x128xbf16>
    %cst_47 = arith.constant dense<0.000000e+00> : vector<256x128xf32>
    %70 = tpu.matmul %67, %69, %cst_47 {dimension_numbers = #tpu.dot_dimension_numbers<[1], [0], [0], [1], [0, 0, 1, 1], [], []>} : vector<256x128xbf16>, vector<128x128xbf16>, vector<256x128xf32> -> vector<256x128xf32>
    %c2_48 = arith.constant 2 : index
    %c0_49 = arith.constant 0 : index
    %c0_50 = arith.constant 0 : index
    %71 = vector.load %arg7[%c2_48, %c0_49, %c0_50] : memref<3x1x128xf32, #tpu.memory_space<vmem>>, vector<1x1x128xf32>
    %72 = vector.shape_cast %71 : vector<1x1x128xf32> to vector<1x128xf32>
    %73 = vector.broadcast %72 : vector<1x128xf32> to vector<256x128xf32>
    %74 = arith.addf %70, %73 : vector<256x128xf32>
    %75 = arith.addf %54, %74 : vector<256x128xf32>
    %cst_51 = arith.constant 0.000000e+00 : f32
    %76 = vector.broadcast %cst_51 : f32 to vector<256x128xf32>
    %77 = arith.maximumf %75, %76 : vector<256x128xf32>
    %78 = arith.truncf %77 : vector<256x128xf32> to vector<256x128xbf16>
    %c0_52 = arith.constant 0 : index
    %c0_53 = arith.constant 0 : index
    %79 = vector.load %arg8[%c0_52, %c0_53] : memref<128x128xbf16, #tpu.memory_space<vmem>>, vector<128x128xbf16>
    %cst_54 = arith.constant dense<0.000000e+00> : vector<256x128xf32>
    %80 = tpu.matmul %78, %79, %cst_54 {dimension_numbers = #tpu.dot_dimension_numbers<[1], [0], [0], [1], [0, 0, 1, 1], [], []>} : vector<256x128xbf16>, vector<128x128xbf16>, vector<256x128xf32> -> vector<256x128xf32>
    %c0_55 = arith.constant 0 : index
    %c0_56 = arith.constant 0 : index
    %81 = vector.load %arg9[%c0_55, %c0_56] : memref<1x128xf32, #tpu.memory_space<vmem>>, vector<1x128xf32>
    %82 = vector.broadcast %81 : vector<1x128xf32> to vector<256x128xf32>
    %83 = arith.addf %80, %82 : vector<256x128xf32>
    %c0_57 = arith.constant 0 : index
    %c0_58 = arith.constant 0 : index
    %84 = vector.load %arg10[%c0_57, %c0_58] : memref<256x128xf32, #tpu.memory_space<vmem>>, vector<256x128xf32>
    tpu.vector_store %arg10[%c0_57, %c0_58], %83 {strides = array<i32>} : memref<256x128xf32, #tpu.memory_space<vmem>>, vector<256x128xf32>,
    return
  }
  func.func @transform_0(%arg0: i32) -> (i32, i32) {
    %c0_i32 = arith.constant 0 : i32
    %c0_i32_0 = arith.constant 0 : i32
    return %arg0, %c0_i32 : i32, i32
  }
  func.func @transform_1(%arg0: i32) -> (i32, i32) {
    %c0_i32 = arith.constant 0 : i32
    %c0_i32_0 = arith.constant 0 : i32
    %c0_i32_1 = arith.constant 0 : i32
    return %c0_i32, %c0_i32_0 : i32, i32
  }
  func.func @transform_2(%arg0: i32) -> (i32, i32) {
    %c0_i32 = arith.constant 0 : i32
    %c0_i32_0 = arith.constant 0 : i32
    %c0_i32_1 = arith.constant 0 : i32
    return %c0_i32, %c0_i32_0 : i32, i32
  }
  func.func @transform_3(%arg0: i32) -> (i32, i32, i32) {
    %c0_i32 = arith.constant 0 : i32
    %c0_i32_0 = arith.constant 0 : i32
    %c0_i32_1 = arith.constant 0 : i32
    %c0_i32_2 = arith.constant 0 : i32
    return %c0_i32, %c0_i32_0, %c0_i32_1 : i32, i32, i32
  }
  func.func @transform_4(%arg0: i32) -> (i32, i32, i32) {
    %c0_i32 = arith.constant 0 : i32
    %c0_i32_0 = arith.constant 0 : i32
    %c0_i32_1 = arith.constant 0 : i32
    %c0_i32_2 = arith.constant 0 : i32
    return %c0_i32, %c0_i32_0, %c0_i32_1 : i32, i32, i32
  }
  func.func @transform_5(%arg0: i32) -> (i32, i32, i32) {
    %c0_i32 = arith.constant 0 : i32
    %c0_i32_0 = arith.constant 0 : i32
    %c0_i32_1 = arith.constant 0 : i32
    %c0_i32_2 = arith.constant 0 : i32
    return %c0_i32, %c0_i32_0, %c0_i32_1 : i32, i32, i32
  }
  func.func @transform_6(%arg0: i32) -> (i32, i32, i32) {
    %c0_i32 = arith.constant 0 : i32
    %c0_i32_0 = arith.constant 0 : i32
    %c0_i32_1 = arith.constant 0 : i32
    %c0_i32_2 = arith.constant 0 : i32
    return %c0_i32, %c0_i32_0, %c0_i32_1 : i32, i32, i32
  }
  func.func @transform_7(%arg0: i32) -> (i32, i32) {
    %c0_i32 = arith.constant 0 : i32
    %c0_i32_0 = arith.constant 0 : i32
    %c0_i32_1 = arith.constant 0 : i32
    return %c0_i32, %c0_i32_0 : i32, i32
  }
  func.func @transform_8(%arg0: i32) -> (i32, i32) {
    %c0_i32 = arith.constant 0 : i32
    %c0_i32_0 = arith.constant 0 : i32
    %c0_i32_1 = arith.constant 0 : i32
    return %c0_i32, %c0_i32_0 : i32, i32
  }
  func.func @transform_9(%arg0: i32) -> (i32, i32) {
    %c0_i32 = arith.constant 0 : i32
    %c0_i32_0 = arith.constant 0 : i32
    return %arg0, %c0_i32 : i32, i32
  }
}

</mosaic_0001>

<bundles_post_ra>
// kernel: tpu_custom_call.1
= control target key start
LH: loop header
LB: loop body
LE: loop exit
PB: predicated region body
PF: predicated region fallthrough
CT: control target
= control target key end

     0   :  { %14 = vsyncpa [#allocation3], 0  ;;  %s5708_s0 = inlined_call_operand.vmem [shape: bf16[512,35], index: 0, kind: input, shape index: {}]   ;;  %s5709_s1 = inlined_call_operand.vmem [shape: bf16[35,512], index: 1, kind: input, shape index: {}]   ;;  %s5710_s2 = inlined_call_operand.vmem [shape: f32[1,512], index: 2, kind: input, shape index: {}]   ;;  %s5711_s3 = inlined_call_operand.vmem [shape: bf16[3,128,128], index: 3, kind: input, shape index: {}]   ;;  %s5712_s4 = inlined_call_operand.vmem [shape: f32[3,1,128], index: 4, kind: input, shape index: {}]   ;;  %s5713_s5 = inlined_call_operand.hbm [shape: bf16[3,128,128], index: 5, kind: input, shape index: {}]   ;;  %s5714_s6 = inlined_call_operand.vmem [shape: f32[3,1,128], index: 6, kind: input, shape index: {}]   ;;  %s5715_s7 = inlined_call_operand.vmem [shape: bf16[128,128], index: 7, kind: input, shape index: {}]   ;;  %s5716_s8 = inlined_call_operand.vmem [shape: f32[1,128], index: 8, kind: input, shape index: {}]   ;;  %s5717_s9 = inlined_call_operand.hbm [shape: f32[512,128], index: 9, kind: output, shape index: {}]  }
   0x1   :  { %15 = vsyncpa [#allocation4], 0 }
   0x2   :  { %17 = vsyncpa [#allocation4 + $0x1], 0  ;;  %s4254_s30 = smov 0   ;;  %s4256_s10 = smov 0  }
   0x3   :  { %s4258_s11 = smov 0   ;;  %s4260_s12 = smov 0  }
   0x4 LB: > { %s4275_s13 = sadd.s32 4294967295, %s4194_s12   ;;  %s3275_s14 = sadd.s32 4294967294, %s4194_s12   ;;  %s4194_s12 = sphi %s4260_s12, %s5831_s12   ;;  %s4190_s11 = sphi %s4258_s11, %s5830_s11   ;;  %s4186_s10 = sphi %s4256_s10, %s5829_s10   ;;  %s4182_s30 = sphi %s4254_s30, %s5828_s30  }
   0x5   : > { %s4279_s15 = sadd.s32 1, %s4194_s12   ;;  %s224_s16 = sadd.s32 1, %s4190_s11 }
   0x6   : > { %s221_s17 = ssub.s32 %s4194_s12, %s4279_s15  ;;  %p234_p0 = scmp.ne.s32.totalorder %s4190_s11, %s4186_s10 }
   0x7   : > { %p222_p1 = scmp.eq.s32.totalorder %s221_s17, 0  ;;  %p235_p2 = scmp.eq.s32.totalorder %s4275_s13, 1 }
   0x8   : > { %p240_p3 = scmp.ne.s32.totalorder %s4186_s10, %s4182_s30  ;;  %p241_p4 = scmp.eq.s32.totalorder %s3275_s14, 1 }
   0x9   : > { %s4290_s18 = scalar_select %p222_p1, %s4190_s11, %s224_s16  }
   0xa   : > { %p4292_p5 = por %p235_p2, %p234_p0  ;;  %p4296_p6 = por %p241_p4, %p240_p3 }
   0xb   : > { %p3276_p7 = scmp.ge.s32.totalorder %s4194_s12, 1  ;;  %p248_p8 = scmp.lt.s32.totalorder %s4194_s12, 3 }
   0xc   : > { %s5729_s20 = scalar_select %p4296_p6, 1, 0 }
   0xd   : > { %p3973_p9 = scmp.eq.s32.totalorder %s4275_s13, 0  ;;  %p4303_p10 = pnand %p3276_p7, %p248_p8 }
   0xe   : > { %s4196_s22 = smov [#allocation2]  }
   0xf   : > { %s272_s23 = sshll.u32 %s4196_s22, 4  ;;  %p3965_p11 = pneg %p4303_p10  ;;  %s273_s23 = int_to_ptr.vmem [resolvable:$true] %s272_s23 }
  0x10   : > { %s4115_s24 = scalar_lea.vmem %s273_s23, 3072  ;;  %p4123_p3 = scmp.lt.s32.totalorder %s273_s23, %s273_s23 }
  0x11   : > { %p3966_p12 = pnand %p3973_p9, %p3965_p11  ;;  %p4116_p0 = scmp.ne.s32.totalorder %s273_s23, %s4115_s24 }
  0x12   : > { %p4124_p4 = scmp.lt.s32.totalorder %s4115_s24, %s4115_s24 }
  0x13   : > { %p4106_p13 = pneg %p3966_p12 }
  0x14   : > { %p4125_p6 = por %p4124_p4, %p4123_p3 }
  0x15   : > { %p4118_p1 = pnand %p4116_p0, %p4106_p13 }
  0x17   : > { %p4119_p2 = pneg %p4118_p1 }
  0x19   : > { %p4126_p7 = pnand %p4125_p6, %p4119_p2 }
  0x1b   : > { %4129 = shalt.err (!%p4126_p7)
}
  0x1c   : > { %s4197_s25 = smov 64   ;;  %s4198_s26 = smov 4  }
  0x1d   : > { %3968 = dma.hbm_to_vmem [thread:$0]  (!%p3966_p12), %s5713_s5, 3072, %s273_s23, [#allocation3], %s4197_s25, %s4197_s25, %s4198_s26  }
  0x1e   : > { %306 = sbr.rel (%p4303_p10) target bundleno = 1826 (0x722), region = 56 }
  0x23   : > { %4173 = dma.done.wait (%p3973_p9), [#allocation3], 3072  }
  0x24   : > { %4175 = vsyncadd (%p3973_p9), [#allocation3], 4294964224  ;;  %vm593_vm0 = vcmask 1040384   ;;  %v4199_v0 = vmov 0   ;;  %s3282_s29 = sshll.u32 %s4275_s13, 5  ;;  %vm594_vm1 = vcmask 1041408   ;;  %v394_v46 = vlaneseq }
  0x25   : > { %641 = vmatprep.mubr.bf16.mxu0 %v4199_v0  ;;  %761 = vmatprep.mubr.bf16.mxu1 %v4199_v0  ;;  %p343_p6 = scmp.lt.s32.totalorder %s3282_s29, 63  ;;  %v4200_v1 = vmov 65535   ;;  %v390_v3 = vld [vmem:[%s5709_s1 + $0x40] sm:$0x33]  ;;  %vm544_vm2 = vcmask 285696   ;;  %v4039_v16 = vld [vmem:[%s5711_s3 + $0x38] sm:$0xff]  }
  0x26   : > { %v595_v2 = vsel %vm593_vm0, 4294967295, %v4200_v1  ;;  %v3309_v5 = vcombine.high %v390_v3, %v390_v3  ;;  %v3308_v6 = vcombine.low %v390_v3, %v390_v3  ;;  %v4017_v9 = vld [vmem:[%s5709_s1 + $0x24] ss:$16 sps:$4 sm:$0xff]   ;;  %v4019_v10 = vld [vmem:[%s5709_s1 + $0x20] ss:$16 sps:$4 sm:$0xff]   ;;  %v4041_v19 = vld [vmem:[%s5711_s3 + $0x28] sm:$0xff]  }
  0x27   : > { %s5833_s29 = smov (!%p343_p6, %s3282_s29), 63  ;;  %v4326_v4 = vsel %vm594_vm1, %v595_v2, 0  ;;  %v4020_v11 = vld [vmem:[%s5709_s1 + $0x4] ss:$16 sps:$4 sm:$0xff]   ;;  %v4022_v12 = vld [vmem:[%s5709_s1] ss:$16 sps:$4 sm:$0xff]  }
  0x28   : > { %s3283_s14 = sshll.u32 %s5833_s29, 2  ;;  %v601_v7 = vand.u32 %v3309_v5, %v4326_v4  ;;  %v598_v8 = vand.u32 %v3308_v6, %v4326_v4  ;;  %v4040_v17 = vld [vmem:[%s5711_s3 + $0x30] sm:$0xff]   ;;  %v4042_v29 = vld [vmem:[%s5711_s3 + $0x20] sm:$0xff]   ;;  %v4043_v31 = vld [vmem:[%s5711_s3 + $0x18] sm:$0xff]   ;;  %v4492_v49 = vshrl.u32 %v394_v46, 7  ;;  %s339_s28 = sand.u32 1, %s4186_s10  }
  0x29   : > { %s4331_s23 = scalar_lea.vmem %s5708_s0, %s3283_s14  ;;  %v4044_v32 = vld [vmem:[%s5711_s3 + $0x10] sm:$0xff]   ;;  %v4045_v34 = vld [vmem:[%s5711_s3 + $0x8] sm:$0xff]   ;;  %v4046_v35 = vld [vmem:[%s5711_s3] sm:$0xff]   ;;  %s3281_s29 = sshll.u32 %s339_s28, 8 }
  0x2a   : > { %619 = vmatprep.subr.bf16.mxu0 %v601_v7  ;;  %3953 = vmatprep.subr.bf16.mxu1 %v601_v7  ;;  %v4348_v13 = vld [vmem:[%s4331_s23] sm:$0xff]   ;;  %v4360_v15 = vld [vmem:[%s4331_s23 + $0x8] sm:$0xff]   ;;  %v4381_v20 = vld [vmem:[%s4331_s23 + $0x10] sm:$0xff]   ;;  %5731 = vst [vmem:[#allocation8_spill] sm:$0xff] %v4492_v49  ;;  %v400_v50 = vsub.s32 1, %v4492_v49  ;;  %v396_v52 = vsub.s32 0, %v4492_v49 }
  0x2b   : > { %620 = vmatpush1.bf16.msra.mxu0 %v598_v8  ;;  %3956 = vmatpush1.bf16.msra.mxu1 %v598_v8  ;;  %v4351_v14 = vld [vmem:[%s4331_s23 + $0x60] sm:$0xff]   ;;  %v4369_v18 = vld [vmem:[%s4331_s23 + $0x68] sm:$0xff]   ;;  %v4384_v21 = vld [vmem:[%s4331_s23 + $0x70] sm:$0xff]   ;;  %s5592_s16 = scalar_lea.vmem [#allocation5], %s3281_s29  ;;  %s3448_s17 = sshll.u32 %s4275_s13, 12 }
  0x2c   : > { %621 = vmatprep.subr.bf16.mxu0 %v4017_v9  ;;  %3954 = vmatprep.subr.bf16.mxu1 %v4017_v9  ;;  %v4393_v22 = vld [vmem:[%s4331_s23 + $0x18] sm:$0xff]   ;;  %v4405_v24 = vld [vmem:[%s4331_s23 + $0x20] sm:$0xff]   ;;  %v4411_v25 = vld [vmem:[%s4331_s23 + $0x28] sm:$0xff]   ;;  %s3201_s21 = sshll.u32 %s5592_s16, 4  ;;  %s5659_s25 = scalar_lea.hbm %s5717_s9, %s3448_s17  ;;  %s5661_s21 = int_to_ptr.vmem [resolvable:$true] %s3201_s21 }
  0x2d   : > { %v4396_v23 = vld [vmem:[%s4331_s23 + $0x78] sm:$0xff]   ;;  %v4417_v26 = vld [vmem:[%s4331_s23 + $0x30] sm:$0xff]   ;;  %v4429_v28 = vld [vmem:[%s4331_s23 + $0x40] sm:$0xff]   ;;  %s5668_s13 = scalar_lea.sflag [#allocation4], %s339_s28  ;;  %s4130_s26 = scalar_lea.vmem %s5661_s21, 4096 }
  0x2e   : > { %v4423_v27 = vld [vmem:[%s4331_s23 + $0x38] sm:$0xff]   ;;  %v4438_v30 = vld [vmem:[%s4331_s23 + $0x48] sm:$0xff]   ;;  %v4450_v33 = vld [vmem:[%s4331_s23 + $0x50] sm:$0xff]   ;;  %p4131_p8 = scmp.ne.s32.totalorder %s5661_s21, %s4130_s26  ;;  %s4201_s27 = smov [#allocation5]  }
  0x2f   : > { %622 = vmatpush1.bf16.msra.mxu0 %v4019_v10  ;;  %3957 = vmatpush1.bf16.msra.mxu1 %v4019_v10  ;;  %v4462_v36 = vld [vmem:[%s4331_s23 + $0x58] sm:$0xff]   ;;  %v391_v37 = vld [vmem:[%s5709_s1 + $0x48] sm:$0x33]  ;;  %v4056_v48 = vld [vmem:[#allocation2 + $0x30] sm:$0xff]   ;;  %s4134_s29 = sshll.u32 %s4201_s27, 4  ;;  %s4135_s29 = int_to_ptr.vmem [resolvable:$false] %s4134_s29 }
  0x30   : > { %623 = vmatprep.subr.bf16.mxu0 %v4020_v11  ;;  %3955 = vmatprep.subr.bf16.mxu1 %v4020_v11  ;;  %v3311_v38 = vcombine.high %v391_v37, %v391_v37  ;;  %v3310_v39 = vcombine.low %v391_v37, %v391_v37  ;;  %v4051_v42 = vld [vmem:[%s5709_s1 + $0x2c] ss:$16 sps:$4 sm:$0xff]   ;;  %v4049_v43 = vld [vmem:[%s5709_s1 + $0x28] ss:$16 sps:$4 sm:$0xff]   ;;  %v4501_v53 = vld [vmem:[%s5710_s2] sm:$0xf]  ;;  %p4132_p9 = pnand %p4131_p8, %p4292_p5  ;;  %p4137_p11 = scmp.lt.s32.totalorder %s5661_s21, %s4135_s29 }
  0x31   : > { %v4054_v44 = vld [vmem:[%s5709_s1 + $0xc] ss:$16 sps:$4 sm:$0xff]   ;;  %v4052_v45 = vld [vmem:[%s5709_s1 + $0x8] ss:$16 sps:$4 sm:$0xff]   ;;  %v4505_v54 = vrot.slane %v4501_v53, %v400_v50  ;;  %v4058_v55 = vld [vmem:[#allocation2 + $0x20] sm:$0xff]   ;;  %v4508_v57 = vrot.slane %v4501_v53, %v396_v52  ;;  %s4136_s23 = scalar_lea.vmem %s4135_s29, 8192 }
  0x32   : > { %v607_v40 = vand.u32 %v3311_v38, %v4326_v4  ;;  %v604_v41 = vand.u32 %v3310_v39, %v4326_v4  ;;  %v4055_v47 = vld [vmem:[#allocation2 + $0x38] sm:$0xff]   ;;  %v4057_v51 = vld [vmem:[#allocation2 + $0x28] sm:$0xff]   ;;  %p4133_p10 = pneg %p4132_p9  ;;  %p4138_p12 = scmp.lt.s32.totalorder %s4136_s23, %s4130_s26 }
  0x33   : > { %624 = vmatpush1.bf16.msra.mxu0 %v4022_v12  ;;  %3958 = vmatpush1.bf16.msra.mxu1 %v4022_v12  ;;  %v4059_v60 = vld [vmem:[#allocation2 + $0x18] sm:$0xff]  }
  0x34   : > { %3617 = vmatprep.subr.bf16.mxu0 %v4039_v16  ;;  %812 = vmatprep.subr.bf16.mxu1 %v607_v40  ;;  %p4139_p13 = por %p4138_p12, %p4137_p11 }
  0x36   : > { %3312 = vmatmul.mubr.msk.bf16.vlgmr.msra.gmra.mxu0 %vm544_vm2, %v4348_v13  ;;  %3324 = vmatmul.mubr.msk.bf16.vlgmr.msra.gmra.mxu1 %vm544_vm2, %v4351_v14  ;;  %p4140_p0 = pnand %p4139_p13, %p4133_p10 }
  0x37   : > { %651 = vmatprep.mubr.bf16.mxu0 %v4199_v0  ;;  %771 = vmatprep.mubr.bf16.mxu1 %v4199_v0 }
  0x38   : > { %3618 = vmatpush3.bf16.msra.mxu0 %v4039_v16  ;;  %813 = vmatpush1.bf16.msra.mxu1 %v604_v41 }
  0x39   : > { %3619 = vmatprep.subr.bf16.mxu0 %v4040_v17  ;;  %814 = vmatprep.subr.bf16.mxu1 %v4051_v42 }
  0x3c   : > { %3620 = vmatpush3.bf16.msra.mxu0 %v4040_v17  ;;  %815 = vmatpush1.bf16.msra.mxu1 %v4049_v43 }
  0x3d   : > { %3621 = vmatprep.subr.bf16.mxu0 %v4041_v19  ;;  %816 = vmatprep.subr.bf16.mxu1 %v4054_v44 }
  0x3e   : > { %3313 = vmatmul.mubr.msk.bf16.gmra.mxu0 %vm544_vm2, %v4360_v15  ;;  %3325 = vmatmul.mubr.msk.bf16.gmra.mxu1 %vm544_vm2, %v4369_v18 }
  0x3f   : > { %661 = vmatprep.mubr.bf16.mxu0 %v4199_v0  ;;  %781 = vmatprep.mubr.bf16.mxu1 %v4199_v0 }
  0x40   : > { %3622 = vmatpush3.bf16.msra.mxu0 %v4041_v19  ;;  %817 = vmatpush1.bf16.msra.mxu1 %v4052_v45 }
  0x41   : > { %3623 = vmatprep.subr.bf16.mxu0 %v4042_v29  ;;  %3665 = vmatprep.subr.bf16.mxu1 %v4055_v47 }
  0x44   : > { %3624 = vmatpush3.bf16.msra.mxu0 %v4042_v29 }
  0x45   : > { %3625 = vmatprep.subr.bf16.mxu0 %v4043_v31 }
  0x46   : > { %3314 = vmatmul.mubr.msk.bf16.gmra.mxu0 %vm544_vm2, %v4381_v20  ;;  %3326 = vmatmul.mubr.msk.bf16.gmra.mxu1 %vm544_vm2, %v4384_v21 }
  0x47   : > { %671 = vmatprep.mubr.bf16.mxu0 %v4199_v0  ;;  %791 = vmatprep.mubr.bf16.mxu1 %v4199_v0 }
  0x48   : > { %3626 = vmatpush3.bf16.msra.mxu0 %v4043_v31 }
  0x49   : > { %3627 = vmatprep.subr.bf16.mxu0 %v4044_v32 }
  0x4c   : > { %3628 = vmatpush3.bf16.msra.mxu0 %v4044_v32 }
  0x4d   : > { %3629 = vmatprep.subr.bf16.mxu0 %v4045_v34 }
  0x4e   : > { %3315 = vmatmul.mubr.msk.bf16.gmra.mxu0 %vm544_vm2, %v4393_v22  ;;  %3327 = vmatmul.mubr.msk.bf16.gmra.mxu1 %vm544_vm2, %v4396_v23 }
  0x4f   : > { %681 = vmatprep.mubr.bf16.mxu0 %v4199_v0  ;;  %834 = vmatprep.mubr.bf16.mxu1 %v4199_v0 }
  0x50   : > { %3630 = vmatpush3.bf16.msra.mxu0 %v4045_v34 }
  0x51   : > { %3631 = vmatprep.subr.bf16.mxu0 %v4046_v35 }
  0x54   : > { %3632 = vmatpush3.bf16.msra.mxu0 %v4046_v35 }
  0x56   : > { %3316 = vmatmul.mubr.msk.bf16.gmra.mxu0 %vm544_vm2, %v4405_v24  ;;  %3328 = vmatmul.mubr.msk.bf16.vlgmr.msra.gmra.mxu1 %vm544_vm2, %v4348_v13 }
  0x57   : > { %691 = vmatprep.mubr.bf16.mxu0 %v4199_v0  ;;  %844 = vmatprep.mubr.bf16.mxu1 %v4199_v0 }
  0x58   : > { %3666 = vmatpush3.bf16.msra.mxu1 %v4055_v47 }
  0x59   : > { %3667 = vmatprep.subr.bf16.mxu1 %v4056_v48 }
  0x5c   : > { %3668 = vmatpush3.bf16.msra.mxu1 %v4056_v48 }
  0x5d   : > { %3669 = vmatprep.subr.bf16.mxu1 %v4057_v51 }
  0x5e   : > { %3317 = vmatmul.mubr.msk.bf16.gmra.mxu0 %vm544_vm2, %v4411_v25  ;;  %3329 = vmatmul.mubr.msk.bf16.gmra.mxu1 %vm544_vm2, %v4360_v15 }
  0x5f   : > { %701 = vmatprep.mubr.bf16.mxu0 %v4199_v0  ;;  %854 = vmatprep.mubr.bf16.mxu1 %v4199_v0 }
  0x60   : > { %3670 = vmatpush3.bf16.msra.mxu1 %v4057_v51 }
  0x61   : > { %3671 = vmatprep.subr.bf16.mxu1 %v4058_v55 }
  0x64   : > { %3672 = vmatpush3.bf16.msra.mxu1 %v4058_v55 }
  0x65   : > { %3673 = vmatprep.subr.bf16.mxu1 %v4059_v60 }
  0x66   : > { %3318 = vmatmul.mubr.msk.bf16.gmra.mxu0 %vm544_vm2, %v4417_v26  ;;  %3330 = vmatmul.mubr.msk.bf16.gmra.mxu1 %vm544_vm2, %v4381_v20 }
  0x67   : > { %711 = vmatprep.mubr.bf16.mxu0 %v4199_v0  ;;  %864 = vmatprep.mubr.bf16.mxu1 %v4199_v0 }
  0x68   : > { %3674 = vmatpush3.bf16.msra.mxu1 %v4059_v60 }
  0x6e   : > { %3319 = vmatmul.mubr.msk.bf16.gmra.mxu0 %vm544_vm2, %v4423_v27  ;;  %3331 = vmatmul.mubr.msk.bf16.gmra.mxu1 %vm544_vm2, %v4393_v22 }
  0x6f   : > { %721 = vmatprep.mubr.bf16.mxu0 %v4199_v0  ;;  %874 = vmatprep.mubr.bf16.mxu1 %v4199_v0 }
  0x76   : > { %3320 = vmatmul.mubr.msk.bf16.gmra.mxu0 %vm544_vm2, %v4429_v28  ;;  %3332 = vmatmul.mubr.msk.bf16.gmra.mxu1 %vm544_vm2, %v4405_v24 }
  0x77   : > { %731 = vmatprep.mubr.bf16.mxu0 %v4199_v0  ;;  %884 = vmatprep.mubr.bf16.mxu1 %v4199_v0 }
  0x7e   : > { %3321 = vmatmul.mubr.msk.bf16.gmra.mxu0 %vm544_vm2, %v4438_v30  ;;  %3333 = vmatmul.mubr.msk.bf16.gmra.mxu1 %vm544_vm2, %v4411_v25 }
  0x7f   : > { %741 = vmatprep.mubr.bf16.mxu0 %v4199_v0  ;;  %894 = vmatprep.mubr.bf16.mxu1 %v4199_v0 }
  0x86   : > { %3322 = vmatmul.mubr.msk.bf16.gmra.mxu0 %vm544_vm2, %v4450_v33  ;;  %3334 = vmatmul.mubr.msk.bf16.gmra.mxu1 %vm544_vm2, %v4417_v26 }
  0x87   : > { %751 = vmatprep.mubr.bf16.mxu0 %v4199_v0  ;;  %904 = vmatprep.mubr.bf16.mxu1 %v4199_v0 }
  0x8e   : > { %3323 = vmatmul.mubr.msk.bf16.gmra.mxu0 %vm544_vm2, %v4462_v36  ;;  %3335 = vmatmul.mubr.msk.bf16.gmra.mxu1 %vm544_vm2, %v4423_v27 }
  0x8f   : > { %914 = vmatprep.mubr.bf16.mxu1 %v4199_v0 }
  0x96   : > { %3336 = vmatmul.mubr.msk.bf16.gmra.mxu1 %vm544_vm2, %v4429_v28 }
  0x97   : > { %924 = vmatprep.mubr.bf16.mxu1 %v4199_v0 }
  0x9e   : > { %3337 = vmatmul.mubr.msk.bf16.gmra.mxu1 %vm544_vm2, %v4438_v30 }
  0x9f   : > { %934 = vmatprep.mubr.bf16.mxu1 %v4199_v0 }
  0xa6   : > { %3338 = vmatmul.mubr.msk.bf16.gmra.mxu1 %vm544_vm2, %v4450_v33 }
  0xa7   : > { %944 = vmatprep.mubr.bf16.mxu1 %v4199_v0 }
  0xae   : > { %3339 = vmatmul.mubr.msk.bf16.gmra.mxu1 %vm544_vm2, %v4462_v36 }
  0xaf   : > { %954 = vmatprep.mubr.bf16.mxu1 %v4199_v0 }
  0xb6   : > { %3340 = vmatmul.mubr.msk.bf16.gmra.mxu1 %vm544_vm2, %v4351_v14 }
  0xb7   : > { %964 = vmatprep.mubr.bf16.mxu1 %v4199_v0 }
  0xbe   : > { %3341 = vmatmul.mubr.msk.bf16.gmra.mxu1 %vm544_vm2, %v4369_v18 }
  0xbf   : > { %974 = vmatprep.mubr.bf16.mxu1 %v4199_v0 }
  0xc6   : > { %3342 = vmatmul.mubr.msk.bf16.gmra.mxu1 %vm544_vm2, %v4384_v21 }
  0xc7   : > { %984 = vmatprep.mubr.bf16.mxu1 %v4199_v0 }
  0xce   : > { %3343 = vmatmul.mubr.msk.bf16.gmra.mxu1 %vm544_vm2, %v4396_v23 }
  0xf6   : > { %v643_v56 = vpop.f32.mrf.mxu0 }
  0xf7   : > { %v644_v62 = vadd.f32 %v643_v56, %v4508_v57 }
  0xf8   : > { %v645_v58 = vpop.f32.mrf.mxu0 }
  0xf9   : > { %v646_v59 = vadd.f32 %v645_v58, %v4505_v54 }
  0xfa   : > { %v647_v61 = vpop.f32.mrf.mxu0 }
  0xfb   : > { %v4515_v1 = vadd.f32 %v646_v59, %v644_v62  ;;  %v648_v2 = vadd.f32 %v647_v61, %v4508_v57 }
  0xfc   : > { %v649_v63 = vpop.f32.mrf.mxu0 }
  0xfd   : > { %v650_v3 = vadd.f32 %v649_v63, %v4505_v54  ;;  %v1027_v7 = vmax.f32 %v4515_v1, 0.0 }
  0xfe   : > { %v653_v4 = vpop.f32.mrf.mxu0 }
  0xff   : > { %v4519_v5 = vadd.f32 %v650_v3, %v648_v2  ;;  %v654_v11 = vadd.f32 %v653_v4, %v4508_v57 }
 0x100   : > { %v655_v6 = vpop.f32.mrf.mxu0 }
 0x101   : > { %v1028_v8 = vmax.f32 %v4519_v5, 0.0  ;;  %v656_v9 = vadd.f32 %v655_v6, %v4505_v54 }
 0x102   : > { %v657_v10 = vpop.f32.mrf.mxu0 }
 0x103   : > { %v1059_v12 = vpack.c.bf16 %v1028_v8, %v1027_v7  ;;  %v4528_v15 = vadd.f32 %v656_v9, %v654_v11  ;;  %v658_v16 = vadd.f32 %v657_v10, %v4508_v57  ;;  %v4573_v10 = vpop.f32.mrf.mxu1 }
 0x104   : > { %v659_v13 = vpop.f32.mrf.mxu0 }
 0x105   : > { %v660_v17 = vadd.f32 %v659_v13, %v4505_v54  ;;  %3633 = vmatprep.mubr.bf16.mxu0 %v1059_v12  ;;  %v1029_v24 = vmax.f32 %v4528_v15, 0.0 }
 0x106   : > { %v663_v19 = vpop.f32.mrf.mxu0 }
 0x107   : > { %v4532_v20 = vadd.f32 %v660_v17, %v658_v16  ;;  %v664_v34 = vadd.f32 %v663_v19, %v4508_v57 }
 0x108   : > { %v665_v22 = vpop.f32.mrf.mxu0 }
 0x109   : > { %v1030_v29 = vmax.f32 %v4532_v20, 0.0  ;;  %v666_v25 = vadd.f32 %v665_v22, %v4505_v54  ;;  %v4581_v22 = vpop.f32.mrf.mxu1 }
 0x10a   : > { %v667_v31 = vpop.f32.mrf.mxu0 }
 0x10b   : > { %v1060_v32 = vpack.c.bf16 %v1030_v29, %v1029_v24  ;;  %v4541_v37 = vadd.f32 %v666_v25, %v664_v34  ;;  %v668_v38 = vadd.f32 %v667_v31, %v4508_v57 }
 0x10c   : > { %v669_v35 = vpop.f32.mrf.mxu0 }
 0x10d   : > { %v670_v39 = vadd.f32 %v669_v35, %v4505_v54  ;;  %3634 = vmatmul.mubr.bf16.vlgmr.msra.gmra.mxu0 %v1060_v32  ;;  %v1031_v43 = vmax.f32 %v4541_v37, 0.0  ;;  %v4590_v35 = vpop.f32.mrf.mxu1 }
 0x10e   : > { %v673_v40 = vpop.f32.mrf.mxu0  ;;  %v768_v21 = vadd.f32 %v4590_v35, %v4508_v57 }
 0x10f   : > { %v4545_v41 = vadd.f32 %v670_v39, %v668_v38  ;;  %v674_v46 = vadd.f32 %v673_v40, %v4508_v57 }
 0x110   : > { %v675_v42 = vpop.f32.mrf.mxu0 }
 0x111   : > { %v1032_v44 = vmax.f32 %v4545_v41, 0.0  ;;  %v676_v26 = vadd.f32 %v675_v42, %v4505_v54 }
 0x112   : > { %v677_v45 = vpop.f32.mrf.mxu0 }
 0x113   : > { %v1061_v47 = vpack.c.bf16 %v1032_v44, %v1031_v43  ;;  %v4554_v50 = vadd.f32 %v676_v26, %v674_v46  ;;  %v678_v51 = vadd.f32 %v677_v45, %v4508_v57  ;;  %v4598_v26 = vpop.f32.mrf.mxu1 }
 0x114   : > { %v679_v48 = vpop.f32.mrf.mxu0  ;;  %v770_v0 = vadd.f32 %v4598_v26, %v4505_v54 }
 0x115   : > { %v680_v52 = vadd.f32 %v679_v48, %v4505_v54  ;;  %3637 = vmatprep.mubr.bf16.mxu0 %v1061_v47  ;;  %v1033_v59 = vmax.f32 %v4554_v50, 0.0 }
 0x116   : > { %v683_v55 = vpop.f32.mrf.mxu0  ;;  %v4684_v35 = vadd.f32 %v770_v0, %v768_v21 }
 0x117   : > { %v4558_v56 = vadd.f32 %v680_v52, %v678_v51  ;;  %v684_v62 = vadd.f32 %v683_v55, %v4508_v57  ;;  %v4607_v55 = vpop.f32.mrf.mxu1 }
 0x118   : > { %v685_v58 = vpop.f32.mrf.mxu0  ;;  %5734 = vst [vmem:[#allocation11_spill] sm:$0xff] %v4684_v35 }
 0x119   : > { %v1034_v60 = vmax.f32 %v4558_v56, 0.0  ;;  %v686_v27 = vadd.f32 %v685_v58, %v4505_v54 }
 0x11a   : > { %v687_v61 = vpop.f32.mrf.mxu0 }
 0x11b   : > { %v1062_v63 = vpack.c.bf16 %v1034_v60, %v1033_v59  ;;  %v4567_v3 = vadd.f32 %v686_v27, %v684_v62  ;;  %v688_v4 = vadd.f32 %v687_v61, %v4508_v57 }
 0x11c   : > { %v689_v2 = vpop.f32.mrf.mxu0 }
 0x11d   : > { %v690_v6 = vadd.f32 %v689_v2, %v4505_v54  ;;  %3638 = vmatmul.mubr.bf16.gmra.mxu0 %v1062_v63  ;;  %v1035_v11 = vmax.f32 %v4567_v3, 0.0  ;;  %v4615_v63 = vpop.f32.mrf.mxu1 }
 0x11e   : > { %v693_v7 = vpop.f32.mrf.mxu0 }
 0x11f   : > { %v4571_v8 = vadd.f32 %v690_v6, %v688_v4  ;;  %v694_v16 = vadd.f32 %v693_v7, %v4508_v57 }
 0x120   : > { %v695_v9 = vpop.f32.mrf.mxu0 }
 0x121   : > { %v1036_v28 = vmax.f32 %v4571_v8, 0.0  ;;  %v696_v12 = vadd.f32 %v695_v9, %v4505_v54 }
 0x122   : > { %v697_v13 = vpop.f32.mrf.mxu0 }
 0x123   : > { %v1063_v17 = vpack.c.bf16 %v1036_v28, %v1035_v11  ;;  %v4584_v24 = vadd.f32 %v696_v12, %v694_v16  ;;  %v698_v29 = vadd.f32 %v697_v13, %v4508_v57  ;;  %v4624_v28 = vpop.f32.mrf.mxu1 }
 0x124   : > { %v699_v19 = vpop.f32.mrf.mxu0  ;;  %v778_v23 = vadd.f32 %v4624_v28, %v4508_v57 }
 0x125   : > { %v700_v25 = vadd.f32 %v699_v19, %v4505_v54  ;;  %3641 = vmatprep.mubr.bf16.mxu0 %v1063_v17  ;;  %v1037_v30 = vmax.f32 %v4584_v24, 0.0 }
 0x126   : > { %v703_v31 = vpop.f32.mrf.mxu0 }
 0x127   : > { %v4588_v32 = vadd.f32 %v700_v25, %v698_v29  ;;  %v704_v42 = vadd.f32 %v703_v31, %v4508_v57  ;;  %v4632_v25 = vpop.f32.mrf.mxu1 }
 0x128   : > { %v705_v34 = vpop.f32.mrf.mxu0 }
 0x129   : > { %v1038_v38 = vmax.f32 %v4588_v32, 0.0  ;;  %v706_v39 = vadd.f32 %v705_v34, %v4505_v54 }
 0x12a   : > { %v707_v40 = vpop.f32.mrf.mxu0 }
 0x12b   : > { %v1064_v43 = vpack.c.bf16 %v1038_v38, %v1037_v30  ;;  %v4601_v45 = vadd.f32 %v706_v39, %v704_v42  ;;  %v708_v46 = vadd.f32 %v707_v40, %v4508_v57  ;;  %v4641_v42 = vpop.f32.mrf.mxu1 }
 0x12c   : > { %v709_v44 = vpop.f32.mrf.mxu0 }
 0x12d   : > { %v710_v47 = vadd.f32 %v709_v44, %v4505_v54  ;;  %3642 = vmatmul.mubr.bf16.gmra.mxu0 %v1064_v43  ;;  %v1039_v33 = vmax.f32 %v4601_v45, 0.0 }
 0x12e   : > { %v713_v48 = vpop.f32.mrf.mxu0 }
 0x12f   : > { %v4605_v51 = vadd.f32 %v710_v47, %v708_v46  ;;  %v714_v27 = vadd.f32 %v713_v48, %v4508_v57 }
 0x130   : > { %v715_v52 = vpop.f32.mrf.mxu0 }
 0x131   : > { %v1040_v58 = vmax.f32 %v4605_v51, 0.0  ;;  %v716_v59 = vadd.f32 %v715_v52, %v4505_v54 }
 0x132   : > { %v717_v60 = vpop.f32.mrf.mxu0 }
 0x133   : > { %v1065_v61 = vpack.c.bf16 %v1040_v58, %v1039_v33  ;;  %v4618_v2 = vadd.f32 %v716_v59, %v714_v27  ;;  %v718_v4 = vadd.f32 %v717_v60, %v4508_v57  ;;  %v4649_v33 = vpop.f32.mrf.mxu1 }
 0x134   : > { %v719_v62 = vpop.f32.mrf.mxu0 }
 0x135   : > { %v720_v6 = vadd.f32 %v719_v62, %v4505_v54  ;;  %3645 = vmatprep.mubr.bf16.mxu0 %v1065_v61  ;;  %v1041_v36 = vmax.f32 %v4618_v2, 0.0 }
 0x136   : > { %v723_v7 = vpop.f32.mrf.mxu0 }
 0x137   : > { %v4622_v9 = vadd.f32 %v720_v6, %v718_v4  ;;  %v724_v17 = vadd.f32 %v723_v7, %v4508_v57  ;;  %v787_v4 = vpop.f32.mrf.mxu1 }
 0x138   : > { %v725_v11 = vpop.f32.mrf.mxu0 }
 0x139   : > { %v1042_v12 = vmax.f32 %v4622_v9, 0.0  ;;  %v726_v13 = vadd.f32 %v725_v11, %v4505_v54 }
 0x13a   : > { %v727_v16 = vpop.f32.mrf.mxu0 }
 0x13b   : > { %v1066_v19 = vpack.c.bf16 %v1042_v12, %v1041_v36  ;;  %v4635_v31 = vadd.f32 %v726_v13, %v724_v17  ;;  %v728_v34 = vadd.f32 %v727_v16, %v4508_v57  ;;  %v789_v16 = vpop.f32.mrf.mxu1 }
 0x13c   : > { %v729_v29 = vpop.f32.mrf.mxu0  ;;  %v790_v28 = vadd.f32 %v789_v16, %v4505_v54 }
 0x13d   : > { %v730_v30 = vadd.f32 %v729_v29, %v4505_v54  ;;  %3646 = vmatmul.mubr.bf16.gmra.mxu0 %v1066_v19  ;;  %v1043_v14 = vmax.f32 %v4635_v31, 0.0 }
 0x13e   : > { %v733_v38 = vpop.f32.mrf.mxu0 }
 0x13f   : > { %v4639_v39 = vadd.f32 %v730_v30, %v728_v34  ;;  %v734_v47 = vadd.f32 %v733_v38, %v4508_v57  ;;  %v4060_v34 = vld [vmem:[#allocation2 + $0x10] sm:$0xff]   ;;  %v764_v30 = vadd.f32 %v4573_v10, %v4508_v57  ;;  %v766_v38 = vadd.f32 %v4581_v22, %v4505_v54  ;;  %v4061_v22 = vld [vmem:[#allocation2 + $0x8] sm:$0xff]  }
 0x140   : > { %v735_v40 = vpop.f32.mrf.mxu0  ;;  %3675 = vmatprep.subr.bf16.mxu1 %v4060_v34 }
 0x141   : > { %v1044_v43 = vmax.f32 %v4639_v39, 0.0  ;;  %v736_v44 = vadd.f32 %v735_v40, %v4505_v54  ;;  %3676 = vmatpush3.bf16.msra.mxu1 %v4060_v34  ;;  %v784_v34 = vadd.f32 %v4641_v42, %v4508_v57 }
 0x142   : > { %v737_v46 = vpop.f32.mrf.mxu0  ;;  %3677 = vmatprep.subr.bf16.mxu1 %v4061_v22 }
 0x143   : > { %v1067_v48 = vpack.c.bf16 %v1044_v43, %v1043_v14  ;;  %v4652_v58 = vadd.f32 %v736_v44, %v734_v47  ;;  %v738_v59 = vadd.f32 %v737_v46, %v4508_v57  ;;  %v793_v44 = vpop.f32.mrf.mxu1 }
 0x144   : > { %v739_v52 = vpop.f32.mrf.mxu0 }
 0x145   : > { %v740_v60 = vadd.f32 %v739_v52, %v4505_v54  ;;  %3649 = vmatprep.mubr.bf16.mxu0 %v1067_v48  ;;  %v1045_v6 = vmax.f32 %v4652_v58, 0.0  ;;  %v4682_v48 = vadd.f32 %v766_v38, %v764_v30  ;;  %3678 = vmatpush3.bf16.msra.mxu1 %v4061_v22 }
 0x146   : > { %v743_v27 = vpop.f32.mrf.mxu0 }
 0x147   : > { %v4656_v61 = vadd.f32 %v740_v60, %v738_v59  ;;  %v744_v36 = vadd.f32 %v743_v27, %v4508_v57  ;;  %5733 = vst [vmem:[#allocation10_spill] sm:$0xff] %v4682_v48  ;;  %v795_v27 = vpop.f32.mrf.mxu1 }
 0x148   : > { %v745_v62 = vpop.f32.mrf.mxu0 }
 0x149   : > { %v1046_v18 = vmax.f32 %v4656_v61, 0.0  ;;  %v746_v7 = vadd.f32 %v745_v62, %v4505_v54  ;;  %v797_v30 = vpop.f32.mrf.mxu1 }
 0x14a   : > { %v747_v11 = vpop.f32.mrf.mxu0  ;;  %v798_v22 = vadd.f32 %v797_v30, %v4508_v57 }
 0x14b   : > { %v1068_v12 = vpack.c.bf16 %v1046_v18, %v1045_v6  ;;  %v4665_v17 = vadd.f32 %v746_v7, %v744_v36  ;;  %v748_v19 = vadd.f32 %v747_v11, %v4508_v57  ;;  %v4062_v7 = vld [vmem:[#allocation2] sm:$0xff]   ;;  %v774_v11 = vadd.f32 %v4607_v55, %v4508_v57 }
 0x14c   : > { %v749_v13 = vpop.f32.mrf.mxu0  ;;  %v776_v36 = vadd.f32 %v4615_v63, %v4505_v54  ;;  %3679 = vmatprep.subr.bf16.mxu1 %v4062_v7  ;;  %v786_v55 = vadd.f32 %v4649_v33, %v4505_v54  ;;  %v788_v63 = vadd.f32 %v787_v4, %v4508_v57  ;;  %v799_v33 = vpop.f32.mrf.mxu1 }
 0x14d   : > { %v750_v29 = vadd.f32 %v749_v13, %v4505_v54  ;;  %3650 = vmatmul.mubr.bf16.gmra.mxu0 %v1068_v12  ;;  %v1047_v46 = vmax.f32 %v4665_v17, 0.0  ;;  %v780_v12 = vadd.f32 %v4632_v25, %v4505_v54  ;;  %v1051_v13 = vmax.f32 %v4682_v48, 0.0  ;;  %3680 = vmatpush3.bf16.msra.mxu1 %v4062_v7 }
 0x14e   : > { %v753_v40 = vpop.f32.mrf.mxu0  ;;  %v4719_v42 = vadd.f32 %v790_v28, %v788_v63  ;;  %v4063_v63 = vld [vmem:[%s5711_s3 + $0x78] sm:$0xff]   ;;  %v4064_v28 = vld [vmem:[%s5711_s3 + $0x70] sm:$0xff]  }
 0x14f   : > { %v4677_v14 = vadd.f32 %v750_v29, %v748_v19  ;;  %v754_v26 = vadd.f32 %v753_v40, %v4508_v57  ;;  %v1052_v19 = vmax.f32 %v4684_v35, 0.0  ;;  %v4713_v40 = vadd.f32 %v776_v36, %v774_v11  ;;  %3713 = vmatprep.subr.bf16.mxu0 %v4063_v63 }
 0x150   : > { %v755_v43 = vpop.f32.mrf.mxu0  ;;  %v4715_v21 = vadd.f32 %v780_v12, %v778_v23  ;;  %5738 = vst [vmem:[#allocation15_spill] sm:$0xff] %v4719_v42  ;;  %3714 = vmatpush3.bf16.msra.mxu0 %v4063_v63 }
 0x151   : > { %5732 = vst [vmem:[#allocation9_spill] sm:$0xff] %v4677_v14  ;;  %v1048_v10 = vmax.f32 %v4677_v14, 0.0  ;;  %v756_v47 = vadd.f32 %v755_v43, %v4505_v54  ;;  %5735 = vst [vmem:[#allocation12_spill] sm:$0xff] %v4713_v40  ;;  %v4717_v43 = vadd.f32 %v786_v55, %v784_v34  ;;  %v1053_v4 = vmax.f32 %v4713_v40, 0.0  ;;  %3715 = vmatprep.subr.bf16.mxu0 %v4064_v28 }
 0x152   : > { %v757_v52 = vpop.f32.mrf.mxu0  ;;  %5736 = vst [vmem:[#allocation13_spill] sm:$0xff] %v4715_v21  ;;  %v1054_v16 = vmax.f32 %v4715_v21, 0.0 }
 0x153   : > { %v1069_v59 = vpack.c.bf16 %v1048_v10, %v1047_v46  ;;  %v4689_v62 = vadd.f32 %v756_v47, %v754_v26  ;;  %v758_v6 = vadd.f32 %v757_v52, %v4508_v57  ;;  %5737 = vst [vmem:[#allocation14_spill] sm:$0xff] %v4717_v43  ;;  %v1071_v46 = vpack.c.bf16 %v1052_v19, %v1051_v13 }
 0x154   : > { %v759_v60 = vpop.f32.mrf.mxu0  ;;  %v794_v10 = vadd.f32 %v793_v44, %v4508_v57  ;;  %v796_v47 = vadd.f32 %v795_v27, %v4505_v54  ;;  %v800_v52 = vadd.f32 %v799_v33, %v4505_v54  ;;  %v1055_v26 = vmax.f32 %v4717_v43, 0.0  ;;  %v4735_v57 = vpop.f32.mrf.mxu1  ;;  %3716 = vmatpush3.bf16.msra.mxu0 %v4064_v28 }
 0x155   : > { %v760_v18 = vadd.f32 %v759_v60, %v4505_v54  ;;  %3653 = vmatprep.mubr.bf16.mxu0 %v1069_v59  ;;  %v1049_v25 = vmax.f32 %v4689_v62, 0.0  ;;  %v1056_v59 = vmax.f32 %v4719_v42, 0.0 }
 0x156   : > { %v4729_v60 = vadd.f32 %v796_v47, %v794_v10  ;;  %v4737_v54 = vpop.f32.mrf.mxu1  ;;  %v4778_v47 = vld [vmem:[%s5712_s4] ss:$0 sm:$0xff] }
 0x157   : > { %v4703_v29 = vadd.f32 %v760_v18, %v758_v6  ;;  %v4731_v6 = vadd.f32 %v800_v52, %v798_v22  ;;  %v1072_v18 = vpack.c.bf16 %v1054_v16, %v1053_v4  ;;  %v1073_v7 = vpack.c.bf16 %v1056_v59, %v1055_v26  ;;  %5741 = vst [vmem:[#allocation18_spill] sm:$0xff] %v4737_v54 }
 0x158   : > { %5739 = vst [vmem:[#allocation16_spill] sm:$0xff] %v4729_v60  ;;  %v1057_v44 = vmax.f32 %v4729_v60, 0.0  ;;  %v4739_v36 = vpop.f32.mrf.mxu1 }
 0x159   : > { %v1050_v38 = vmax.f32 %v4703_v29, 0.0  ;;  %5740 = vst [vmem:[#allocation17_spill] sm:$0xff] %v4731_v6  ;;  %v1058_v27 = vmax.f32 %v4731_v6, 0.0 }
 0x15a   : > { %v4741_v23 = vpop.f32.mrf.mxu1 }
 0x15b   : > { %v1070_v0 = vpack.c.bf16 %v1050_v38, %v1049_v25  ;;  %v1074_v11 = vpack.c.bf16 %v1058_v27, %v1057_v44  ;;  %5742 = vst [vmem:[#allocation19_spill] sm:$0xff] %v4741_v23  ;;  %v4065_v25 = vld [vmem:[%s5711_s3 + $0x68] sm:$0xff]  }
 0x15c   : > { %v4743_v12 = vpop.f32.mrf.mxu1  ;;  %3717 = vmatprep.subr.bf16.mxu0 %v4065_v25 }
 0x15d   : > { %3654 = vmatmul.mubr.bf16.gmra.mxu0 %v1070_v0  ;;  %v4066_v0 = vld [vmem:[%s5711_s3 + $0x60] sm:$0xff]  }
 0x15e   : > { %3657 = vmatprep.mubr.bf16.mxu0 %v1071_v46  ;;  %v4745_v13 = vpop.f32.mrf.mxu1  ;;  %3718 = vmatpush3.bf16.msra.mxu0 %v4065_v25 }
 0x15f   : > { %5743 = vst [vmem:[#allocation20_spill] sm:$0xff] %v4745_v13  ;;  %3719 = vmatprep.subr.bf16.mxu0 %v4066_v0 }
 0x160   : > { %v4747_v19 = vpop.f32.mrf.mxu1 }
 0x162   : > { %v4749_v34 = vpop.f32.mrf.mxu1  ;;  %3720 = vmatpush3.bf16.msra.mxu0 %v4066_v0 }
 0x163   : > { %5744 = vst [vmem:[#allocation21_spill] sm:$0xff] %v4749_v34 }
 0x164   : > { %v4751_v55 = vpop.f32.mrf.mxu1 }
 0x165   : > { %3658 = vmatmul.mubr.bf16.gmra.mxu0 %v1072_v18 }
 0x166   : > { %3661 = vmatprep.mubr.bf16.mxu0 %v1073_v7  ;;  %v4759_v30 = vpop.f32.mrf.mxu1 }
 0x167   : > { %5745 = vst [vmem:[#allocation22_spill] sm:$0xff] %v4759_v30 }
 0x168   : > { %v4764_v38 = vpop.f32.mrf.mxu1 }
 0x16a   : > { %v4769_v33 = vpop.f32.mrf.mxu1 }
 0x16b   : > { %5746 = vst [vmem:[#allocation23_spill] sm:$0xff] %v4769_v33 }
 0x16c   : > { %v4771_v46 = vpop.f32.mrf.mxu1 }
 0x16d   : > { %3662 = vmatmul.mubr.bf16.gmra.mxu0 %v1074_v11 }
 0x16e   : > { %v4773_v10 = vpop.f32.mrf.mxu1 }
 0x16f   : > { %5747 = vst [vmem:[#allocation24_spill] sm:$0xff] %v4773_v10 }
 0x170   : > { %v4783_v7 = vpop.f32.mrf.mxu1 }
 0x172   : > { %v4786_v25 = vpop.f32.mrf.mxu1 }
 0x173   : > { %5748 = vst [vmem:[#allocation25_spill] sm:$0xff] %v4786_v25 }
 0x1cd   : > { %v3635_v4 = vpop.f32.mrf.mxu0 }
 0x1ce   : > { %v1189_v59 = vadd.f32 %v3635_v4, %v4778_v47 }
 0x1cf   : > { %v1180_v16 = vpop.f32.mrf.mxu0 }
 0x1d0   : > { %v1181_v52 = vadd.f32 %v4778_v47, %v1180_v16  ;;  %v1309_v28 = vmax.f32 %v1189_v59, 0.0  ;;  %v4788_v16 = vpop.f32.mrf.mxu1 }
 0x1d1   : > { %v3636_v22 = vpop.f32.mrf.mxu0 }
 0x1d2   : > { %v1192_v26 = vadd.f32 %v3636_v22, %v4778_v47  ;;  %v1307_v11 = vmax.f32 %v1181_v52, 0.0  ;;  %v4790_v4 = vpop.f32.mrf.mxu1 }
 0x1d3   : > { %v1183_v18 = vpop.f32.mrf.mxu0  ;;  %5749 = vst [vmem:[#allocation26_spill] sm:$0xff] %v4790_v4 }
 0x1d4   : > { %v1184_v44 = vadd.f32 %v4778_v47, %v1183_v18  ;;  %v1310_v27 = vmax.f32 %v1192_v26, 0.0  ;;  %v4795_v18 = vpop.f32.mrf.mxu1 }
 0x1d6   : > { %v1308_v63 = vmax.f32 %v1184_v44, 0.0  ;;  %v1340_v33 = vpack.c.bf16 %v1310_v27, %v1309_v28  ;;  %v4798_v28 = vpop.f32.mrf.mxu1 }
 0x1d7   : > { %5750 = vst [vmem:[#allocation27_spill] sm:$0xff] %v4798_v28 }
 0x1d8   : > { %v1339_v0 = vpack.c.bf16 %v1308_v63, %v1307_v11 }
 0x1da   : > { %3681 = vmatprep.mubr.bf16.mxu1 %v1339_v0 }
 0x1db   : > { %3682 = vmatmul.mubr.bf16.vlgmr.msra.gmra.mxu1 %v1340_v33 }
 0x1dd   : > { %v3639_v22 = vpop.f32.mrf.mxu0 }
 0x1de   : > { %v1205_v52 = vadd.f32 %v3639_v22, %v4778_v47 }
 0x1df   : > { %v1196_v10 = vpop.f32.mrf.mxu0 }
 0x1e0   : > { %v1197_v23 = vadd.f32 %v4778_v47, %v1196_v10  ;;  %v1313_v63 = vmax.f32 %v1205_v52, 0.0  ;;  %v4800_v10 = vpop.f32.mrf.mxu1 }
 0x1e1   : > { %v3640_v30 = vpop.f32.mrf.mxu0 }
 0x1e2   : > { %v1208_v26 = vadd.f32 %v3640_v30, %v4778_v47  ;;  %v1311_v33 = vmax.f32 %v1197_v23, 0.0  ;;  %v4802_v22 = vpop.f32.mrf.mxu1 }
 0x1e3   : > { %v1199_v59 = vpop.f32.mrf.mxu0  ;;  %5751 = vst [vmem:[#allocation28_spill] sm:$0xff] %v4802_v22 }
 0x1e4   : > { %v1200_v44 = vadd.f32 %v4778_v47, %v1199_v59  ;;  %v1314_v27 = vmax.f32 %v1208_v26, 0.0  ;;  %v4807_v59 = vpop.f32.mrf.mxu1 }
 0x1e6   : > { %v1312_v11 = vmax.f32 %v1200_v44, 0.0  ;;  %v1342_v4 = vpack.c.bf16 %v1314_v27, %v1313_v63  ;;  %v4810_v63 = vpop.f32.mrf.mxu1 }
 0x1e7   : > { %5752 = vst [vmem:[#allocation29_spill] sm:$0xff] %v4810_v63 }
 0x1e8   : > { %v1341_v0 = vpack.c.bf16 %v1312_v11, %v1311_v33 }
 0x1ea   : > { %3685 = vmatprep.mubr.bf16.mxu1 %v1341_v0 }
 0x1eb   : > { %3686 = vmatmul.mubr.bf16.gmra.mxu1 %v1342_v4 }
 0x1ed   : > { %v3643_v30 = vpop.f32.mrf.mxu0 }
 0x1ee   : > { %v1221_v23 = vadd.f32 %v3643_v30, %v4778_v47 }
 0x1ef   : > { %v1212_v25 = vpop.f32.mrf.mxu0 }
 0x1f0   : > { %v1213_v34 = vadd.f32 %v4778_v47, %v1212_v25  ;;  %v1317_v11 = vmax.f32 %v1221_v23, 0.0  ;;  %v4812_v25 = vpop.f32.mrf.mxu1 }
 0x1f1   : > { %v3644_v13 = vpop.f32.mrf.mxu0 }
 0x1f2   : > { %v1224_v26 = vadd.f32 %v3644_v13, %v4778_v47  ;;  %v1315_v4 = vmax.f32 %v1213_v34, 0.0  ;;  %v4814_v30 = vpop.f32.mrf.mxu1 }
 0x1f3   : > { %v1215_v52 = vpop.f32.mrf.mxu0  ;;  %5753 = vst [vmem:[#allocation30_spill] sm:$0xff] %v4814_v30 }
 0x1f4   : > { %v1216_v44 = vadd.f32 %v4778_v47, %v1215_v52  ;;  %v1318_v27 = vmax.f32 %v1224_v26, 0.0  ;;  %v4819_v52 = vpop.f32.mrf.mxu1 }
 0x1f6   : > { %v1316_v33 = vmax.f32 %v1216_v44, 0.0  ;;  %v1344_v28 = vpack.c.bf16 %v1318_v27, %v1317_v11  ;;  %v4822_v11 = vpop.f32.mrf.mxu1 }
 0x1f7   : > { %5754 = vst [vmem:[#allocation31_spill] sm:$0xff] %v4822_v11 }
 0x1f8   : > { %v1343_v0 = vpack.c.bf16 %v1316_v33, %v1315_v4 }
 0x1fa   : > { %3689 = vmatprep.mubr.bf16.mxu1 %v1343_v0 }
 0x1fb   : > { %3690 = vmatmul.mubr.bf16.gmra.mxu1 %v1344_v28 }
 0x1fd   : > { %v3647_v13 = vpop.f32.mrf.mxu0 }
 0x1fe   : > { %v1237_v34 = vadd.f32 %v3647_v13, %v4778_v47 }
 0x1ff   : > { %v1228_v22 = vpop.f32.mrf.mxu0 }
 0x200   : > { %v1229_v42 = vadd.f32 %v4778_v47, %v1228_v22  ;;  %v1321_v33 = vmax.f32 %v1237_v34, 0.0  ;;  %v4824_v22 = vpop.f32.mrf.mxu1 }
 0x201   : > { %v3648_v54 = vpop.f32.mrf.mxu0 }
 0x202   : > { %v1240_v26 = vadd.f32 %v3648_v54, %v4778_v47  ;;  %v1319_v28 = vmax.f32 %v1229_v42, 0.0  ;;  %v4826_v13 = vpop.f32.mrf.mxu1 }
 0x203   : > { %v1231_v23 = vpop.f32.mrf.mxu0  ;;  %5755 = vst [vmem:[#allocation32_spill] sm:$0xff] %v4826_v13 }
 0x204   : > { %v1232_v44 = vadd.f32 %v4778_v47, %v1231_v23  ;;  %v1322_v27 = vmax.f32 %v1240_v26, 0.0  ;;  %v4831_v23 = vpop.f32.mrf.mxu1 }
 0x206   : > { %v1320_v4 = vmax.f32 %v1232_v44, 0.0  ;;  %v1346_v30 = vpack.c.bf16 %v1322_v27, %v1321_v33  ;;  %v4834_v33 = vpop.f32.mrf.mxu1 }
 0x207   : > { %5756 = vst [vmem:[#allocation33_spill] sm:$0xff] %v4834_v33 }
 0x208   : > { %v1345_v0 = vpack.c.bf16 %v1320_v4, %v1319_v28 }
 0x20a   : > { %3693 = vmatprep.mubr.bf16.mxu1 %v1345_v0 }
 0x20b   : > { %3694 = vmatmul.mubr.bf16.gmra.mxu1 %v1346_v30 }
 0x20d   : > { %v3651_v54 = vpop.f32.mrf.mxu0 }
 0x20e   : > { %v1253_v42 = vadd.f32 %v3651_v54, %v4778_v47 }
 0x20f   : > { %v1244_v63 = vpop.f32.mrf.mxu0 }
 0x210   : > { %v1245_v60 = vadd.f32 %v4778_v47, %v1244_v63  ;;  %v1325_v4 = vmax.f32 %v1253_v42, 0.0  ;;  %v4836_v63 = vpop.f32.mrf.mxu1 }
 0x211   : > { %v3652_v6 = vpop.f32.mrf.mxu0 }
 0x212   : > { %v1256_v26 = vadd.f32 %v3652_v6, %v4778_v47  ;;  %v1323_v30 = vmax.f32 %v1245_v60, 0.0  ;;  %v4067_v6 = vld [vmem:[%s5711_s3 + $0x58] sm:$0xff]   ;;  %v4068_v60 = vld [vmem:[%s5711_s3 + $0x50] sm:$0xff]  }
 0x213   : > { %v1247_v34 = vpop.f32.mrf.mxu0  ;;  %3721 = vmatprep.subr.bf16.mxu0 %v4067_v6 }
 0x214   : > { %v1248_v44 = vadd.f32 %v4778_v47, %v1247_v34  ;;  %v1326_v27 = vmax.f32 %v1256_v26, 0.0  ;;  %3722 = vmatpush3.bf16.msra.mxu0 %v4067_v6  ;;  %v4841_v26 = vpop.f32.mrf.mxu1 }
 0x215   : > { %5757 = vst [vmem:[#allocation34_spill] sm:$0xff] %v4841_v26  ;;  %3723 = vmatprep.subr.bf16.mxu0 %v4068_v60 }
 0x216   : > { %v1324_v28 = vmax.f32 %v1248_v44, 0.0  ;;  %v1348_v11 = vpack.c.bf16 %v1326_v27, %v1325_v4  ;;  %v4069_v4 = vld [vmem:[%s5711_s3 + $0x48] sm:$0xff]  }
 0x218   : > { %v1347_v0 = vpack.c.bf16 %v1324_v28, %v1323_v30  ;;  %3724 = vmatpush3.bf16.msra.mxu0 %v4068_v60  ;;  %v4849_v28 = vpop.f32.mrf.mxu1 }
 0x219   : > { %3725 = vmatprep.subr.bf16.mxu0 %v4069_v4 }
 0x21a   : > { %3697 = vmatprep.mubr.bf16.mxu1 %v1347_v0  ;;  %v4855_v60 = vpop.f32.mrf.mxu1 }
 0x21b   : > { %3698 = vmatmul.mubr.bf16.gmra.mxu1 %v1348_v11  ;;  %5758 = vst [vmem:[#allocation35_spill] sm:$0xff] %v4855_v60 }
 0x21c   : > { %3726 = vmatpush3.bf16.msra.mxu0 %v4069_v4  ;;  %v4863_v4 = vpop.f32.mrf.mxu1 }
 0x21d   : > { %v3655_v54 = vpop.f32.mrf.mxu0 }
 0x21e   : > { %v1269_v27 = vadd.f32 %v3655_v54, %v4778_v47  ;;  %v4070_v54 = vld [vmem:[%s5711_s3 + $0x40] sm:$0xff]   ;;  %v4866_v48 = vpop.f32.mrf.mxu1 }
 0x21f   : > { %v1260_v34 = vpop.f32.mrf.mxu0  ;;  %3727 = vmatprep.subr.bf16.mxu0 %v4070_v54  ;;  %5759 = vst [vmem:[#allocation36_spill] sm:$0xff] %v4866_v48 }
 0x220   : > { %v1261_v11 = vadd.f32 %v4778_v47, %v1260_v34  ;;  %v1329_v34 = vmax.f32 %v1269_v27, 0.0  ;;  %3728 = vmatpush3.bf16.msra.mxu0 %v4070_v54 }
 0x221   : > { %v3656_v42 = vpop.f32.mrf.mxu0 }
 0x222   : > { %v1272_v44 = vadd.f32 %v3656_v42, %v4778_v47  ;;  %v1327_v13 = vmax.f32 %v1261_v11, 0.0 }
 0x223   : > { %v1263_v30 = vpop.f32.mrf.mxu0 }
 0x224   : > { %v1264_v0 = vadd.f32 %v4778_v47, %v1263_v30  ;;  %v1330_v6 = vmax.f32 %v1272_v44, 0.0 }
 0x225   : > { %v3659_v26 = vpop.f32.mrf.mxu0 }
 0x226   : > { %v1328_v33 = vmax.f32 %v1264_v0, 0.0  ;;  %v1350_v35 = vpack.c.bf16 %v1330_v6, %v1329_v34  ;;  %v1285_v11 = vadd.f32 %v3659_v26, %v4778_v47 }
 0x227   : > { %v1276_v42 = vpop.f32.mrf.mxu0 }
 0x228   : > { %v1349_v43 = vpack.c.bf16 %v1328_v33, %v1327_v13  ;;  %v1277_v30 = vadd.f32 %v4778_v47, %v1276_v42  ;;  %v1333_v6 = vmax.f32 %v1285_v11, 0.0 }
 0x229   : > { %v3660_v21 = vpop.f32.mrf.mxu0 }
 0x22a   : > { %v1288_v44 = vadd.f32 %v3660_v21, %v4778_v47  ;;  %3701 = vmatprep.mubr.bf16.mxu1 %v1349_v43  ;;  %v1331_v13 = vmax.f32 %v1277_v30, 0.0 }
 0x22b   : > { %v1279_v27 = vpop.f32.mrf.mxu0  ;;  %3702 = vmatmul.mubr.bf16.gmra.mxu1 %v1350_v35 }
 0x22c   : > { %v1280_v0 = vadd.f32 %v4778_v47, %v1279_v27  ;;  %v1334_v60 = vmax.f32 %v1288_v44, 0.0  ;;  %v4871_v44 = vpop.f32.mrf.mxu1 }
 0x22d   : > { %v3663_v40 = vpop.f32.mrf.mxu0 }
 0x22e   : > { %v1332_v33 = vmax.f32 %v1280_v0, 0.0  ;;  %v1352_v21 = vpack.c.bf16 %v1334_v60, %v1333_v6  ;;  %v1301_v35 = vadd.f32 %v3663_v40, %v4778_v47 }
 0x22f   : > { %v1292_v34 = vpop.f32.mrf.mxu0 }
 0x230   : > { %v1351_v42 = vpack.c.bf16 %v1332_v33, %v1331_v13  ;;  %v1293_v54 = vadd.f32 %v4778_v47, %v1292_v34  ;;  %v1337_v48 = vmax.f32 %v1301_v35, 0.0  ;;  %v4874_v13 = vpop.f32.mrf.mxu1 }
 0x231   : > { %v3664_v43 = vpop.f32.mrf.mxu0  ;;  %5760 = vst [vmem:[#allocation37_spill] sm:$0xff] %v4874_v13 }
 0x232   : > { %v1304_v26 = vadd.f32 %v3664_v43, %v4778_v47  ;;  %3705 = vmatprep.mubr.bf16.mxu1 %v1351_v42  ;;  %v1335_v27 = vmax.f32 %v1293_v54, 0.0  ;;  %v4876_v6 = vpop.f32.mrf.mxu1 }
 0x233   : > { %v1295_v14 = vpop.f32.mrf.mxu0  ;;  %3706 = vmatmul.mubr.bf16.gmra.mxu1 %v1352_v21 }
 0x234   : > { %v1296_v30 = vadd.f32 %v4778_v47, %v1295_v14  ;;  %v1338_v11 = vmax.f32 %v1304_v26, 0.0  ;;  %v4878_v34 = vpop.f32.mrf.mxu1 }
 0x235   : > { %5761 = vst [vmem:[#allocation38_spill] sm:$0xff] %v4878_v34  ;;  %v4071_v34 = vld [vmem:[#allocation2 + $0x78] sm:$0xff]  }
 0x236   : > { %v1336_v0 = vmax.f32 %v1296_v30, 0.0  ;;  %v1354_v33 = vpack.c.bf16 %v1338_v11, %v1337_v48  ;;  %v4880_v40 = vpop.f32.mrf.mxu1  ;;  %3761 = vmatprep.subr.bf16.mxu1 %v4071_v34 }
 0x237   : > { %3762 = vmatpush3.bf16.msra.mxu1 %v4071_v34 }
 0x238   : > { %v1353_v60 = vpack.c.bf16 %v1336_v0, %v1335_v27  ;;  %v4882_v42 = vpop.f32.mrf.mxu1 }
 0x239   : > { %5762 = vst [vmem:[#allocation39_spill] sm:$0xff] %v4882_v42 }
 0x23a   : > { %3709 = vmatprep.mubr.bf16.mxu1 %v1353_v60  ;;  %v4884_v21 = vpop.f32.mrf.mxu1 }
 0x23b   : > { %3710 = vmatmul.mubr.bf16.gmra.mxu1 %v1354_v33 }
 0x23c   : > { %v4886_v14 = vpop.f32.mrf.mxu1 }
 0x23d   : > { %5763 = vst [vmem:[#allocation40_spill] sm:$0xff] %v4886_v14 }
 0x23e   : > { %v4888_v47 = vpop.f32.mrf.mxu1 }
 0x240   : > { %v4890_v43 = vpop.f32.mrf.mxu1 }
 0x241   : > { %5764 = vst [vmem:[#allocation41_spill] sm:$0xff] %v4890_v43 }
 0x242   : > { %v4892_v54 = vpop.f32.mrf.mxu1 }
 0x244   : > { %v4894_v48 = vpop.f32.mrf.mxu1 }
 0x245   : > { %5765 = vst [vmem:[#allocation42_spill] sm:$0xff] %v4894_v48 }
 0x246   : > { %v4896_v26 = vpop.f32.mrf.mxu1 }
 0x247   : > { %5766 = vst [vmem:[#allocation43_spill] sm:$0xff] %v4896_v26 }
 0x248   : > { %v4898_v35 = vpop.f32.mrf.mxu1 }
 0x249   : > { %5767 = vst [vmem:[#allocation44_spill] sm:$0xff] %v4898_v35  ;;  %v4072_v35 = vld [vmem:[#allocation2 + $0x70] sm:$0xff]  }
 0x24a   : > { %v4900_v30 = vpop.f32.mrf.mxu1  ;;  %3763 = vmatprep.subr.bf16.mxu1 %v4072_v35 }
 0x24b   : > { %5768 = vst [vmem:[#allocation45_spill] sm:$0xff] %v4900_v30  ;;  %3764 = vmatpush3.bf16.msra.mxu1 %v4072_v35 }
 0x24c   : > { %v4902_v11 = vpop.f32.mrf.mxu1 }
 0x24d   : > { %5769 = vst [vmem:[#allocation46_spill] sm:$0xff] %v4902_v11  ;;  %v4073_v11 = vld [vmem:[#allocation2 + $0x68] sm:$0xff]  }
 0x24e   : > { %v4904_v27 = vpop.f32.mrf.mxu1  ;;  %3765 = vmatprep.subr.bf16.mxu1 %v4073_v11 }
 0x24f   : > { %3766 = vmatpush3.bf16.msra.mxu1 %v4073_v11 }
 0x250   : > { %v4906_v0 = vpop.f32.mrf.mxu1 }
 0x251   : > { %5770 = vst [vmem:[#allocation47_spill] sm:$0xff] %v4906_v0  ;;  %v4074_v0 = vld [vmem:[#allocation2 + $0x60] sm:$0xff]  }
 0x252   : > { %v4908_v60 = vpop.f32.mrf.mxu1  ;;  %3767 = vmatprep.subr.bf16.mxu1 %v4074_v0 }
 0x253   : > { %5771 = vst [vmem:[#allocation48_spill] sm:$0xff] %v4908_v60  ;;  %3768 = vmatpush3.bf16.msra.mxu1 %v4074_v0 }
 0x254   : > { %v4910_v33 = vpop.f32.mrf.mxu1 }
 0x255   : > { %5772 = vst [vmem:[#allocation49_spill] sm:$0xff] %v4910_v33 }
 0x256   : > { %v4912_v14 = vpop.f32.mrf.mxu1 }
 0x257   : > { %5773 = vst [vmem:[#allocation50_spill] sm:$0xff] %v4912_v14  ;;  %v404_v14 = vsub.s32 2, %v4492_v49 }
 0x258   : > { %v4914_v42 = vpop.f32.mrf.mxu1 }
 0x259   : > { %5774 = vst [vmem:[#allocation51_spill] sm:$0xff] %v4914_v42  ;;  %v4075_v42 = vld [vmem:[#allocation2 + $0x58] sm:$0xff]   ;;  %v4932_v35 = vrot.slane %v4501_v53, %v404_v14 }
 0x25a   : > { %v4916_v48 = vpop.f32.mrf.mxu1  ;;  %3769 = vmatprep.subr.bf16.mxu1 %v4075_v42 }
 0x25b   : > { %5775 = vst [vmem:[#allocation52_spill] sm:$0xff] %v4916_v48  ;;  %3770 = vmatpush3.bf16.msra.mxu1 %v4075_v42  ;;  %v837_v0 = vadd.f32 %v4735_v57, %v4932_v35 }
 0x25c   : > { %v4918_v43 = vpop.f32.mrf.mxu1 }
 0x25d   : > { %5776 = vst [vmem:[#allocation53_spill] sm:$0xff] %v4918_v43  ;;  %v4928_v43 = vld [vmem:[%s5714_s6] ss:$0 sm:$0xff] }
 0x25e   : > { %v4920_v13 = vpop.f32.mrf.mxu1 }
 0x25f   : > { %5777 = vst [vmem:[#allocation54_spill] sm:$0xff] %v4920_v13 }
 0x260   : > { %v4922_v33 = vpop.f32.mrf.mxu1 }
 0x261   : > { %5778 = vst [vmem:[#allocation55_spill] sm:$0xff] %v4922_v33 }
 0x29b   : > { %v3683_v34 = vpop.f32.mrf.mxu1 }
 0x29c   : > { %v1469_v48 = vadd.f32 %v3683_v34, %v4928_v43  ;;  %v851_v34 = vadd.f32 %v4747_v19, %v4932_v35 }
 0x29d   : > { %v1460_v13 = vpop.f32.mrf.mxu1 }
 0x29e   : > { %v1461_v11 = vadd.f32 %v4928_v43, %v1460_v13  ;;  %v1589_v26 = vadd.f32 %v1469_v48, %v4528_v15  ;;  %v847_v13 = vadd.f32 %v4743_v12, %v4932_v35 }
 0x29f   : > { %v3684_v33 = vpop.f32.mrf.mxu1 }
 0x2a0   : > { %v1587_v60 = vadd.f32 %v1461_v11, %v4515_v1  ;;  %v1472_v49 = vadd.f32 %v3684_v33, %v4928_v43  ;;  %v841_v1 = vadd.f32 %v4739_v36, %v4932_v35  ;;  %v4953_v57 = vadd.f32 %v1589_v26, %v847_v13 }
 0x2a1   : > { %v1463_v30 = vpop.f32.mrf.mxu1 }
 0x2a2   : > { %v1590_v53 = vadd.f32 %v1472_v49, %v4532_v20  ;;  %v1464_v14 = vadd.f32 %v4928_v43, %v1463_v30  ;;  %v4948_v42 = vadd.f32 %v1587_v60, %v837_v0  ;;  %v1653_v12 = vmax.f32 %v4953_v57, 0.0 }
 0x2a4   : > { %v4950_v15 = vadd.f32 %v1590_v53, %v851_v34  ;;  %v1588_v48 = vadd.f32 %v1464_v14, %v4519_v5  ;;  %v1651_v20 = vmax.f32 %v4948_v42, 0.0 }
 0x2a6   : > { %v4955_v33 = vadd.f32 %v1588_v48, %v841_v1  ;;  %v1654_v49 = vmax.f32 %v4950_v15, 0.0  ;;  %v857_v1 = vadd.f32 %v4751_v55, %v4932_v35  ;;  %v871_v48 = vadd.f32 %v4783_v7, %v4932_v35 }
 0x2a8   : > { %v1652_v19 = vmax.f32 %v4955_v33, 0.0  ;;  %v1684_v36 = vpack.c.bf16 %v1654_v49, %v1653_v12 }
 0x2aa   : > { %v1683_v30 = vpack.c.bf16 %v1652_v19, %v1651_v20  ;;  %v867_v19 = vadd.f32 %v4771_v46, %v4932_v35 }
 0x2ab   : > { %v3687_v60 = vpop.f32.mrf.mxu1 }
 0x2ac   : > { %3729 = vmatprep.mubr.bf16.mxu0 %v1683_v30  ;;  %v1485_v11 = vadd.f32 %v3687_v60, %v4928_v43 }
 0x2ad   : > { %v1476_v0 = vpop.f32.mrf.mxu1  ;;  %3730 = vmatmul.mubr.bf16.vlgmr.msra.gmra.mxu0 %v1684_v36 }
 0x2ae   : > { %v1477_v5 = vadd.f32 %v4928_v43, %v1476_v0  ;;  %v1593_v14 = vadd.f32 %v1485_v11, %v4554_v50 }
 0x2af   : > { %v3688_v26 = vpop.f32.mrf.mxu1 }
 0x2b0   : > { %v1591_v34 = vadd.f32 %v1477_v5, %v4541_v37  ;;  %v1488_v53 = vadd.f32 %v3688_v26, %v4928_v43  ;;  %v861_v37 = vadd.f32 %v4764_v38, %v4932_v35  ;;  %v4981_v55 = vadd.f32 %v1593_v14, %v867_v19 }
 0x2b1   : > { %v1479_v13 = vpop.f32.mrf.mxu1 }
 0x2b2   : > { %v1594_v49 = vadd.f32 %v1488_v53, %v4558_v56  ;;  %v1480_v20 = vadd.f32 %v4928_v43, %v1479_v13  ;;  %v4976_v12 = vadd.f32 %v1591_v34, %v857_v1  ;;  %v1657_v46 = vmax.f32 %v4981_v55, 0.0 }
 0x2b4   : > { %v4978_v50 = vadd.f32 %v1594_v49, %v871_v48  ;;  %v1592_v30 = vadd.f32 %v1480_v20, %v4545_v41  ;;  %v1655_v7 = vmax.f32 %v4976_v12, 0.0  ;;  %v877_v48 = vadd.f32 %v4788_v16, %v4932_v35 }
 0x2b5   : > { %v891_v49 = vadd.f32 %v4807_v59, %v4932_v35 }
 0x2b6   : > { %v4983_v36 = vadd.f32 %v1592_v30, %v861_v37  ;;  %v1658_v56 = vmax.f32 %v4978_v50, 0.0  ;;  %v887_v37 = vadd.f32 %v4800_v10, %v4932_v35 }
 0x2b8   : > { %v1656_v60 = vmax.f32 %v4983_v36, 0.0  ;;  %v1686_v0 = vpack.c.bf16 %v1658_v56, %v1657_v46 }
 0x2ba   : > { %v1685_v11 = vpack.c.bf16 %v1656_v60, %v1655_v7 }
 0x2bb   : > { %v3691_v38 = vpop.f32.mrf.mxu1 }
 0x2bc   : > { %3733 = vmatprep.mubr.bf16.mxu0 %v1685_v11  ;;  %v1501_v5 = vadd.f32 %v3691_v38, %v4928_v43 }
 0x2bd   : > { %v1492_v26 = vpop.f32.mrf.mxu1  ;;  %3734 = vmatmul.mubr.bf16.gmra.mxu0 %v1686_v0 }
 0x2be   : > { %v1493_v41 = vadd.f32 %v4928_v43, %v1492_v26  ;;  %v1597_v13 = vadd.f32 %v1501_v5, %v4584_v24 }
 0x2bf   : > { %v3692_v34 = vpop.f32.mrf.mxu1 }
 0x2c0   : > { %v1595_v53 = vadd.f32 %v1493_v41, %v4567_v3  ;;  %v1504_v14 = vadd.f32 %v3692_v34, %v4928_v43  ;;  %v881_v3 = vadd.f32 %v4795_v18, %v4932_v35  ;;  %v5009_v16 = vadd.f32 %v1597_v13, %v887_v37 }
 0x2c1   : > { %v1495_v1 = vpop.f32.mrf.mxu1  ;;  %v911_v13 = vadd.f32 %v4831_v23, %v4932_v35 }
 0x2c2   : > { %v1598_v20 = vadd.f32 %v1504_v14, %v4588_v32  ;;  %v1496_v19 = vadd.f32 %v4928_v43, %v1495_v1  ;;  %v5004_v30 = vadd.f32 %v1595_v53, %v877_v48  ;;  %v1661_v10 = vmax.f32 %v5009_v16, 0.0 }
 0x2c3   : > { %v897_v14 = vadd.f32 %v4812_v25, %v4932_v35 }
 0x2c4   : > { %v5006_v24 = vadd.f32 %v1598_v20, %v891_v49  ;;  %v1596_v56 = vadd.f32 %v1496_v19, %v4571_v8  ;;  %v1659_v59 = vmax.f32 %v5004_v30, 0.0  ;;  %v907_v49 = vadd.f32 %v4824_v22, %v4932_v35 }
 0x2c6   : > { %v5011_v7 = vadd.f32 %v1596_v56, %v881_v3  ;;  %v1662_v32 = vmax.f32 %v5006_v24, 0.0 }
 0x2c8   : > { %v1660_v60 = vmax.f32 %v5011_v7, 0.0  ;;  %v1688_v11 = vpack.c.bf16 %v1662_v32, %v1661_v10 }
 0x2ca   : > { %v1687_v46 = vpack.c.bf16 %v1660_v60, %v1659_v59 }
 0x2cb   : > { %v3695_v18 = vpop.f32.mrf.mxu1 }
 0x2cc   : > { %3737 = vmatprep.mubr.bf16.mxu0 %v1687_v46  ;;  %v1517_v38 = vadd.f32 %v3695_v18, %v4928_v43 }
 0x2cd   : > { %v1508_v0 = vpop.f32.mrf.mxu1  ;;  %3738 = vmatmul.mubr.bf16.gmra.mxu0 %v1688_v11 }
 0x2ce   : > { %v1509_v8 = vadd.f32 %v4928_v43, %v1508_v0  ;;  %v1601_v34 = vadd.f32 %v1517_v38, %v4618_v2  ;;  %v917_v0 = vadd.f32 %v4836_v63, %v4932_v35 }
 0x2cf   : > { %v3696_v5 = vpop.f32.mrf.mxu1 }
 0x2d0   : > { %v1599_v26 = vadd.f32 %v1509_v8, %v4601_v45  ;;  %v1520_v41 = vadd.f32 %v3696_v5, %v4928_v43  ;;  %v901_v45 = vadd.f32 %v4819_v52, %v4932_v35  ;;  %v5037_v25 = vadd.f32 %v1601_v34, %v907_v49 }
 0x2d1   : > { %v1511_v53 = vpop.f32.mrf.mxu1  ;;  %v931_v8 = vadd.f32 %v4871_v44, %v4932_v35 }
 0x2d2   : > { %v1602_v1 = vadd.f32 %v1520_v41, %v4622_v9  ;;  %v1512_v48 = vadd.f32 %v4928_v43, %v1511_v53  ;;  %v5032_v20 = vadd.f32 %v1599_v26, %v897_v14  ;;  %v1665_v22 = vmax.f32 %v5037_v25, 0.0 }
 0x2d3   : > { %v927_v41 = vadd.f32 %v4863_v4, %v4932_v35 }
 0x2d4   : > { %v5034_v2 = vadd.f32 %v1602_v1, %v911_v13  ;;  %v1600_v19 = vadd.f32 %v1512_v48, %v4605_v51  ;;  %v1663_v23 = vmax.f32 %v5032_v20, 0.0 }
 0x2d6   : > { %v5039_v37 = vadd.f32 %v1600_v19, %v901_v45  ;;  %v1666_v9 = vmax.f32 %v5034_v2, 0.0  ;;  %v4076_v19 = vld [vmem:[#allocation2 + $0x50] sm:$0xff]  }
 0x2d7   : > { %3771 = vmatprep.subr.bf16.mxu1 %v4076_v19 }
 0x2d8   : > { %v1664_v3 = vmax.f32 %v5039_v37, 0.0  ;;  %v1690_v32 = vpack.c.bf16 %v1666_v9, %v1665_v22  ;;  %3772 = vmatpush3.bf16.msra.mxu1 %v4076_v19 }
 0x2da   : > { %v1689_v56 = vpack.c.bf16 %v1664_v3, %v1663_v23 }
 0x2db   : > { %v3699_v52 = vpop.f32.mrf.mxu1 }
 0x2dc   : > { %3741 = vmatprep.mubr.bf16.mxu0 %v1689_v56  ;;  %v1533_v59 = vadd.f32 %v3699_v52, %v4928_v43  ;;  %v937_v52 = vadd.f32 %v4876_v6, %v4932_v35  ;;  %v5779_v6 = vld [vmem:[#allocation9_spill] sm:$0xff] }
 0x2dd   : > { %v1524_v60 = vpop.f32.mrf.mxu1  ;;  %3742 = vmatmul.mubr.bf16.gmra.mxu0 %v1690_v32  ;;  %v951_v32 = vadd.f32 %v4888_v47, %v4932_v35 }
 0x2de   : > { %v1525_v51 = vadd.f32 %v4928_v43, %v1524_v60  ;;  %v1605_v11 = vadd.f32 %v1533_v59, %v4652_v58 }
 0x2df   : > { %v3700_v10 = vpop.f32.mrf.mxu1 }
 0x2e0   : > { %v1603_v46 = vadd.f32 %v1525_v51, %v4635_v31  ;;  %v1536_v18 = vadd.f32 %v3700_v10, %v4928_v43  ;;  %v921_v31 = vadd.f32 %v4849_v28, %v4932_v35  ;;  %v5065_v63 = vadd.f32 %v1605_v11, %v927_v41  ;;  %v4077_v51 = vld [vmem:[#allocation2 + $0x48] sm:$0xff]  }
 0x2e1   : > { %v1527_v38 = vpop.f32.mrf.mxu1  ;;  %3773 = vmatprep.subr.bf16.mxu1 %v4077_v51 }
 0x2e2   : > { %v1606_v5 = vadd.f32 %v1536_v18, %v4656_v61  ;;  %v1528_v26 = vadd.f32 %v4928_v43, %v1527_v38  ;;  %v5060_v34 = vadd.f32 %v1603_v46, %v917_v0  ;;  %v1669_v4 = vmax.f32 %v5065_v63, 0.0  ;;  %3774 = vmatpush3.bf16.msra.mxu1 %v4077_v51 }
 0x2e4   : > { %v5062_v58 = vadd.f32 %v1606_v5, %v931_v8  ;;  %v1604_v53 = vadd.f32 %v1528_v26, %v4639_v39  ;;  %v1667_v44 = vmax.f32 %v5060_v34, 0.0  ;;  %v4078_v8 = vld [vmem:[#allocation2 + $0x40] sm:$0xff]   ;;  %v5780_v26 = vld [vmem:[#allocation10_spill] sm:$0xff] }
 0x2e5   : > { %3775 = vmatprep.subr.bf16.mxu1 %v4078_v8 }
 0x2e6   : > { %v5067_v14 = vadd.f32 %v1604_v53, %v921_v31  ;;  %v1670_v61 = vmax.f32 %v5062_v58, 0.0  ;;  %3776 = vmatpush3.bf16.msra.mxu1 %v4078_v8 }
 0x2e8   : > { %v1668_v13 = vmax.f32 %v5067_v14, 0.0  ;;  %v1692_v48 = vpack.c.bf16 %v1670_v61, %v1669_v4 }
 0x2ea   : > { %v1691_v1 = vpack.c.bf16 %v1668_v13, %v1667_v44  ;;  %v957_v44 = vadd.f32 %v4892_v54, %v4932_v35  ;;  %v5781_v13 = vld [vmem:[#allocation12_spill] sm:$0xff]  ;;  %v5784_v54 = vld [vmem:[#allocation43_spill] sm:$0xff] }
 0x2eb   : > { %v3703_v28 = vpop.f32.mrf.mxu1 }
 0x2ec   : > { %3745 = vmatprep.mubr.bf16.mxu0 %v1691_v1  ;;  %v1549_v49 = vadd.f32 %v3703_v28, %v4928_v43 }
 0x2ed   : > { %v1540_v45 = vpop.f32.mrf.mxu1  ;;  %3746 = vmatmul.mubr.bf16.gmra.mxu0 %v1692_v48  ;;  %v971_v48 = vadd.f32 %v4904_v27, %v4932_v35 }
 0x2ee   : > { %v1541_v39 = vadd.f32 %v4928_v43, %v1540_v45  ;;  %v1609_v22 = vadd.f32 %v1549_v49, %v4689_v62  ;;  %v941_v62 = vadd.f32 %v4880_v40, %v4932_v35  ;;  %v5782_v49 = vld [vmem:[#allocation13_spill] sm:$0xff] }
 0x2ef   : > { %v3704_v9 = vpop.f32.mrf.mxu1 }
 0x2f0   : > { %v1607_v23 = vadd.f32 %v1541_v39, %v4665_v17  ;;  %v1552_v3 = vadd.f32 %v3704_v9, %v4928_v43  ;;  %v947_v17 = vadd.f32 %v4884_v21, %v4932_v35  ;;  %v5783_v9 = vld [vmem:[#allocation45_spill] sm:$0xff] }
 0x2f1   : > { %v1543_v56 = vpop.f32.mrf.mxu1 }
 0x2f2   : > { %v1610_v59 = vadd.f32 %v1552_v3, %v4703_v29  ;;  %v1544_v60 = vadd.f32 %v4928_v43, %v1543_v56  ;;  %v5088_v46 = vadd.f32 %v1607_v23, %v937_v52  ;;  %v5093_v47 = vadd.f32 %v1609_v22, %v947_v17 }
 0x2f3   : > { %v3707_v10 = vpop.f32.mrf.mxu1  ;;  %v967_v23 = vadd.f32 %v5783_v9, %v4932_v35  ;;  %v961_v56 = vadd.f32 %v5784_v54, %v4932_v35 }
 0x2f4   : > { %v5090_v18 = vadd.f32 %v1610_v59, %v951_v32  ;;  %v1608_v11 = vadd.f32 %v1544_v60, %v5779_v6  ;;  %v1565_v29 = vadd.f32 %v3707_v10, %v4928_v43  ;;  %v1671_v53 = vmax.f32 %v5088_v46, 0.0  ;;  %v5785_v59 = vld [vmem:[#allocation11_spill] sm:$0xff] }
 0x2f5   : > { %v1556_v38 = vpop.f32.mrf.mxu1  ;;  %v1673_v28 = vmax.f32 %v5093_v47, 0.0 }
 0x2f6   : > { %v5096_v0 = vadd.f32 %v1608_v11, %v941_v62  ;;  %v1557_v21 = vadd.f32 %v4928_v43, %v1556_v38  ;;  %v1674_v40 = vmax.f32 %v5090_v18, 0.0  ;;  %v1613_v4 = vadd.f32 %v1565_v29, %v5781_v13  ;;  %v5786_v29 = vld [vmem:[#allocation14_spill] sm:$0xff] }
 0x2f7   : > { %v3708_v5 = vpop.f32.mrf.mxu1 }
 0x2f8   : > { %v1611_v41 = vadd.f32 %v1557_v21, %v5780_v26  ;;  %v1568_v31 = vadd.f32 %v3708_v5, %v4928_v43  ;;  %v1672_v61 = vmax.f32 %v5096_v0, 0.0  ;;  %v1694_v22 = vpack.c.bf16 %v1674_v40, %v1673_v28  ;;  %v5787_v40 = vld [vmem:[#allocation48_spill] sm:$0xff] }
 0x2f9   : > { %v1559_v1 = vpop.f32.mrf.mxu1  ;;  %v5121_v27 = vadd.f32 %v1613_v4, %v967_v23  ;;  %v977_v26 = vadd.f32 %v5787_v40, %v4932_v35  ;;  %v5790_v4 = vld [vmem:[#allocation17_spill] sm:$0xff] }
 0x2fa   : > { %v1614_v45 = vadd.f32 %v1568_v31, %v5782_v49  ;;  %v1560_v39 = vadd.f32 %v4928_v43, %v1559_v1  ;;  %v1693_v19 = vpack.c.bf16 %v1672_v61, %v1671_v53  ;;  %v5116_v52 = vadd.f32 %v1611_v41, %v957_v44  ;;  %v5788_v41 = vld [vmem:[#allocation16_spill] sm:$0xff]  ;;  %v5789_v44 = vld [vmem:[#allocation54_spill] sm:$0xff] }
 0x2fb   : > { %v3711_v3 = vpop.f32.mrf.mxu1  ;;  %v1677_v61 = vmax.f32 %v5121_v27, 0.0  ;;  %v991_v13 = vadd.f32 %v5789_v44, %v4932_v35  ;;  %v5791_v49 = vld [vmem:[#allocation52_spill] sm:$0xff] }
 0x2fc   : > { %v5118_v32 = vadd.f32 %v1614_v45, %v971_v48  ;;  %v1612_v60 = vadd.f32 %v1560_v39, %v5785_v59  ;;  %3749 = vmatprep.mubr.bf16.mxu0 %v1693_v19  ;;  %v1581_v51 = vadd.f32 %v3711_v3, %v4928_v43  ;;  %v1675_v8 = vmax.f32 %v5116_v52, 0.0  ;;  %v5792_v19 = vld [vmem:[#allocation50_spill] sm:$0xff] }
 0x2fd   : > { %v1572_v17 = vpop.f32.mrf.mxu1  ;;  %3750 = vmatmul.mubr.bf16.gmra.mxu0 %v1694_v22  ;;  %v987_v45 = vadd.f32 %v5791_v49, %v4932_v35  ;;  %v981_v9 = vadd.f32 %v5792_v19, %v4932_v35  ;;  %v5793_v22 = vld [vmem:[#allocation15_spill] sm:$0xff] }
 0x2fe   : > { %v5124_v10 = vadd.f32 %v1612_v60, %v961_v56  ;;  %v1573_v62 = vadd.f32 %v4928_v43, %v1572_v17  ;;  %v1678_v11 = vmax.f32 %v5118_v32, 0.0  ;;  %v1617_v31 = vadd.f32 %v1581_v51, %v5788_v41 }
 0x2ff   : > { %v3712_v6 = vpop.f32.mrf.mxu1 }
 0x300   : > { %v1615_v38 = vadd.f32 %v1573_v62, %v5786_v29  ;;  %v1584_v21 = vadd.f32 %v3712_v6, %v4928_v43  ;;  %v1676_v5 = vmax.f32 %v5124_v10, 0.0  ;;  %v1696_v39 = vpack.c.bf16 %v1678_v11, %v1677_v61  ;;  %v4079_v6 = vld [vmem:[%s5711_s3 + $0xb8] sm:$0xff]   ;;  %v4080_v11 = vld [vmem:[%s5711_s3 + $0xb0] sm:$0xff]   ;;  %v4081_v29 = vld [vmem:[%s5711_s3 + $0xa8] sm:$0xff]  }
 0x301   : > { %v1575_v53 = vpop.f32.mrf.mxu1  ;;  %v5149_v56 = vadd.f32 %v1617_v31, %v987_v45  ;;  %3809 = vmatprep.subr.bf16.mxu0 %v4079_v6 }
 0x302   : > { %v1618_v1 = vadd.f32 %v1584_v21, %v5790_v4  ;;  %v1576_v28 = vadd.f32 %v4928_v43, %v1575_v53  ;;  %v1695_v48 = vpack.c.bf16 %v1676_v5, %v1675_v8  ;;  %v5144_v23 = vadd.f32 %v1615_v38, %v977_v26  ;;  %3810 = vmatpush3.bf16.msra.mxu0 %v4079_v6  ;;  %v4082_v38 = vld [vmem:[%s5711_s3 + $0xa0] sm:$0xff]  }
 0x303   : > { %v1681_v35 = vmax.f32 %v5149_v56, 0.0  ;;  %3811 = vmatprep.subr.bf16.mxu0 %v4080_v11  ;;  %v5172_v5 = vld [vmem:[%s5712_s4 + $0x1] ss:$0 sm:$0xff] }
 0x304   : > { %v5146_v3 = vadd.f32 %v1618_v1, %v991_v13  ;;  %v1616_v54 = vadd.f32 %v1576_v28, %v5793_v22  ;;  %3753 = vmatprep.mubr.bf16.mxu0 %v1695_v48  ;;  %v1679_v60 = vmax.f32 %v5144_v23, 0.0 }
 0x305   : > { %3754 = vmatmul.mubr.bf16.gmra.mxu0 %v1696_v39 }
 0x306   : > { %v5151_v59 = vadd.f32 %v1616_v54, %v981_v9  ;;  %v1682_v43 = vmax.f32 %v5146_v3, 0.0  ;;  %3812 = vmatpush3.bf16.msra.mxu0 %v4080_v11 }
 0x307   : > { %3813 = vmatprep.subr.bf16.mxu0 %v4081_v29 }
 0x308   : > { %v1680_v51 = vmax.f32 %v5151_v59, 0.0  ;;  %v1698_v62 = vpack.c.bf16 %v1682_v43, %v1681_v35 }
 0x30a   : > { %v1697_v17 = vpack.c.bf16 %v1680_v51, %v1679_v60  ;;  %3814 = vmatpush3.bf16.msra.mxu0 %v4081_v29 }
 0x30b   : > { %3815 = vmatprep.subr.bf16.mxu0 %v4082_v38 }
 0x30c   : > { %3757 = vmatprep.mubr.bf16.mxu0 %v1697_v17 }
 0x30d   : > { %3758 = vmatmul.mubr.bf16.gmra.mxu0 %v1698_v62 }
 0x30e   : > { %3816 = vmatpush3.bf16.msra.mxu0 %v4082_v38 }
 0x36d   : > { %v3731_v21 = vpop.f32.mrf.mxu0 }
 0x36e   : > { %v1815_v31 = vadd.f32 %v3731_v21, %v5172_v5 }
 0x36f   : > { %v1806_v8 = vpop.f32.mrf.mxu0 }
 0x370   : > { %v1807_v26 = vadd.f32 %v5172_v5, %v1806_v8  ;;  %v1935_v1 = vmax.f32 %v1815_v31, 0.0 }
 0x371   : > { %v3732_v40 = vpop.f32.mrf.mxu0 }
 0x372   : > { %v1818_v41 = vadd.f32 %v3732_v40, %v5172_v5  ;;  %v1933_v13 = vmax.f32 %v1807_v26, 0.0 }
 0x373   : > { %v1809_v53 = vpop.f32.mrf.mxu0 }
 0x374   : > { %v1810_v61 = vadd.f32 %v5172_v5, %v1809_v53  ;;  %v1936_v44 = vmax.f32 %v1818_v41, 0.0 }
 0x376   : > { %v1934_v4 = vmax.f32 %v1810_v61, 0.0  ;;  %v1966_v48 = vpack.c.bf16 %v1936_v44, %v1935_v1 }
 0x378   : > { %v1965_v28 = vpack.c.bf16 %v1934_v4, %v1933_v13 }
 0x37a   : > { %3777 = vmatprep.mubr.bf16.mxu1 %v1965_v28 }
 0x37b   : > { %3778 = vmatmul.mubr.bf16.vlgmr.msra.gmra.mxu1 %v1966_v48 }
 0x37d   : > { %v3735_v49 = vpop.f32.mrf.mxu0 }
 0x37e   : > { %v1831_v22 = vadd.f32 %v3735_v49, %v5172_v5 }
 0x37f   : > { %v1822_v45 = vpop.f32.mrf.mxu0 }
 0x380   : > { %v1823_v19 = vadd.f32 %v5172_v5, %v1822_v45  ;;  %v1939_v17 = vmax.f32 %v1831_v22, 0.0 }
 0x381   : > { %v3736_v39 = vpop.f32.mrf.mxu0 }
 0x382   : > { %v1834_v9 = vadd.f32 %v3736_v39, %v5172_v5  ;;  %v1937_v51 = vmax.f32 %v1823_v19, 0.0 }
 0x383   : > { %v1825_v54 = vpop.f32.mrf.mxu0 }
 0x384   : > { %v1826_v43 = vadd.f32 %v5172_v5, %v1825_v54  ;;  %v1940_v60 = vmax.f32 %v1834_v9, 0.0 }
 0x386   : > { %v1938_v35 = vmax.f32 %v1826_v43, 0.0  ;;  %v1968_v6 = vpack.c.bf16 %v1940_v60, %v1939_v17 }
 0x388   : > { %v1967_v62 = vpack.c.bf16 %v1938_v35, %v1937_v51 }
 0x38a   : > { %3781 = vmatprep.mubr.bf16.mxu1 %v1967_v62 }
 0x38b   : > { %3782 = vmatmul.mubr.bf16.gmra.mxu1 %v1968_v6 }
 0x38d   : > { %v3739_v11 = vpop.f32.mrf.mxu0 }
 0x38e   : > { %v1847_v40 = vadd.f32 %v3739_v11, %v5172_v5 }
 0x38f   : > { %v1838_v29 = vpop.f32.mrf.mxu0 }
 0x390   : > { %v1839_v21 = vadd.f32 %v5172_v5, %v1838_v29  ;;  %v1943_v44 = vmax.f32 %v1847_v40, 0.0 }
 0x391   : > { %v3740_v38 = vpop.f32.mrf.mxu0 }
 0x392   : > { %v1850_v8 = vadd.f32 %v3740_v38, %v5172_v5  ;;  %v1941_v53 = vmax.f32 %v1839_v21, 0.0 }
 0x393   : > { %v1841_v26 = vpop.f32.mrf.mxu0 }
 0x394   : > { %v1842_v41 = vadd.f32 %v5172_v5, %v1841_v26  ;;  %v1944_v31 = vmax.f32 %v1850_v8, 0.0 }
 0x396   : > { %v1942_v61 = vmax.f32 %v1842_v41, 0.0  ;;  %v1970_v4 = vpack.c.bf16 %v1944_v31, %v1943_v44  ;;  %v4083_v44 = vld [vmem:[%s5711_s3 + $0x98] sm:$0xff]  }
 0x397   : > { %3817 = vmatprep.subr.bf16.mxu0 %v4083_v44 }
 0x398   : > { %v1969_v13 = vpack.c.bf16 %v1942_v61, %v1941_v53  ;;  %3818 = vmatpush3.bf16.msra.mxu0 %v4083_v44 }
 0x39a   : > { %3785 = vmatprep.mubr.bf16.mxu1 %v1969_v13 }
 0x39b   : > { %3786 = vmatmul.mubr.bf16.gmra.mxu1 %v1970_v4 }
 0x39d   : > { %v3743_v1 = vpop.f32.mrf.mxu0 }
 0x39e   : > { %v1863_v39 = vadd.f32 %v3743_v1, %v5172_v5  ;;  %v4084_v1 = vld [vmem:[%s5711_s3 + $0x90] sm:$0xff]  }
 0x39f   : > { %v1854_v28 = vpop.f32.mrf.mxu0  ;;  %3819 = vmatprep.subr.bf16.mxu0 %v4084_v1 }
 0x3a0   : > { %v1855_v49 = vadd.f32 %v5172_v5, %v1854_v28  ;;  %v1947_v60 = vmax.f32 %v1863_v39, 0.0  ;;  %3820 = vmatpush3.bf16.msra.mxu0 %v4084_v1 }
 0x3a1   : > { %v3744_v48 = vpop.f32.mrf.mxu0 }
 0x3a2   : > { %v1866_v45 = vadd.f32 %v3744_v48, %v5172_v5  ;;  %v1945_v54 = vmax.f32 %v1855_v49, 0.0 }
 0x3a3   : > { %v1857_v19 = vpop.f32.mrf.mxu0 }
 0x3a4   : > { %v1858_v9 = vadd.f32 %v5172_v5, %v1857_v19  ;;  %v1948_v22 = vmax.f32 %v1866_v45, 0.0 }
 0x3a6   : > { %v1946_v43 = vmax.f32 %v1858_v9, 0.0  ;;  %v1972_v35 = vpack.c.bf16 %v1948_v22, %v1947_v60  ;;  %v4085_v9 = vld [vmem:[%s5711_s3 + $0x88] sm:$0xff]  }
 0x3a7   : > { %3821 = vmatprep.subr.bf16.mxu0 %v4085_v9 }
 0x3a8   : > { %v1971_v51 = vpack.c.bf16 %v1946_v43, %v1945_v54  ;;  %3822 = vmatpush3.bf16.msra.mxu0 %v4085_v9 }
 0x3aa   : > { %3789 = vmatprep.mubr.bf16.mxu1 %v1971_v51 }
 0x3ab   : > { %3790 = vmatmul.mubr.bf16.gmra.mxu1 %v1972_v35 }
 0x3ad   : > { %v3747_v17 = vpop.f32.mrf.mxu0 }
 0x3ae   : > { %v1879_v38 = vadd.f32 %v3747_v17, %v5172_v5 }
 0x3af   : > { %v1870_v62 = vpop.f32.mrf.mxu0 }
 0x3b0   : > { %v1871_v11 = vadd.f32 %v5172_v5, %v1870_v62  ;;  %v1951_v31 = vmax.f32 %v1879_v38, 0.0  ;;  %v4086_v62 = vld [vmem:[%s5711_s3 + $0x80] sm:$0xff]  }
 0x3b1   : > { %v3748_v6 = vpop.f32.mrf.mxu0  ;;  %3823 = vmatprep.subr.bf16.mxu0 %v4086_v62 }
 0x3b2   : > { %v1882_v29 = vadd.f32 %v3748_v6, %v5172_v5  ;;  %v1949_v26 = vmax.f32 %v1871_v11, 0.0  ;;  %3824 = vmatpush3.bf16.msra.mxu0 %v4086_v62  ;;  %v4090_v62 = vld [vmem:[#allocation2 + $0xa0] sm:$0xff]  }
 0x3b3   : > { %v1873_v21 = vpop.f32.mrf.mxu0 }
 0x3b4   : > { %v1874_v8 = vadd.f32 %v5172_v5, %v1873_v21  ;;  %v1952_v40 = vmax.f32 %v1882_v29, 0.0 }
 0x3b6   : > { %v1950_v41 = vmax.f32 %v1874_v8, 0.0  ;;  %v1974_v61 = vpack.c.bf16 %v1952_v40, %v1951_v31 }
 0x3b8   : > { %v1973_v53 = vpack.c.bf16 %v1950_v41, %v1949_v26 }
 0x3ba   : > { %3793 = vmatprep.mubr.bf16.mxu1 %v1973_v53 }
 0x3bb   : > { %3794 = vmatmul.mubr.bf16.gmra.mxu1 %v1974_v61 }
 0x3bd   : > { %v3751_v13 = vpop.f32.mrf.mxu0 }
 0x3be   : > { %v1895_v45 = vadd.f32 %v3751_v13, %v5172_v5 }
 0x3bf   : > { %v1886_v4 = vpop.f32.mrf.mxu0 }
 0x3c0   : > { %v1887_v48 = vadd.f32 %v5172_v5, %v1886_v4  ;;  %v1955_v51 = vmax.f32 %v1895_v45, 0.0 }
 0x3c1   : > { %v3752_v28 = vpop.f32.mrf.mxu0 }
 0x3c2   : > { %v1898_v49 = vadd.f32 %v3752_v28, %v5172_v5  ;;  %v1953_v43 = vmax.f32 %v1887_v48, 0.0 }
 0x3c3   : > { %v1889_v39 = vpop.f32.mrf.mxu0 }
 0x3c4   : > { %v1890_v19 = vadd.f32 %v5172_v5, %v1889_v39  ;;  %v1956_v22 = vmax.f32 %v1898_v49, 0.0 }
 0x3c5   : > { %v3755_v54 = vpop.f32.mrf.mxu0 }
 0x3c6   : > { %v1954_v60 = vmax.f32 %v1890_v19, 0.0  ;;  %v1976_v6 = vpack.c.bf16 %v1956_v22, %v1955_v51  ;;  %v1911_v21 = vadd.f32 %v3755_v54, %v5172_v5  ;;  %v4087_v51 = vld [vmem:[#allocation2 + $0xb8] sm:$0xff]  }
 0x3c7   : > { %v1902_v35 = vpop.f32.mrf.mxu0  ;;  %3857 = vmatprep.subr.bf16.mxu1 %v4087_v51 }
 0x3c8   : > { %v1975_v17 = vpack.c.bf16 %v1954_v60, %v1953_v43  ;;  %v1903_v29 = vadd.f32 %v5172_v5, %v1902_v35  ;;  %v1959_v61 = vmax.f32 %v1911_v21, 0.0  ;;  %v4088_v35 = vld [vmem:[#allocation2 + $0xb0] sm:$0xff]   ;;  %3858 = vmatpush3.bf16.msra.mxu1 %v4087_v51 }
 0x3c9   : > { %v3756_v11 = vpop.f32.mrf.mxu0  ;;  %3859 = vmatprep.subr.bf16.mxu1 %v4088_v35 }
 0x3ca   : > { %v1914_v38 = vadd.f32 %v3756_v11, %v5172_v5  ;;  %3797 = vmatprep.mubr.bf16.mxu1 %v1975_v17  ;;  %v1957_v31 = vmax.f32 %v1903_v29, 0.0  ;;  %v4089_v17 = vld [vmem:[#allocation2 + $0xa8] sm:$0xff]   ;;  %v5222_v11 = vld [vmem:[%s5714_s6 + $0x1] ss:$0 sm:$0xff]  ;;  %v4091_v29 = vld [vmem:[#allocation2 + $0x98] sm:$0xff]  }
 0x3cb   : > { %v1905_v8 = vpop.f32.mrf.mxu0  ;;  %3798 = vmatmul.mubr.bf16.gmra.mxu1 %v1976_v6  ;;  %v5794_v6 = vld [vmem:[#allocation8_spill] sm:$0xff] }
 0x3cc   : > { %v1906_v40 = vadd.f32 %v5172_v5, %v1905_v8  ;;  %v1960_v26 = vmax.f32 %v1914_v38, 0.0  ;;  %3860 = vmatpush3.bf16.msra.mxu1 %v4088_v35 }
 0x3cd   : > { %v3759_v41 = vpop.f32.mrf.mxu0  ;;  %3861 = vmatprep.subr.bf16.mxu1 %v4089_v17 }
 0x3ce   : > { %v1958_v53 = vmax.f32 %v1906_v40, 0.0  ;;  %v1978_v4 = vpack.c.bf16 %v1960_v26, %v1959_v61  ;;  %v1927_v49 = vadd.f32 %v3759_v41, %v5172_v5  ;;  %v4103_v40 = vld [vmem:[%s5710_s2] sm:$0xf] }
 0x3cf   : > { %v1918_v44 = vpop.f32.mrf.mxu0 }
 0x3d0   : > { %v1977_v13 = vpack.c.bf16 %v1958_v53, %v1957_v31  ;;  %v1919_v28 = vadd.f32 %v5172_v5, %v1918_v44  ;;  %v1963_v54 = vmax.f32 %v1927_v49, 0.0  ;;  %3862 = vmatpush3.bf16.msra.mxu1 %v4089_v17 }
 0x3d1   : > { %v3760_v1 = vpop.f32.mrf.mxu0  ;;  %3863 = vmatprep.subr.bf16.mxu1 %v4090_v62 }
 0x3d2   : > { %v1930_v48 = vadd.f32 %v3760_v1, %v5172_v5  ;;  %3801 = vmatprep.mubr.bf16.mxu1 %v1977_v13  ;;  %v1961_v9 = vmax.f32 %v1919_v28, 0.0  ;;  %v5796_v28 = vld [vmem:[#allocation21_spill] sm:$0xff] }
 0x3d3   : > { %v1921_v45 = vpop.f32.mrf.mxu0  ;;  %3802 = vmatmul.mubr.bf16.gmra.mxu1 %v1978_v4  ;;  %v5795_v4 = vld [vmem:[#allocation18_spill] sm:$0xff] }
 0x3d4   : > { %v1922_v39 = vadd.f32 %v5172_v5, %v1921_v45  ;;  %v1964_v19 = vmax.f32 %v1930_v48, 0.0  ;;  %v408_v5 = vsub.s32 3, %v5794_v6  ;;  %3864 = vmatpush3.bf16.msra.mxu1 %v4090_v62 }
 0x3d5   : > { %3865 = vmatprep.subr.bf16.mxu1 %v4091_v29 }
 0x3d6   : > { %v1962_v22 = vmax.f32 %v1922_v39, 0.0  ;;  %v1980_v60 = vpack.c.bf16 %v1964_v19, %v1963_v54  ;;  %v5228_v26 = vrot.slane %v4103_v40, %v408_v5  ;;  %v5797_v39 = vld [vmem:[#allocation20_spill] sm:$0xff] }
 0x3d8   : > { %v1979_v43 = vpack.c.bf16 %v1962_v22, %v1961_v9  ;;  %3866 = vmatpush3.bf16.msra.mxu1 %v4091_v29  ;;  %v839_v1 = vadd.f32 %v5795_v4, %v5228_v26  ;;  %v853_v48 = vadd.f32 %v5796_v28, %v5228_v26  ;;  %v849_v19 = vadd.f32 %v5797_v39, %v5228_v26  ;;  %v5801_v28 = vld [vmem:[#allocation24_spill] sm:$0xff] }
 0x3da   : > { %3805 = vmatprep.mubr.bf16.mxu1 %v1979_v43 }
 0x3db   : > { %3806 = vmatmul.mubr.bf16.gmra.mxu1 %v1980_v60 }
 0x43b   : > { %v3779_v38 = vpop.f32.mrf.mxu1 }
 0x43c   : > { %v2097_v21 = vadd.f32 %v3779_v38, %v5222_v11 }
 0x43d   : > { %v2088_v8 = vpop.f32.mrf.mxu1 }
 0x43e   : > { %v2089_v41 = vadd.f32 %v5222_v11, %v2088_v8  ;;  %v2217_v44 = vadd.f32 %v2097_v21, %v4953_v57 }
 0x43f   : > { %v3780_v31 = vpop.f32.mrf.mxu1 }
 0x440   : > { %v2215_v53 = vadd.f32 %v2089_v41, %v4948_v42  ;;  %v2100_v61 = vadd.f32 %v3780_v31, %v5222_v11  ;;  %v5798_v42 = vld [vmem:[#allocation19_spill] sm:$0xff]  ;;  %v5249_v43 = vadd.f32 %v2217_v44, %v849_v19  ;;  %v5800_v44 = vld [vmem:[#allocation25_spill] sm:$0xff] }
 0x441   : > { %v2091_v13 = vpop.f32.mrf.mxu1  ;;  %v843_v9 = vadd.f32 %v5798_v42, %v5228_v26 }
 0x442   : > { %v2218_v49 = vadd.f32 %v2100_v61, %v4950_v15  ;;  %v2092_v45 = vadd.f32 %v5222_v11, %v2091_v13  ;;  %v5244_v22 = vadd.f32 %v2215_v53, %v839_v1  ;;  %v2281_v17 = vmax.f32 %v5249_v43, 0.0  ;;  %v5799_v53 = vld [vmem:[#allocation22_spill] sm:$0xff] }
 0x443   : > { %v859_v61 = vadd.f32 %v5799_v53, %v5228_v26  ;;  %v873_v13 = vadd.f32 %v5800_v44, %v5228_v26  ;;  %v5805_v44 = vld [vmem:[#allocation28_spill] sm:$0xff] }
 0x444   : > { %v5246_v57 = vadd.f32 %v2218_v49, %v853_v48  ;;  %v2216_v54 = vadd.f32 %v2092_v45, %v4955_v33  ;;  %v2279_v51 = vmax.f32 %v5244_v22, 0.0  ;;  %v869_v48 = vadd.f32 %v5801_v28, %v5228_v26 }
 0x446   : > { %v5251_v60 = vadd.f32 %v2216_v54, %v843_v9  ;;  %v2282_v15 = vmax.f32 %v5246_v57, 0.0 }
 0x448   : > { %v2280_v35 = vmax.f32 %v5251_v60, 0.0  ;;  %v2312_v6 = vpack.c.bf16 %v2282_v15, %v2281_v17 }
 0x44a   : > { %v2311_v62 = vpack.c.bf16 %v2280_v35, %v2279_v51 }
 0x44b   : > { %v3783_v5 = vpop.f32.mrf.mxu1 }
 0x44c   : > { %3825 = vmatprep.mubr.bf16.mxu0 %v2311_v62  ;;  %v2113_v29 = vadd.f32 %v3783_v5, %v5222_v11 }
 0x44d   : > { %v2104_v38 = vpop.f32.mrf.mxu1  ;;  %3826 = vmatmul.mubr.bf16.vlgmr.msra.gmra.mxu0 %v2312_v6 }
 0x44e   : > { %v2105_v33 = vadd.f32 %v5222_v11, %v2104_v38  ;;  %v2221_v41 = vadd.f32 %v2113_v29, %v4981_v55 }
 0x44f   : > { %v3784_v21 = vpop.f32.mrf.mxu1 }
 0x450   : > { %v2219_v8 = vadd.f32 %v2105_v33, %v4976_v12  ;;  %v2116_v40 = vadd.f32 %v3784_v21, %v5222_v11  ;;  %v5802_v12 = vld [vmem:[#allocation23_spill] sm:$0xff]  ;;  %v5277_v19 = vadd.f32 %v2221_v41, %v869_v48  ;;  %v5804_v41 = vld [vmem:[#allocation29_spill] sm:$0xff] }
 0x451   : > { %v2107_v31 = vpop.f32.mrf.mxu1  ;;  %v863_v49 = vadd.f32 %v5802_v12, %v5228_v26 }
 0x452   : > { %v2222_v4 = vadd.f32 %v2116_v40, %v4978_v50  ;;  %v2108_v1 = vadd.f32 %v5222_v11, %v2107_v31  ;;  %v5272_v45 = vadd.f32 %v2219_v8, %v859_v61  ;;  %v2285_v15 = vmax.f32 %v5277_v19, 0.0  ;;  %v5803_v8 = vld [vmem:[#allocation26_spill] sm:$0xff] }
 0x453   : > { %v879_v40 = vadd.f32 %v5803_v8, %v5228_v26  ;;  %v893_v31 = vadd.f32 %v5804_v41, %v5228_v26  ;;  %v5809_v41 = vld [vmem:[#allocation32_spill] sm:$0xff] }
 0x454   : > { %v5274_v55 = vadd.f32 %v2222_v4, %v873_v13  ;;  %v2220_v39 = vadd.f32 %v2108_v1, %v4983_v36  ;;  %v2283_v9 = vmax.f32 %v5272_v45, 0.0  ;;  %v889_v13 = vadd.f32 %v5805_v44, %v5228_v26 }
 0x456   : > { %v5279_v42 = vadd.f32 %v2220_v39, %v863_v49  ;;  %v2286_v50 = vmax.f32 %v5274_v55, 0.0 }
 0x458   : > { %v2284_v54 = vmax.f32 %v5279_v42, 0.0  ;;  %v2314_v17 = vpack.c.bf16 %v2286_v50, %v2285_v15 }
 0x45a   : > { %v2313_v51 = vpack.c.bf16 %v2284_v54, %v2283_v9 }
 0x45b   : > { %v3787_v35 = vpop.f32.mrf.mxu1 }
 0x45c   : > { %3829 = vmatprep.mubr.bf16.mxu0 %v2313_v51  ;;  %v2129_v62 = vadd.f32 %v3787_v35, %v5222_v11 }
 0x45d   : > { %v2120_v6 = vpop.f32.mrf.mxu1  ;;  %3830 = vmatmul.mubr.bf16.gmra.mxu0 %v2314_v17 }
 0x45e   : > { %v2121_v36 = vadd.f32 %v5222_v11, %v2120_v6  ;;  %v2225_v33 = vadd.f32 %v2129_v62, %v5009_v16 }
 0x45f   : > { %v3788_v5 = vpop.f32.mrf.mxu1 }
 0x460   : > { %v2223_v29 = vadd.f32 %v2121_v36, %v5004_v30  ;;  %v2132_v38 = vadd.f32 %v3788_v5, %v5222_v11  ;;  %v5806_v30 = vld [vmem:[#allocation27_spill] sm:$0xff]  ;;  %v5305_v48 = vadd.f32 %v2225_v33, %v889_v13  ;;  %v5808_v33 = vld [vmem:[#allocation33_spill] sm:$0xff] }
 0x461   : > { %v2123_v21 = vpop.f32.mrf.mxu1  ;;  %v883_v4 = vadd.f32 %v5806_v30, %v5228_v26 }
 0x462   : > { %v2226_v53 = vadd.f32 %v2132_v38, %v5006_v24  ;;  %v2124_v61 = vadd.f32 %v5222_v11, %v2123_v21  ;;  %v5300_v1 = vadd.f32 %v2223_v29, %v879_v40  ;;  %v2289_v50 = vmax.f32 %v5305_v48, 0.0  ;;  %v5807_v29 = vld [vmem:[#allocation30_spill] sm:$0xff] }
 0x463   : > { %v899_v38 = vadd.f32 %v5807_v29, %v5228_v26  ;;  %v913_v21 = vadd.f32 %v5808_v33, %v5228_v26  ;;  %v5813_v33 = vld [vmem:[#allocation36_spill] sm:$0xff] }
 0x464   : > { %v5302_v16 = vadd.f32 %v2226_v53, %v893_v31  ;;  %v2224_v28 = vadd.f32 %v2124_v61, %v5011_v7  ;;  %v2287_v49 = vmax.f32 %v5300_v1, 0.0  ;;  %v909_v31 = vadd.f32 %v5809_v41, %v5228_v26 }
 0x466   : > { %v5307_v12 = vadd.f32 %v2224_v28, %v883_v4  ;;  %v2290_v24 = vmax.f32 %v5302_v16, 0.0 }
 0x468   : > { %v2288_v39 = vmax.f32 %v5307_v12, 0.0  ;;  %v2316_v15 = vpack.c.bf16 %v2290_v24, %v2289_v50 }
 0x46a   : > { %v2315_v9 = vpack.c.bf16 %v2288_v39, %v2287_v49 }
 0x46b   : > { %v3791_v54 = vpop.f32.mrf.mxu1 }
 0x46c   : > { %3833 = vmatprep.mubr.bf16.mxu0 %v2315_v9  ;;  %v2145_v51 = vadd.f32 %v3791_v54, %v5222_v11 }
 0x46d   : > { %v2136_v35 = vpop.f32.mrf.mxu1  ;;  %3834 = vmatmul.mubr.bf16.gmra.mxu0 %v2316_v15 }
 0x46e   : > { %v2137_v7 = vadd.f32 %v5222_v11, %v2136_v35  ;;  %v2229_v36 = vadd.f32 %v2145_v51, %v5037_v25 }
 0x46f   : > { %v3792_v17 = vpop.f32.mrf.mxu1 }
 0x470   : > { %v2227_v62 = vadd.f32 %v2137_v7, %v5032_v20  ;;  %v2148_v6 = vadd.f32 %v3792_v17, %v5222_v11  ;;  %v5810_v20 = vld [vmem:[#allocation31_spill] sm:$0xff]  ;;  %v5333_v13 = vadd.f32 %v2229_v36, %v909_v31  ;;  %v5812_v36 = vld [vmem:[#allocation37_spill] sm:$0xff] }
 0x471   : > { %v2139_v5 = vpop.f32.mrf.mxu1  ;;  %v903_v53 = vadd.f32 %v5810_v20, %v5228_v26 }
 0x472   : > { %v2230_v8 = vadd.f32 %v2148_v6, %v5034_v2  ;;  %v2140_v40 = vadd.f32 %v5222_v11, %v2139_v5  ;;  %v5328_v61 = vadd.f32 %v2227_v62, %v899_v38  ;;  %v2293_v24 = vmax.f32 %v5333_v13, 0.0  ;;  %v5811_v62 = vld [vmem:[#allocation34_spill] sm:$0xff] }
 0x473   : > { %v919_v6 = vadd.f32 %v5811_v62, %v5228_v26  ;;  %v933_v5 = vadd.f32 %v5812_v36, %v5228_v26  ;;  %v5816_v36 = vld [vmem:[#allocation38_spill] sm:$0xff] }
 0x474   : > { %v5330_v25 = vadd.f32 %v2230_v8, %v913_v21  ;;  %v2228_v44 = vadd.f32 %v2140_v40, %v5039_v37  ;;  %v2291_v4 = vmax.f32 %v5328_v61, 0.0  ;;  %v929_v21 = vadd.f32 %v5813_v33, %v5228_v26 }
 0x476   : > { %v5335_v30 = vadd.f32 %v2228_v44, %v903_v53  ;;  %v2294_v2 = vmax.f32 %v5330_v25, 0.0 }
 0x478   : > { %v2292_v28 = vmax.f32 %v5335_v30, 0.0  ;;  %v2318_v50 = vpack.c.bf16 %v2294_v2, %v2293_v24 }
 0x47a   : > { %v2317_v49 = vpack.c.bf16 %v2292_v28, %v2291_v4 }
 0x47b   : > { %v3795_v39 = vpop.f32.mrf.mxu1 }
 0x47c   : > { %3837 = vmatprep.mubr.bf16.mxu0 %v2317_v49  ;;  %v2161_v9 = vadd.f32 %v3795_v39, %v5222_v11 }
 0x47d   : > { %v2152_v54 = vpop.f32.mrf.mxu1  ;;  %3838 = vmatmul.mubr.bf16.gmra.mxu0 %v2318_v50  ;;  %v4092_v50 = vld [vmem:[#allocation2 + $0x90] sm:$0xff]  }
 0x47e   : > { %v2153_v37 = vadd.f32 %v5222_v11, %v2152_v54  ;;  %v2233_v7 = vadd.f32 %v2161_v9, %v5065_v63  ;;  %3867 = vmatprep.subr.bf16.mxu1 %v4092_v50 }
 0x47f   : > { %v3796_v15 = vpop.f32.mrf.mxu1  ;;  %3868 = vmatpush3.bf16.msra.mxu1 %v4092_v50 }
 0x480   : > { %v2231_v51 = vadd.f32 %v2153_v37, %v5060_v34  ;;  %v2164_v35 = vadd.f32 %v3796_v15, %v5222_v11  ;;  %v5814_v34 = vld [vmem:[#allocation35_spill] sm:$0xff]  ;;  %v5361_v31 = vadd.f32 %v2233_v7, %v929_v21 }
 0x481   : > { %v2155_v17 = vpop.f32.mrf.mxu1  ;;  %v923_v8 = vadd.f32 %v5814_v34, %v5228_v26 }
 0x482   : > { %v2234_v29 = vadd.f32 %v2164_v35, %v5062_v58  ;;  %v2156_v38 = vadd.f32 %v5222_v11, %v2155_v17  ;;  %v5356_v40 = vadd.f32 %v2231_v51, %v919_v6  ;;  %v2297_v2 = vmax.f32 %v5361_v31, 0.0  ;;  %v5815_v51 = vld [vmem:[#allocation41_spill] sm:$0xff] }
 0x483   : > { %v953_v35 = vadd.f32 %v5815_v51, %v5228_v26  ;;  %v4093_v6 = vld [vmem:[#allocation2 + $0x88] sm:$0xff]  }
 0x484   : > { %v5358_v63 = vadd.f32 %v2234_v29, %v933_v5  ;;  %v2232_v41 = vadd.f32 %v2156_v38, %v5067_v14  ;;  %v2295_v53 = vmax.f32 %v5356_v40, 0.0  ;;  %v939_v5 = vadd.f32 %v5816_v36, %v5228_v26  ;;  %v5817_v38 = vld [vmem:[#allocation39_spill] sm:$0xff]  ;;  %3869 = vmatprep.subr.bf16.mxu1 %v4093_v6  ;;  %v5822_v36 = vld [vmem:[#allocation46_spill] sm:$0xff] }
 0x485   : > { %v943_v33 = vadd.f32 %v5817_v38, %v5228_v26  ;;  %3870 = vmatpush3.bf16.msra.mxu1 %v4093_v6 }
 0x486   : > { %v5363_v20 = vadd.f32 %v2232_v41, %v923_v8  ;;  %v2298_v58 = vmax.f32 %v5358_v63, 0.0 }
 0x488   : > { %v2296_v44 = vmax.f32 %v5363_v20, 0.0  ;;  %v2320_v24 = vpack.c.bf16 %v2298_v58, %v2297_v2  ;;  %v4094_v2 = vld [vmem:[#allocation2 + $0x80] sm:$0xff]  }
 0x489   : > { %3871 = vmatprep.subr.bf16.mxu1 %v4094_v2 }
 0x48a   : > { %v2319_v4 = vpack.c.bf16 %v2296_v44, %v2295_v53  ;;  %3872 = vmatpush3.bf16.msra.mxu1 %v4094_v2 }
 0x48b   : > { %v3799_v28 = vpop.f32.mrf.mxu1 }
 0x48c   : > { %3841 = vmatprep.mubr.bf16.mxu0 %v2319_v4  ;;  %v2177_v14 = vadd.f32 %v3799_v28, %v5222_v11 }
 0x48d   : > { %v2168_v49 = vpop.f32.mrf.mxu1  ;;  %3842 = vmatmul.mubr.bf16.gmra.mxu0 %v2320_v24 }
 0x48e   : > { %v2169_v39 = vadd.f32 %v5222_v11, %v2168_v49  ;;  %v2237_v7 = vadd.f32 %v2177_v14, %v5093_v47  ;;  %v5819_v49 = vld [vmem:[#allocation47_spill] sm:$0xff] }
 0x48f   : > { %v3800_v9 = vpop.f32.mrf.mxu1  ;;  %v973_v14 = vadd.f32 %v5819_v49, %v5228_v26 }
 0x490   : > { %v2180_v54 = vadd.f32 %v3800_v9, %v5222_v11  ;;  %v2235_v37 = vadd.f32 %v2169_v39, %v5088_v46  ;;  %v5818_v46 = vld [vmem:[#allocation40_spill] sm:$0xff] }
 0x491   : > { %v2171_v15 = vpop.f32.mrf.mxu1  ;;  %v949_v21 = vadd.f32 %v5818_v46, %v5228_v26 }
 0x492   : > { %v2238_v17 = vadd.f32 %v2180_v54, %v5090_v18  ;;  %v2172_v62 = vadd.f32 %v5222_v11, %v2171_v15  ;;  %v5387_v47 = vadd.f32 %v2235_v37, %v939_v5  ;;  %v969_v5 = vadd.f32 %v5822_v36, %v5228_v26 }
 0x493   : > { %v3803_v29 = vpop.f32.mrf.mxu1  ;;  %v5389_v41 = vadd.f32 %v2237_v7, %v949_v21 }
 0x494   : > { %v5384_v34 = vadd.f32 %v2238_v17, %v953_v35  ;;  %v2236_v8 = vadd.f32 %v2172_v62, %v5096_v0  ;;  %v2193_v53 = vadd.f32 %v3803_v29, %v5222_v11  ;;  %v2299_v9 = vmax.f32 %v5387_v47, 0.0  ;;  %v5820_v35 = vld [vmem:[#allocation42_spill] sm:$0xff]  ;;  %v5821_v17 = vld [vmem:[#allocation44_spill] sm:$0xff] }
 0x495   : > { %v2184_v18 = vpop.f32.mrf.mxu1  ;;  %v2301_v54 = vmax.f32 %v5389_v41, 0.0  ;;  %v959_v7 = vadd.f32 %v5820_v35, %v5228_v26  ;;  %v963_v62 = vadd.f32 %v5821_v17, %v5228_v26 }
 0x496   : > { %v5391_v58 = vadd.f32 %v2236_v8, %v943_v33  ;;  %v2185_v44 = vadd.f32 %v5222_v11, %v2184_v18  ;;  %v2302_v28 = vmax.f32 %v5384_v34, 0.0  ;;  %v2241_v37 = vadd.f32 %v2193_v53, %v5121_v27 }
 0x497   : > { %v3804_v4 = vpop.f32.mrf.mxu1 }
 0x498   : > { %v2196_v24 = vadd.f32 %v3804_v4, %v5222_v11  ;;  %v2300_v0 = vmax.f32 %v5391_v58, 0.0  ;;  %v2239_v39 = vadd.f32 %v2185_v44, %v5116_v52  ;;  %v2322_v27 = vpack.c.bf16 %v2302_v28, %v2301_v54  ;;  %v5823_v28 = vld [vmem:[#allocation49_spill] sm:$0xff] }
 0x499   : > { %v2187_v50 = vpop.f32.mrf.mxu1  ;;  %v5417_v46 = vadd.f32 %v2241_v37, %v969_v5  ;;  %v5825_v37 = vld [vmem:[#allocation51_spill] sm:$0xff] }
 0x49a   : > { %v2242_v15 = vadd.f32 %v2196_v24, %v5118_v32  ;;  %v2188_v51 = vadd.f32 %v5222_v11, %v2187_v50  ;;  %v2321_v52 = vpack.c.bf16 %v2300_v0, %v2299_v9  ;;  %v5415_v33 = vadd.f32 %v2239_v39, %v959_v7  ;;  %v5824_v0 = vld [vmem:[#allocation55_spill] sm:$0xff] }
 0x49b   : > { %v3807_v6 = vpop.f32.mrf.mxu1  ;;  %v979_v24 = vadd.f32 %v5823_v28, %v5228_v26  ;;  %v993_v49 = vadd.f32 %v5824_v0, %v5228_v26  ;;  %v2305_v50 = vmax.f32 %v5417_v46, 0.0 }
 0x49c   : > { %v5412_v29 = vadd.f32 %v2242_v15, %v973_v14  ;;  %v2240_v38 = vadd.f32 %v2188_v51, %v5124_v10  ;;  %3845 = vmatprep.mubr.bf16.mxu0 %v2321_v52  ;;  %v2209_v8 = vadd.f32 %v3807_v6, %v5222_v11  ;;  %v2303_v39 = vmax.f32 %v5415_v33, 0.0  ;;  %v5826_v51 = vld [vmem:[#allocation53_spill] sm:$0xff] }
 0x49d   : > { %v2200_v32 = vpop.f32.mrf.mxu1  ;;  %3846 = vmatmul.mubr.bf16.gmra.mxu0 %v2322_v27  ;;  %v983_v15 = vadd.f32 %v5825_v37, %v5228_v26  ;;  %v989_v35 = vadd.f32 %v5826_v51, %v5228_v26 }
 0x49e   : > { %v5419_v21 = vadd.f32 %v2240_v38, %v963_v62  ;;  %v2201_v18 = vadd.f32 %v5222_v11, %v2200_v32  ;;  %v2306_v44 = vmax.f32 %v5412_v29, 0.0  ;;  %v2245_v9 = vadd.f32 %v2209_v8, %v5149_v56  ;;  %v4096_v32 = vld [vmem:[%s5715_s7 + $0x30] sm:$0xff]   ;;  %v4097_v8 = vld [vmem:[%s5715_s7 + $0x28] sm:$0xff]  }
 0x49f   : > { %v3808_v53 = vpop.f32.mrf.mxu1 }
 0x4a0   : > { %v2243_v2 = vadd.f32 %v2201_v18, %v5144_v23  ;;  %v2212_v10 = vadd.f32 %v3808_v53, %v5222_v11  ;;  %v2304_v4 = vmax.f32 %v5419_v21, 0.0  ;;  %v2324_v52 = vpack.c.bf16 %v2306_v44, %v2305_v50  ;;  %v4098_v18 = vld [vmem:[%s5715_s7 + $0x20] sm:$0xff]  }
 0x4a1   : > { %v2203_v14 = vpop.f32.mrf.mxu1  ;;  %v5445_v56 = vadd.f32 %v2245_v9, %v989_v35 }
 0x4a2   : > { %v2246_v54 = vadd.f32 %v2212_v10, %v5146_v3  ;;  %v2204_v23 = vadd.f32 %v5222_v11, %v2203_v14  ;;  %v2323_v7 = vpack.c.bf16 %v2304_v4, %v2303_v39  ;;  %v5440_v17 = vadd.f32 %v2243_v2, %v979_v24  ;;  %v5468_v2 = vld [vmem:[%s5712_s4 + $0x2] ss:$0 sm:$0xff] }
 0x4a3   : > { %v2309_v5 = vmax.f32 %v5445_v56, 0.0 }
 0x4a4   : > { %v5442_v62 = vadd.f32 %v2246_v54, %v993_v49  ;;  %v2244_v6 = vadd.f32 %v2204_v23, %v5151_v59  ;;  %3849 = vmatprep.mubr.bf16.mxu0 %v2323_v7  ;;  %v2307_v36 = vmax.f32 %v5440_v17, 0.0  ;;  %v4095_v59 = vld [vmem:[%s5715_s7 + $0x38] sm:$0xff]  }
 0x4a5   : > { %3850 = vmatmul.mubr.bf16.gmra.mxu0 %v2324_v52  ;;  %3905 = vmatprep.subr.bf16.mxu0 %v4095_v59 }
 0x4a6   : > { %v5447_v3 = vadd.f32 %v2244_v6, %v983_v15  ;;  %v2310_v11 = vmax.f32 %v5442_v62, 0.0  ;;  %3906 = vmatpush3.bf16.msra.mxu0 %v4095_v59 }
 0x4a7   : > { %3907 = vmatprep.subr.bf16.mxu0 %v4096_v32 }
 0x4a8   : > { %v2308_v26 = vmax.f32 %v5447_v3, 0.0  ;;  %v2326_v27 = vpack.c.bf16 %v2310_v11, %v2309_v5 }
 0x4aa   : > { %v2325_v38 = vpack.c.bf16 %v2308_v26, %v2307_v36  ;;  %3908 = vmatpush3.bf16.msra.mxu0 %v4096_v32 }
 0x4ab   : > { %3909 = vmatprep.subr.bf16.mxu0 %v4097_v8 }
 0x4ac   : > { %3853 = vmatprep.mubr.bf16.mxu0 %v2325_v38 }
 0x4ad   : > { %3854 = vmatmul.mubr.bf16.gmra.mxu0 %v2326_v27 }
 0x4ae   : > { %3910 = vmatpush3.bf16.msra.mxu0 %v4097_v8 }
 0x4af   : > { %3911 = vmatprep.subr.bf16.mxu0 %v4098_v18 }
 0x4b2   : > { %3912 = vmatpush3.bf16.msra.mxu0 %v4098_v18 }
 0x50d   : > { %v3827_v53 = vpop.f32.mrf.mxu0 }
 0x50e   : > { %v2443_v24 = vadd.f32 %v3827_v53, %v5468_v2 }
 0x50f   : > { %v2434_v44 = vpop.f32.mrf.mxu0 }
 0x510   : > { %v2435_v4 = vadd.f32 %v5468_v2, %v2434_v44  ;;  %v2563_v9 = vmax.f32 %v2443_v24, 0.0 }
 0x511   : > { %v3828_v10 = vpop.f32.mrf.mxu0 }
 0x512   : > { %v2446_v28 = vadd.f32 %v3828_v10, %v5468_v2  ;;  %v2561_v39 = vmax.f32 %v2435_v4, 0.0 }
 0x513   : > { %v2437_v0 = vpop.f32.mrf.mxu0 }
 0x514   : > { %v2438_v49 = vadd.f32 %v5468_v2, %v2437_v0  ;;  %v2564_v14 = vmax.f32 %v2446_v28, 0.0 }
 0x516   : > { %v2562_v50 = vmax.f32 %v2438_v49, 0.0  ;;  %v2594_v23 = vpack.c.bf16 %v2564_v14, %v2563_v9 }
 0x518   : > { %v2593_v54 = vpack.c.bf16 %v2562_v50, %v2561_v39 }
 0x51a   : > { %3873 = vmatprep.mubr.bf16.mxu1 %v2593_v54 }
 0x51b   : > { %3874 = vmatmul.mubr.bf16.vlgmr.msra.gmra.mxu1 %v2594_v23 }
 0x51d   : > { %v3831_v37 = vpop.f32.mrf.mxu0 }
 0x51e   : > { %v2459_v6 = vadd.f32 %v3831_v37, %v5468_v2 }
 0x51f   : > { %v2450_v15 = vpop.f32.mrf.mxu0 }
 0x520   : > { %v2451_v35 = vadd.f32 %v5468_v2, %v2450_v15  ;;  %v2567_v38 = vmax.f32 %v2459_v6, 0.0 }
 0x521   : > { %v3832_v51 = vpop.f32.mrf.mxu0 }
 0x522   : > { %v2462_v7 = vadd.f32 %v3832_v51, %v5468_v2  ;;  %v2565_v26 = vmax.f32 %v2451_v35, 0.0 }
 0x523   : > { %v2453_v52 = vpop.f32.mrf.mxu0 }
 0x524   : > { %v2454_v11 = vadd.f32 %v5468_v2, %v2453_v52  ;;  %v2568_v36 = vmax.f32 %v2462_v7, 0.0 }
 0x526   : > { %v2566_v5 = vmax.f32 %v2454_v11, 0.0  ;;  %v2596_v59 = vpack.c.bf16 %v2568_v36, %v2567_v38 }
 0x528   : > { %v2595_v27 = vpack.c.bf16 %v2566_v5, %v2565_v26 }
 0x52a   : > { %3877 = vmatprep.mubr.bf16.mxu1 %v2595_v27 }
 0x52b   : > { %3878 = vmatmul.mubr.bf16.gmra.mxu1 %v2596_v59 }
 0x52d   : > { %v3835_v32 = vpop.f32.mrf.mxu0 }
 0x52e   : > { %v2475_v10 = vadd.f32 %v3835_v32, %v5468_v2 }
 0x52f   : > { %v2466_v8 = vpop.f32.mrf.mxu0 }
 0x530   : > { %v2467_v53 = vadd.f32 %v5468_v2, %v2466_v8  ;;  %v2571_v14 = vmax.f32 %v2475_v10, 0.0 }
 0x531   : > { %v3836_v18 = vpop.f32.mrf.mxu0 }
 0x532   : > { %v2478_v44 = vadd.f32 %v3836_v18, %v5468_v2  ;;  %v2569_v0 = vmax.f32 %v2467_v53, 0.0 }
 0x533   : > { %v2469_v4 = vpop.f32.mrf.mxu0 }
 0x534   : > { %v2470_v28 = vadd.f32 %v5468_v2, %v2469_v4  ;;  %v2572_v24 = vmax.f32 %v2478_v44, 0.0 }
 0x536   : > { %v2570_v49 = vmax.f32 %v2470_v28, 0.0  ;;  %v2598_v50 = vpack.c.bf16 %v2572_v24, %v2571_v14  ;;  %v4099_v14 = vld [vmem:[%s5715_s7 + $0x18] sm:$0xff]  }
 0x537   : > { %3913 = vmatprep.subr.bf16.mxu0 %v4099_v14 }
 0x538   : > { %v2597_v39 = vpack.c.bf16 %v2570_v49, %v2569_v0  ;;  %3914 = vmatpush3.bf16.msra.mxu0 %v4099_v14 }
 0x53a   : > { %3881 = vmatprep.mubr.bf16.mxu1 %v2597_v39 }
 0x53b   : > { %3882 = vmatmul.mubr.bf16.gmra.mxu1 %v2598_v50  ;;  %v4100_v50 = vld [vmem:[%s5715_s7 + $0x10] sm:$0xff]  }
 0x53c   : > { %3915 = vmatprep.subr.bf16.mxu0 %v4100_v50 }
 0x53d   : > { %v3839_v9 = vpop.f32.mrf.mxu0  ;;  %3916 = vmatpush3.bf16.msra.mxu0 %v4100_v50 }
 0x53e   : > { %v2491_v51 = vadd.f32 %v3839_v9, %v5468_v2 }
 0x53f   : > { %v2482_v54 = vpop.f32.mrf.mxu0 }
 0x540   : > { %v2483_v37 = vadd.f32 %v5468_v2, %v2482_v54  ;;  %v2575_v36 = vmax.f32 %v2491_v51, 0.0 }
 0x541   : > { %v3840_v23 = vpop.f32.mrf.mxu0 }
 0x542   : > { %v2494_v15 = vadd.f32 %v3840_v23, %v5468_v2  ;;  %v2573_v52 = vmax.f32 %v2483_v37, 0.0  ;;  %v4101_v23 = vld [vmem:[%s5715_s7 + $0x8] sm:$0xff]  }
 0x543   : > { %v2485_v35 = vpop.f32.mrf.mxu0  ;;  %3917 = vmatprep.subr.bf16.mxu0 %v4101_v23 }
 0x544   : > { %v2486_v7 = vadd.f32 %v5468_v2, %v2485_v35  ;;  %v2576_v6 = vmax.f32 %v2494_v15, 0.0  ;;  %3918 = vmatpush3.bf16.msra.mxu0 %v4101_v23 }
 0x546   : > { %v2574_v11 = vmax.f32 %v2486_v7, 0.0  ;;  %v2600_v5 = vpack.c.bf16 %v2576_v6, %v2575_v36 }
 0x548   : > { %v2599_v26 = vpack.c.bf16 %v2574_v11, %v2573_v52  ;;  %v4102_v11 = vld [vmem:[%s5715_s7] sm:$0xff]  }
 0x549   : > { %3919 = vmatprep.subr.bf16.mxu0 %v4102_v11 }
 0x54a   : > { %3885 = vmatprep.mubr.bf16.mxu1 %v2599_v26  ;;  %3920 = vmatpush3.bf16.msra.mxu0 %v4102_v11 }
 0x54b   : > { %3886 = vmatmul.mubr.bf16.gmra.mxu1 %v2600_v5 }
 0x54d   : > { %v3843_v38 = vpop.f32.mrf.mxu0 }
 0x54e   : > { %v2507_v18 = vadd.f32 %v3843_v38, %v5468_v2 }
 0x54f   : > { %v2498_v27 = vpop.f32.mrf.mxu0 }
 0x550   : > { %v2499_v32 = vadd.f32 %v5468_v2, %v2498_v27  ;;  %v2579_v24 = vmax.f32 %v2507_v18, 0.0 }
 0x551   : > { %v3844_v59 = vpop.f32.mrf.mxu0 }
 0x552   : > { %v2510_v8 = vadd.f32 %v3844_v59, %v5468_v2  ;;  %v2577_v4 = vmax.f32 %v2499_v32, 0.0 }
 0x553   : > { %v2501_v53 = vpop.f32.mrf.mxu0 }
 0x554   : > { %v2502_v44 = vadd.f32 %v5468_v2, %v2501_v53  ;;  %v2580_v10 = vmax.f32 %v2510_v8, 0.0 }
 0x556   : > { %v2578_v28 = vmax.f32 %v2502_v44, 0.0  ;;  %v2602_v49 = vpack.c.bf16 %v2580_v10, %v2579_v24 }
 0x558   : > { %v2601_v0 = vpack.c.bf16 %v2578_v28, %v2577_v4 }
 0x55a   : > { %3889 = vmatprep.mubr.bf16.mxu1 %v2601_v0 }
 0x55b   : > { %3890 = vmatmul.mubr.bf16.gmra.mxu1 %v2602_v49 }
 0x55d   : > { %v3847_v39 = vpop.f32.mrf.mxu0 }
 0x55e   : > { %v2523_v51 = vadd.f32 %v3847_v39, %v5468_v2 }
 0x55f   : > { %v2514_v9 = vpop.f32.mrf.mxu0 }
 0x560   : > { %v2515_v37 = vadd.f32 %v5468_v2, %v2514_v9  ;;  %v2583_v5 = vmax.f32 %v2523_v51, 0.0 }
 0x561   : > { %v3848_v54 = vpop.f32.mrf.mxu0 }
 0x562   : > { %v2526_v15 = vadd.f32 %v3848_v54, %v5468_v2  ;;  %v2581_v36 = vmax.f32 %v2515_v37, 0.0 }
 0x563   : > { %v2517_v35 = vpop.f32.mrf.mxu0 }
 0x564   : > { %v2518_v7 = vadd.f32 %v5468_v2, %v2517_v35  ;;  %v2584_v6 = vmax.f32 %v2526_v15, 0.0 }
 0x565   : > { %v3851_v52 = vpop.f32.mrf.mxu0 }
 0x566   : > { %v2582_v26 = vmax.f32 %v2518_v7, 0.0  ;;  %v2604_v59 = vpack.c.bf16 %v2584_v6, %v2583_v5  ;;  %v2539_v53 = vadd.f32 %v3851_v52, %v5468_v2  ;;  %v5517_v5 = vld [vmem:[%s5714_s6 + $0x2] ss:$0 sm:$0xff] }
 0x567   : > { %v2530_v38 = vpop.f32.mrf.mxu0 }
 0x568   : > { %v2603_v27 = vpack.c.bf16 %v2582_v26, %v2581_v36  ;;  %v2531_v8 = vadd.f32 %v5468_v2, %v2530_v38  ;;  %v2587_v49 = vmax.f32 %v2539_v53, 0.0 }
 0x569   : > { %v3852_v32 = vpop.f32.mrf.mxu0 }
 0x56a   : > { %v2542_v18 = vadd.f32 %v3852_v32, %v5468_v2  ;;  %3893 = vmatprep.mubr.bf16.mxu1 %v2603_v27  ;;  %v2585_v24 = vmax.f32 %v2531_v8, 0.0 }
 0x56b   : > { %v2533_v44 = vpop.f32.mrf.mxu0  ;;  %3894 = vmatmul.mubr.bf16.gmra.mxu1 %v2604_v59 }
 0x56c   : > { %v2534_v10 = vadd.f32 %v5468_v2, %v2533_v44  ;;  %v2588_v4 = vmax.f32 %v2542_v18, 0.0 }
 0x56d   : > { %v3855_v28 = vpop.f32.mrf.mxu0 }
 0x56e   : > { %v2586_v0 = vmax.f32 %v2534_v10, 0.0  ;;  %v2606_v50 = vpack.c.bf16 %v2588_v4, %v2587_v49  ;;  %v2555_v37 = vadd.f32 %v3855_v28, %v5468_v2 }
 0x56f   : > { %v2546_v14 = vpop.f32.mrf.mxu0 }
 0x570   : > { %v2605_v39 = vpack.c.bf16 %v2586_v0, %v2585_v24  ;;  %v2547_v54 = vadd.f32 %v5468_v2, %v2546_v14  ;;  %v2591_v52 = vmax.f32 %v2555_v37, 0.0 }
 0x571   : > { %v3856_v9 = vpop.f32.mrf.mxu0 }
 0x572   : > { %v2558_v23 = vadd.f32 %v3856_v9, %v5468_v2  ;;  %3897 = vmatprep.mubr.bf16.mxu1 %v2605_v39  ;;  %v2589_v7 = vmax.f32 %v2547_v54, 0.0 }
 0x573   : > { %v2549_v15 = vpop.f32.mrf.mxu0  ;;  %3898 = vmatmul.mubr.bf16.gmra.mxu1 %v2606_v50 }
 0x574   : > { %v2550_v51 = vadd.f32 %v5468_v2, %v2549_v15  ;;  %v2592_v35 = vmax.f32 %v2558_v23, 0.0 }
 0x576   : > { %v2590_v6 = vmax.f32 %v2550_v51, 0.0  ;;  %v2608_v36 = vpack.c.bf16 %v2592_v35, %v2591_v52 }
 0x578   : > { %v2607_v11 = vpack.c.bf16 %v2590_v6, %v2589_v7 }
 0x57a   : > { %3901 = vmatprep.mubr.bf16.mxu1 %v2607_v11 }
 0x57b   : > { %3902 = vmatmul.mubr.bf16.gmra.mxu1 %v2608_v36 }
 0x5db   : > { %v3875_v26 = vpop.f32.mrf.mxu1 }
 0x5dc   : > { %v2725_v59 = vadd.f32 %v3875_v26, %v5517_v5 }
 0x5dd   : > { %v2716_v38 = vpop.f32.mrf.mxu1 }
 0x5de   : > { %v2717_v27 = vadd.f32 %v5517_v5, %v2716_v38  ;;  %v2845_v10 = vadd.f32 %v2725_v59, %v5249_v43 }
 0x5df   : > { %v3876_v2 = vpop.f32.mrf.mxu1 }
 0x5e0   : > { %v2728_v32 = vadd.f32 %v3876_v2, %v5517_v5  ;;  %v2843_v18 = vadd.f32 %v2717_v27, %v5244_v22  ;;  %v2877_v49 = vmax.f32 %v2845_v10, 0.0 }
 0x5e1   : > { %v2719_v8 = vpop.f32.mrf.mxu1 }
 0x5e2   : > { %v2846_v53 = vadd.f32 %v2728_v32, %v5246_v57  ;;  %v2720_v44 = vadd.f32 %v5517_v5, %v2719_v8  ;;  %v2875_v24 = vmax.f32 %v2843_v18, 0.0 }
 0x5e4   : > { %v2844_v4 = vadd.f32 %v2720_v44, %v5251_v60  ;;  %v2878_v28 = vmax.f32 %v2846_v53, 0.0 }
 0x5e6   : > { %v2876_v0 = vmax.f32 %v2844_v4, 0.0  ;;  %v2908_v39 = vpack.c.bf16 %v2878_v28, %v2877_v49 }
 0x5e8   : > { %v2907_v14 = vpack.c.bf16 %v2876_v0, %v2875_v24 }
 0x5ea   : > { %3921 = vmatprep.mubr.bf16.mxu0 %v2907_v14 }
 0x5eb   : > { %v3879_v50 = vpop.f32.mrf.mxu1  ;;  %3922 = vmatmul.mubr.bf16.vlgmr.msra.gmra.mxu0 %v2908_v39 }
 0x5ec   : > { %v2741_v57 = vadd.f32 %v3879_v50, %v5517_v5 }
 0x5ed   : > { %v2732_v9 = vpop.f32.mrf.mxu1 }
 0x5ee   : > { %v2733_v22 = vadd.f32 %v5517_v5, %v2732_v9  ;;  %v2849_v51 = vadd.f32 %v2741_v57, %v5277_v19 }
 0x5ef   : > { %v3880_v54 = vpop.f32.mrf.mxu1 }
 0x5f0   : > { %v2744_v23 = vadd.f32 %v3880_v54, %v5517_v5  ;;  %v2847_v60 = vadd.f32 %v2733_v22, %v5272_v45  ;;  %v2881_v11 = vmax.f32 %v2849_v51, 0.0 }
 0x5f1   : > { %v2735_v43 = vpop.f32.mrf.mxu1 }
 0x5f2   : > { %v2850_v37 = vadd.f32 %v2744_v23, %v5274_v55  ;;  %v2736_v15 = vadd.f32 %v5517_v5, %v2735_v43  ;;  %v2879_v6 = vmax.f32 %v2847_v60, 0.0 }
 0x5f4   : > { %v2848_v35 = vadd.f32 %v2736_v15, %v5279_v42  ;;  %v2882_v7 = vmax.f32 %v2850_v37, 0.0 }
 0x5f6   : > { %v2880_v52 = vmax.f32 %v2848_v35, 0.0  ;;  %v2910_v26 = vpack.c.bf16 %v2882_v7, %v2881_v11 }
 0x5f8   : > { %v2909_v36 = vpack.c.bf16 %v2880_v52, %v2879_v6 }
 0x5fa   : > { %3925 = vmatprep.mubr.bf16.mxu0 %v2909_v36 }
 0x5fb   : > { %v3883_v38 = vpop.f32.mrf.mxu1  ;;  %3926 = vmatmul.mubr.bf16.gmra.mxu0 %v2910_v26 }
 0x5fc   : > { %v2757_v55 = vadd.f32 %v3883_v38, %v5517_v5 }
 0x5fd   : > { %v2748_v27 = vpop.f32.mrf.mxu1 }
 0x5fe   : > { %v2749_v45 = vadd.f32 %v5517_v5, %v2748_v27  ;;  %v2853_v18 = vadd.f32 %v2757_v55, %v5305_v48 }
 0x5ff   : > { %v3884_v59 = vpop.f32.mrf.mxu1 }
 0x600   : > { %v2760_v2 = vadd.f32 %v3884_v59, %v5517_v5  ;;  %v2851_v42 = vadd.f32 %v2749_v45, %v5300_v1  ;;  %v2885_v28 = vmax.f32 %v2853_v18, 0.0 }
 0x601   : > { %v2751_v19 = vpop.f32.mrf.mxu1 }
 0x602   : > { %v2854_v32 = vadd.f32 %v2760_v2, %v5302_v16  ;;  %v2752_v8 = vadd.f32 %v5517_v5, %v2751_v19  ;;  %v2883_v10 = vmax.f32 %v2851_v42, 0.0 }
 0x604   : > { %v2852_v53 = vadd.f32 %v2752_v8, %v5307_v12  ;;  %v2886_v44 = vmax.f32 %v2854_v32, 0.0 }
 0x606   : > { %v2884_v4 = vmax.f32 %v2852_v53, 0.0  ;;  %v2912_v0 = vpack.c.bf16 %v2886_v44, %v2885_v28 }
 0x608   : > { %v2911_v24 = vpack.c.bf16 %v2884_v4, %v2883_v10 }
 0x60a   : > { %3929 = vmatprep.mubr.bf16.mxu0 %v2911_v24 }
 0x60b   : > { %v3887_v49 = vpop.f32.mrf.mxu1  ;;  %3930 = vmatmul.mubr.bf16.gmra.mxu0 %v2912_v0 }
 0x60c   : > { %v2773_v16 = vadd.f32 %v3887_v49, %v5517_v5 }
 0x60d   : > { %v2764_v14 = vpop.f32.mrf.mxu1 }
 0x60e   : > { %v2765_v1 = vadd.f32 %v5517_v5, %v2764_v14  ;;  %v2857_v57 = vadd.f32 %v2773_v16, %v5333_v13 }
 0x60f   : > { %v3888_v39 = vpop.f32.mrf.mxu1 }
 0x610   : > { %v2776_v50 = vadd.f32 %v3888_v39, %v5517_v5  ;;  %v2855_v12 = vadd.f32 %v2765_v1, %v5328_v61  ;;  %v2889_v37 = vmax.f32 %v2857_v57, 0.0 }
 0x611   : > { %v2767_v48 = vpop.f32.mrf.mxu1 }
 0x612   : > { %v2858_v9 = vadd.f32 %v2776_v50, %v5330_v25  ;;  %v2768_v22 = vadd.f32 %v5517_v5, %v2767_v48  ;;  %v2887_v43 = vmax.f32 %v2855_v12, 0.0 }
 0x614   : > { %v2856_v54 = vadd.f32 %v2768_v22, %v5335_v30  ;;  %v2890_v23 = vmax.f32 %v2858_v9, 0.0 }
 0x616   : > { %v2888_v60 = vmax.f32 %v2856_v54, 0.0  ;;  %v2914_v51 = vpack.c.bf16 %v2890_v23, %v2889_v37 }
 0x618   : > { %v2913_v15 = vpack.c.bf16 %v2888_v60, %v2887_v43 }
 0x61a   : > { %3933 = vmatprep.mubr.bf16.mxu0 %v2913_v15 }
 0x61b   : > { %v3891_v35 = vpop.f32.mrf.mxu1  ;;  %3934 = vmatmul.mubr.bf16.gmra.mxu0 %v2914_v51 }
 0x61c   : > { %v2789_v25 = vadd.f32 %v3891_v35, %v5517_v5 }
 0x61d   : > { %v2780_v7 = vpop.f32.mrf.mxu1 }
 0x61e   : > { %v2781_v61 = vadd.f32 %v5517_v5, %v2780_v7  ;;  %v2861_v26 = vadd.f32 %v2789_v25, %v5361_v31 }
 0x61f   : > { %v3892_v6 = vpop.f32.mrf.mxu1 }
 0x620   : > { %v2792_v52 = vadd.f32 %v3892_v6, %v5517_v5  ;;  %v2859_v30 = vadd.f32 %v2781_v61, %v5356_v40  ;;  %v2893_v59 = vmax.f32 %v2861_v26, 0.0 }
 0x621   : > { %v2783_v13 = vpop.f32.mrf.mxu1 }
 0x622   : > { %v2862_v11 = vadd.f32 %v2792_v52, %v5358_v63  ;;  %v2784_v36 = vadd.f32 %v5517_v5, %v2783_v13  ;;  %v2891_v45 = vmax.f32 %v2859_v30, 0.0 }
 0x624   : > { %v2860_v38 = vadd.f32 %v2784_v36, %v5363_v20  ;;  %v2894_v27 = vmax.f32 %v2862_v11, 0.0 }
 0x626   : > { %v2892_v55 = vmax.f32 %v2860_v38, 0.0  ;;  %v2916_v19 = vpack.c.bf16 %v2894_v27, %v2893_v59 }
 0x628   : > { %v2915_v2 = vpack.c.bf16 %v2892_v55, %v2891_v45 }
 0x62a   : > { %3937 = vmatprep.mubr.bf16.mxu0 %v2915_v2 }
 0x62b   : > { %3938 = vmatmul.mubr.bf16.gmra.mxu0 %v2916_v19  ;;  %v3895_v42 = vpop.f32.mrf.mxu1 }
 0x62c   : > { %v2805_v63 = vadd.f32 %v3895_v42, %v5517_v5 }
 0x62d   : > { %v2796_v32 = vpop.f32.mrf.mxu1 }
 0x62e   : > { %v2797_v40 = vadd.f32 %v5517_v5, %v2796_v32  ;;  %v2865_v10 = vadd.f32 %v2805_v63, %v5389_v41 }
 0x62f   : > { %v3896_v8 = vpop.f32.mrf.mxu1 }
 0x630   : > { %v2808_v18 = vadd.f32 %v3896_v8, %v5517_v5  ;;  %v2863_v20 = vadd.f32 %v2797_v40, %v5387_v47  ;;  %v2897_v16 = vmax.f32 %v2865_v10, 0.0 }
 0x631   : > { %v2799_v31 = vpop.f32.mrf.mxu1 }
 0x632   : > { %v2866_v53 = vadd.f32 %v2808_v18, %v5384_v34  ;;  %v2800_v44 = vadd.f32 %v5517_v5, %v2799_v31  ;;  %v2895_v49 = vmax.f32 %v2863_v20, 0.0 }
 0x633   : > { %v3899_v4 = vpop.f32.mrf.mxu1 }
 0x634   : > { %v2864_v28 = vadd.f32 %v2800_v44, %v5391_v58  ;;  %v2898_v24 = vmax.f32 %v2866_v53, 0.0  ;;  %v2821_v39 = vadd.f32 %v3899_v4, %v5517_v5 }
 0x635   : > { %v2812_v0 = vpop.f32.mrf.mxu1 }
 0x636   : > { %v2896_v14 = vmax.f32 %v2864_v28, 0.0  ;;  %v2813_v1 = vadd.f32 %v5517_v5, %v2812_v0  ;;  %v2918_v48 = vpack.c.bf16 %v2898_v24, %v2897_v16  ;;  %v2869_v22 = vadd.f32 %v2821_v39, %v5417_v46 }
 0x637   : > { %v3900_v50 = vpop.f32.mrf.mxu1 }
 0x638   : > { %v2824_v47 = vadd.f32 %v3900_v50, %v5517_v5  ;;  %v2917_v34 = vpack.c.bf16 %v2896_v14, %v2895_v49  ;;  %v2867_v41 = vadd.f32 %v2813_v1, %v5415_v33  ;;  %v2901_v51 = vmax.f32 %v2869_v22, 0.0 }
 0x639   : > { %v2815_v12 = vpop.f32.mrf.mxu1 }
 0x63a   : > { %v2870_v9 = vadd.f32 %v2824_v47, %v5412_v29  ;;  %v2816_v58 = vadd.f32 %v5517_v5, %v2815_v12  ;;  %3941 = vmatprep.mubr.bf16.mxu0 %v2917_v34  ;;  %v2899_v60 = vmax.f32 %v2867_v41, 0.0 }
 0x63b   : > { %v3903_v57 = vpop.f32.mrf.mxu1  ;;  %3942 = vmatmul.mubr.bf16.gmra.mxu0 %v2918_v48 }
 0x63c   : > { %v2868_v54 = vadd.f32 %v2816_v58, %v5419_v21  ;;  %v2902_v23 = vmax.f32 %v2870_v9, 0.0  ;;  %v2837_v33 = vadd.f32 %v3903_v57, %v5517_v5 }
 0x63d   : > { %v2828_v43 = vpop.f32.mrf.mxu1 }
 0x63e   : > { %v2900_v37 = vmax.f32 %v2868_v54, 0.0  ;;  %v2829_v15 = vadd.f32 %v5517_v5, %v2828_v43  ;;  %v2920_v61 = vpack.c.bf16 %v2902_v23, %v2901_v51  ;;  %v2873_v52 = vadd.f32 %v2837_v33, %v5445_v56 }
 0x63f   : > { %v3904_v35 = vpop.f32.mrf.mxu1 }
 0x640   : > { %v2840_v29 = vadd.f32 %v3904_v35, %v5517_v5  ;;  %v2919_v7 = vpack.c.bf16 %v2900_v37, %v2899_v60  ;;  %v2871_v46 = vadd.f32 %v2829_v15, %v5440_v17  ;;  %v2905_v26 = vmax.f32 %v2873_v52, 0.0  ;;  %v5589_v17 = vld [vmem:[%s5716_s8] ss:$0 sm:$0xff] }
 0x641   : > { %v2831_v25 = vpop.f32.mrf.mxu1 }
 0x642   : > { %v2874_v21 = vadd.f32 %v2840_v29, %v5442_v62  ;;  %v2832_v6 = vadd.f32 %v5517_v5, %v2831_v25  ;;  %3945 = vmatprep.mubr.bf16.mxu0 %v2919_v7  ;;  %v2903_v11 = vmax.f32 %v2871_v46, 0.0 }
 0x643   : > { %3946 = vmatmul.mubr.bf16.gmra.mxu0 %v2920_v61 }
 0x644   : > { %v2872_v13 = vadd.f32 %v2832_v6, %v5447_v3  ;;  %v2906_v30 = vmax.f32 %v2874_v21, 0.0 }
 0x646   : > { %v2904_v36 = vmax.f32 %v2872_v13, 0.0  ;;  %v2922_v27 = vpack.c.bf16 %v2906_v30, %v2905_v26 }
 0x648   : > { %v2921_v38 = vpack.c.bf16 %v2904_v36, %v2903_v11 }
 0x64a   : > { %3949 = vmatprep.mubr.bf16.mxu0 %v2921_v38 }
 0x64b   : > { %3950 = vmatmul.mubr.bf16.gmra.mxu0 %v2922_v27 }
 0x6ab   : > { %v3923_v62 = vpop.f32.mrf.mxu0 }
 0x6ac   : > { %v3037_v56 = vadd.f32 %v3923_v62, %v5589_v17 }
 0x6ad   : > { %v3028_v3 = vpop.f32.mrf.mxu0 }
 0x6ae   : > { %3157 = vst [vmem:[%s5592_s16 + $0x10] sm:$0xff] %v3037_v56  ;;  %v3029_v5 = vadd.f32 %v5589_v17, %v3028_v3 }
 0x6af   : > { %v3924_v45 = vpop.f32.mrf.mxu0 }
 0x6b0   : > { %3155 = vst [vmem:[%s5592_s16] sm:$0xff] %v3029_v5  ;;  %v3040_v55 = vadd.f32 %v3924_v45, %v5589_v17 }
 0x6b1   : > { %v3031_v59 = vpop.f32.mrf.mxu0 }
 0x6b2   : > { %3158 = vst [vmem:[%s5592_s16 + $0x18] sm:$0xff] %v3040_v55  ;;  %v3032_v2 = vadd.f32 %v5589_v17, %v3031_v59 }
 0x6b4   : > { %3156 = vst [vmem:[%s5592_s16 + $0x8] sm:$0xff] %v3032_v2 }
 0x6bb   : > { %v3927_v19 = vpop.f32.mrf.mxu0 }
 0x6bc   : > { %v3053_v42 = vadd.f32 %v3927_v19, %v5589_v17 }
 0x6bd   : > { %v3044_v32 = vpop.f32.mrf.mxu0 }
 0x6be   : > { %3161 = vst [vmem:[%s5592_s16 + $0x30] sm:$0xff] %v3053_v42  ;;  %v3045_v40 = vadd.f32 %v5589_v17, %v3044_v32 }
 0x6bf   : > { %v3928_v63 = vpop.f32.mrf.mxu0 }
 0x6c0   : > { %3159 = vst [vmem:[%s5592_s16 + $0x20] sm:$0xff] %v3045_v40  ;;  %v3056_v8 = vadd.f32 %v3928_v63, %v5589_v17 }
 0x6c1   : > { %v3047_v18 = vpop.f32.mrf.mxu0 }
 0x6c2   : > { %3162 = vst [vmem:[%s5592_s16 + $0x38] sm:$0xff] %v3056_v8  ;;  %v3048_v31 = vadd.f32 %v5589_v17, %v3047_v18 }
 0x6c4   : > { %3160 = vst [vmem:[%s5592_s16 + $0x28] sm:$0xff] %v3048_v31 }
 0x6cb   : > { %v3931_v20 = vpop.f32.mrf.mxu0 }
 0x6cc   : > { %v3069_v53 = vadd.f32 %v3931_v20, %v5589_v17 }
 0x6cd   : > { %v3060_v44 = vpop.f32.mrf.mxu0 }
 0x6ce   : > { %3165 = vst [vmem:[%s5592_s16 + $0x50] sm:$0xff] %v3069_v53  ;;  %v3061_v10 = vadd.f32 %v5589_v17, %v3060_v44 }
 0x6cf   : > { %v3932_v4 = vpop.f32.mrf.mxu0 }
 0x6d0   : > { %3163 = vst [vmem:[%s5592_s16 + $0x40] sm:$0xff] %v3061_v10  ;;  %v3072_v28 = vadd.f32 %v3932_v4, %v5589_v17 }
 0x6d1   : > { %v3063_v24 = vpop.f32.mrf.mxu0 }
 0x6d2   : > { %3166 = vst [vmem:[%s5592_s16 + $0x58] sm:$0xff] %v3072_v28  ;;  %v3064_v0 = vadd.f32 %v5589_v17, %v3063_v24 }
 0x6d4   : > { %3164 = vst [vmem:[%s5592_s16 + $0x48] sm:$0xff] %v3064_v0 }
 0x6db   : > { %v3935_v49 = vpop.f32.mrf.mxu0 }
 0x6dc   : > { %v3085_v14 = vadd.f32 %v3935_v49, %v5589_v17 }
 0x6dd   : > { %v3076_v1 = vpop.f32.mrf.mxu0 }
 0x6de   : > { %3169 = vst [vmem:[%s5592_s16 + $0x70] sm:$0xff] %v3085_v14  ;;  %v3077_v16 = vadd.f32 %v5589_v17, %v3076_v1 }
 0x6df   : > { %v3936_v39 = vpop.f32.mrf.mxu0 }
 0x6e0   : > { %3167 = vst [vmem:[%s5592_s16 + $0x60] sm:$0xff] %v3077_v16  ;;  %v3088_v50 = vadd.f32 %v3936_v39, %v5589_v17 }
 0x6e1   : > { %v3079_v47 = vpop.f32.mrf.mxu0 }
 0x6e2   : > { %3170 = vst [vmem:[%s5592_s16 + $0x78] sm:$0xff] %v3088_v50  ;;  %v3080_v34 = vadd.f32 %v5589_v17, %v3079_v47 }
 0x6e4   : > { %3168 = vst [vmem:[%s5592_s16 + $0x68] sm:$0xff] %v3080_v34 }
 0x6eb   : > { %v3939_v48 = vpop.f32.mrf.mxu0 }
 0x6ec   : > { %v3101_v12 = vadd.f32 %v3939_v48, %v5589_v17 }
 0x6ed   : > { %v3092_v41 = vpop.f32.mrf.mxu0 }
 0x6ee   : > { %3173 = vst [vmem:[%s5592_s16 + $0x90] sm:$0xff] %v3101_v12  ;;  %v3093_v9 = vadd.f32 %v5589_v17, %v3092_v41 }
 0x6ef   : > { %v3940_v58 = vpop.f32.mrf.mxu0 }
 0x6f0   : > { %3171 = vst [vmem:[%s5592_s16 + $0x80] sm:$0xff] %v3093_v9  ;;  %v3104_v22 = vadd.f32 %v3940_v58, %v5589_v17 }
 0x6f1   : > { %v3095_v57 = vpop.f32.mrf.mxu0 }
 0x6f2   : > { %3174 = vst [vmem:[%s5592_s16 + $0x98] sm:$0xff] %v3104_v22  ;;  %v3096_v54 = vadd.f32 %v5589_v17, %v3095_v57 }
 0x6f4   : > { %3172 = vst [vmem:[%s5592_s16 + $0x88] sm:$0xff] %v3096_v54 }
 0x6fb   : > { %v3943_v23 = vpop.f32.mrf.mxu0 }
 0x6fc   : > { %v3117_v43 = vadd.f32 %v3943_v23, %v5589_v17 }
 0x6fd   : > { %v3108_v60 = vpop.f32.mrf.mxu0 }
 0x6fe   : > { %3177 = vst [vmem:[%s5592_s16 + $0xb0] sm:$0xff] %v3117_v43  ;;  %v3109_v37 = vadd.f32 %v5589_v17, %v3108_v60 }
 0x6ff   : > { %v3944_v15 = vpop.f32.mrf.mxu0 }
 0x700   : > { %3175 = vst [vmem:[%s5592_s16 + $0xa0] sm:$0xff] %v3109_v37  ;;  %v3120_v51 = vadd.f32 %v3944_v15, %v5589_v17 }
 0x701   : > { %v3111_v33 = vpop.f32.mrf.mxu0 }
 0x702   : > { %3178 = vst [vmem:[%s5592_s16 + $0xb8] sm:$0xff] %v3120_v51  ;;  %v3112_v35 = vadd.f32 %v5589_v17, %v3111_v33 }
 0x703   : > { %v3947_v29 = vpop.f32.mrf.mxu0 }
 0x704   : > { %3176 = vst [vmem:[%s5592_s16 + $0xa8] sm:$0xff] %v3112_v35  ;;  %v3133_v7 = vadd.f32 %v3947_v29, %v5589_v17 }
 0x705   : > { %v3124_v61 = vpop.f32.mrf.mxu0 }
 0x706   : > { %3181 = vst [vmem:[%s5592_s16 + $0xd0] sm:$0xff] %v3133_v7  ;;  %v3125_v25 = vadd.f32 %v5589_v17, %v3124_v61 }
 0x707   : > { %v3948_v46 = vpop.f32.mrf.mxu0 }
 0x708   : > { %3179 = vst [vmem:[%s5592_s16 + $0xc0] sm:$0xff] %v3125_v25  ;;  %v3136_v21 = vadd.f32 %v3948_v46, %v5589_v17 }
 0x709   : > { %v3127_v6 = vpop.f32.mrf.mxu0 }
 0x70a   : > { %3182 = vst [vmem:[%s5592_s16 + $0xd8] sm:$0xff] %v3136_v21  ;;  %v3128_v52 = vadd.f32 %v5589_v17, %v3127_v6 }
 0x70b   : > { %v3951_v13 = vpop.f32.mrf.mxu0 }
 0x70c   : > { %3180 = vst [vmem:[%s5592_s16 + $0xc8] sm:$0xff] %v3128_v52  ;;  %v3149_v30 = vadd.f32 %v3951_v13, %v5589_v17 }
 0x70d   : > { %v3140_v11 = vpop.f32.mrf.mxu0 }
 0x70e   : > { %3185 = vst [vmem:[%s5592_s16 + $0xf0] sm:$0xff] %v3149_v30  ;;  %v3141_v36 = vadd.f32 %v5589_v17, %v3140_v11 }
 0x70f   : > { %v3952_v26 = vpop.f32.mrf.mxu0 }
 0x710   : > { %3183 = vst [vmem:[%s5592_s16 + $0xe0] sm:$0xff] %v3141_v36  ;;  %v3152_v38 = vadd.f32 %v3952_v26, %v5589_v17 }
 0x711   : > { %v3143_v27 = vpop.f32.mrf.mxu0 }
 0x712   : > { %3186 = vst [vmem:[%s5592_s16 + $0xf8] sm:$0xff] %v3152_v38  ;;  %v3144_v62 = vadd.f32 %v5589_v17, %v3143_v27 }
 0x714   : > { %3184 = vst [vmem:[%s5592_s16 + $0xe8] sm:$0xff] %v3144_v62 }
 0x715   : > { %4143 = shalt.err (!%p4140_p0)
}
 0x716   : > { %s4144_s28 = scalar_lea.hbm %s5659_s25, 4096  ;;  %s4148_s17 = scalar_lea.hbm %s5717_s9, 8192 }
 0x717   : > { %p4145_p1 = scmp.ne.s32.totalorder %s5659_s25, %s4144_s28  ;;  %p4149_p4 = scmp.lt.s32.totalorder %s5659_s25, %s5717_s9 }
 0x718   : > { %p4150_p7 = scmp.lt.s32.totalorder %s4148_s17, %s4144_s28 }
 0x719   : > { %p4146_p2 = pnand %p4145_p1, %p4292_p5 }
 0x71a   : > { %p4151_p6 = por %p4150_p7, %p4149_p4 }
 0x71b   : > { %p4147_p3 = pneg %p4146_p2 }
 0x71d   : > { %p4152_p8 = pnand %p4151_p6, %p4147_p3 }
 0x71f   : > { %4155 = shalt.err (!%p4152_p8)
}
 0x720   : > { %s4202_s26 = smov 128   ;;  %s4203_s27 = smov 8  }
 0x721   : > { %3963 = dma.vmem_to_hbm [thread:$0]  (%p4292_p5), %s5661_s21, 4096, %s5659_s25, %s5668_s13, %s4202_s26, %s4202_s26, %s4203_s27  }
 0x722 PF: > { %p3975_p9 = scmp.ge.s32.totalorder %s4194_s12, 2  ;;  %s3216_s29 = sand.u32 1, %s4182_s30  }
 0x723   : > { %p5827_p10 = scmp.ne.s32.totalorder %s5729_s20, 0  ;;  %s3217_s23 = scalar_lea.sflag [#allocation4], %s3216_s29 }
 0x725   : > { %p3970_p11 = pnand %p3975_p9, %p5827_p10 }
 0x727   : > { %p3971_p12 = pneg %p3970_p11 }
 0x729   : > { %4177 = dma.done.wait (%p3971_p12), %s3217_s23, 4096  }
 0x72a   : > { %4179 = vsyncadd (%p3971_p12), %s3217_s23, 4294963200  ;;  %p20_p13 = scmp.ge.s32.totalorder %s4279_s15, 4   ;;  %s5828_s30 = smov %s4186_s10 }
 0x72b   : > { %s5829_s10 = smov %s4190_s11  ;;  %s5830_s11 = smov %s4290_s18 }
 0x72c   : > { %s5831_s12 = smov %s4279_s15  ;;  %22 = sbr.rel (!%p20_p13) target bundleno = 4 (0x4), region = 104 }
 0x731   :  { %3222 = vsyncpa [#allocation3], 1 }
 0x732   :  { %3224 = vsyncpa [#allocation3 + $0x1], 1 }
 0x733   :  { %3225 = vsyncpa [#allocation4], 1 }
 0x734   :  { %3227 = vsyncpa [#allocation4 + $0x1], 1 }

</bundles_post_ra>
